<compile_context>
chip_gen: v7x
topology: tpu7x:2x2x1
jax: 0.10.0
libtpu: 0.0.40
codegen_flags: <defaults>
</compile_context>

<pallas_src>
import functools

import jax
import jax.numpy as jnp
from jax.experimental import pallas as pl
from jax.experimental.pallas import tpu as pltpu


def _round_up(x, m):
    return (x + m - 1) // m * m


def _detect_chip():
    """MXU-matched tile width and scoped-VMEM budget per TPU generation."""
    try:
        kind = jax.devices()[0].device_kind.lower()
    except Exception:
        kind = ""
    is_v5 = "v5" in kind
    big_vmem = any(t in kind for t in ("v4", "v5", "v6"))     # 128 MiB physical VMEM
    tile = 128 if is_v5 else 256                              # v5e MXU is 128x128; v6e/v7x are 256-wide
    vmem = (80 if big_vmem else 40) * 1024 * 1024             # v7x has only 64 MiB physical VMEM
    return tile, vmem


MXU_TILE, VMEM_LIMIT = _detect_chip()


def _sigmoid(x):
    # exp + approximate reciprocal both route to the EUP slot (cheap in VPU-bound code).
    return pl.reciprocal(1.0 + jnp.exp(-x), approx=True)


# --------------------------------------------------------------------------------------
# 1x1 conv (+ shortcut) as an MXU matmul with fused BatchNorm / ReLU epilogue
# --------------------------------------------------------------------------------------

def _matmul_bn_act_kernel(x_ref, w_ref, s_ref, b_ref, o_ref, *, relu):
    """o = act((x @ w) * scale + bias): bf16 MXU matmul, f32 epilogue (folded BatchNorm)."""
    acc = jnp.dot(x_ref[...], w_ref[...], preferred_element_type=jnp.float32)
    y = acc * s_ref[...] + b_ref[...]
    if relu:
        y = jnp.maximum(y, 0.0)
    o_ref[...] = y.astype(o_ref.dtype)


def matmul_bn_act(x2d, w, scale, bias, relu, out_dtype=jnp.bfloat16):
    """x2d: (M, K) @ w: (K, N) with per-column scale/bias.

    The output channel dim is padded to a multiple of 128 (lane-dense stores) and the
    padding is CARRIED: padded columns get scale=bias=0 so they are exactly zero."""
    M, K = x2d.shape
    N = w.shape[1]
    Np = _round_up(N, 128)
    if Np > N:
        w = jnp.pad(w, ((0, 0), (0, Np - N)))
        scale = jnp.pad(scale, (0, Np - N))
        bias = jnp.pad(bias, (0, Np - N))
    x2d = x2d.astype(jnp.bfloat16)
    w = w.astype(jnp.bfloat16)
    scale = scale.reshape(1, Np).astype(jnp.float32)
    bias = bias.reshape(1, Np).astype(jnp.float32)

    # M tiling: MXU-sized tiles when M is large, otherwise split in two so the grid has
    # more than one step (megacore can share the work).
    SUB = 16
    Mp = _round_up(M, SUB)
    if Mp >= 2 * MXU_TILE:
        tm = MXU_TILE
        Mp = _round_up(M, tm)
    elif Mp % (2 * SUB) == 0 and Mp >= 2 * SUB:
        tm = Mp // 2
    else:
        tm = Mp
    if Mp != M:
        x2d = jnp.pad(x2d, ((0, Mp - M), (0, 0)))

    # N tiling matched to the MXU width; Np is always a multiple of 128.
    tn = MXU_TILE if Np % MXU_TILE == 0 else 128
    nm, nn = Mp // tm, Np // tn

    # Larger-extent parallel axis first (balanced megacore split even when one axis is 1).
    if nn >= nm:
        grid = (nn, nm)
        x_map = lambda j, i: (i, 0)
        w_map = lambda j, i: (0, j)
        v_map = lambda j, i: (0, j)
        o_map = lambda j, i: (i, j)
    else:
        grid = (nm, nn)
        x_map = lambda i, j: (i, 0)
        w_map = lambda i, j: (0, j)
        v_map = lambda i, j: (0, j)
        o_map = lambda i, j: (i, j)

    out = pl.pallas_call(
        functools.partial(_matmul_bn_act_kernel, relu=relu),
        out_shape=jax.ShapeDtypeStruct((Mp, Np), out_dtype),
        grid=grid,
        in_specs=[
            pl.BlockSpec((tm, K), x_map),
            pl.BlockSpec((K, tn), w_map),
            pl.BlockSpec((1, tn), v_map),
            pl.BlockSpec((1, tn), v_map),
        ],
        out_specs=pl.BlockSpec((tm, tn), o_map),
        compiler_params=pltpu.CompilerParams(
            dimension_semantics=("parallel", "parallel"),
            vmem_limit_bytes=VMEM_LIMIT),
    )(x2d, w, scale, bias)
    if Mp != M:
        out = out[:M]
    return out                                               # (M, Np) — channel padding carried


def conv1x1_bn_act(x, w, scale, bias, relu):
    """1x1 Conv2d(bias=False) + folded BN + optional ReLU. x: NHWC (channels may be padded),
    w: (Cin_real, Cout_real). Returns NHWC with Cout padded to a multiple of 128."""
    N, H, W, C = x.shape
    cin = w.shape[0]
    if cin < C:                                              # input channels were lane-padded
        w = jnp.pad(w, ((0, C - cin), (0, 0)))
    y = matmul_bn_act(x.reshape(N * H * W, C), w, scale, bias, relu)
    return y.reshape(N, H, W, y.shape[1])


# --------------------------------------------------------------------------------------
# 3x3 conv (stride 1, pad 1): in-kernel im2col -> a single deep-K MXU matmul
# --------------------------------------------------------------------------------------

def _conv3x3_bn_act_kernel(x_ref, w_ref, s_ref, b_ref, o_ref, xpad_ref, xcol_ref, *, relu):
    """bf16 padded slab (borders zeroed only — interior is fully overwritten each step),
    im2col into a (H*W, 9*C) bf16 buffer, one K=9*C matmul, fused BN/ReLU epilogue."""
    _, H, W, C = x_ref.shape
    Cout = w_ref.shape[1]

    # Zero only the 1-wide halo of the padded slab; write the interior.
    zrow = jnp.zeros((1, W + 2, C), jnp.bfloat16)
    zcol = jnp.zeros((H, 1, C), jnp.bfloat16)
    xpad_ref[0:1] = zrow
    xpad_ref[H + 1:H + 2] = zrow
    xpad_ref[1:1 + H, 0:1, :] = zcol
    xpad_ref[1:1 + H, W + 1:W + 2, :] = zcol
    xpad_ref[1:1 + H, 1:1 + W, :] = x_ref[0]

    # im2col: 9 shifted windows laid side by side on the lane axis (128-aligned slices).
    for di in range(3):
        for dj in range(3):
            t = di * 3 + dj
            xcol_ref[:, t * C:(t + 1) * C] = (
                xpad_ref[di:di + H, dj:dj + W, :].reshape(H * W, C))

    acc = jnp.dot(xcol_ref[...], w_ref[...], preferred_element_type=jnp.float32)
    y = acc * s_ref[...] + b_ref[...]
    if relu:
        y = jnp.maximum(y, 0.0)
    o_ref[...] = y.reshape(1, H, W, Cout).astype(o_ref.dtype)


def conv3x3_bn_act(x, w9, scale, bias, relu):
    """x: NHWC (channels may be padded), w9: (9, Cin_real, Cout_real) — taps row-major.
    Returns NHWC with Cout padded to a multiple of 128."""
    N, H, W, C = x.shape
    _, cin, cout = w9.shape
    coutp = _round_up(cout, 128)
    if cin < C:
        w9 = jnp.pad(w9, ((0, 0), (0, C - cin), (0, 0)))
    if coutp > cout:
        w9 = jnp.pad(w9, ((0, 0), (0, 0), (0, coutp - cout)))
        scale = jnp.pad(scale, (0, coutp - cout))
        bias = jnp.pad(bias, (0, coutp - cout))
    w2d = w9.reshape(9 * C, coutp).astype(jnp.bfloat16)       # row index = tap*C + cin

    # TODO(synk): for very large feature maps on v7x (64 MiB VMEM), tile this grid over
    # H row-strips with a 1-row halo instead of one whole image per step.
    return pl.pallas_call(
        functools.partial(_conv3x3_bn_act_kernel, relu=relu),
        out_shape=jax.ShapeDtypeStruct((N, H, W, coutp), jnp.bfloat16),
        grid=(N,),
        in_specs=[
            pl.BlockSpec((1, H, W, C), lambda n: (n, 0, 0, 0)),
            pl.BlockSpec((9 * C, coutp), lambda n: (0, 0)),
            pl.BlockSpec((1, coutp), lambda n: (0, 0)),
            pl.BlockSpec((1, coutp), lambda n: (0, 0)),
        ],
        out_specs=pl.BlockSpec((1, H, W, coutp), lambda n: (n, 0, 0, 0)),
        scratch_shapes=[pltpu.VMEM((H + 2, W + 2, C), jnp.bfloat16),
                        pltpu.VMEM((H * W, 9 * C), jnp.bfloat16)],
        compiler_params=pltpu.CompilerParams(
            dimension_semantics=("parallel",),
            vmem_limit_bytes=VMEM_LIMIT),
    )(x.astype(jnp.bfloat16), w2d,
      scale.reshape(1, coutp).astype(jnp.float32),
      bias.reshape(1, coutp).astype(jnp.float32))


# --------------------------------------------------------------------------------------
# Fused CBAM (channel + spatial gates) + residual add + ReLU
# --------------------------------------------------------------------------------------

def _cbam_residual_relu_kernel(x_ref, id_ref, fc1_ref, fc2_ref, wsp_ref, o_ref,
                               apad_ref, mpad_ref, *, c_real):
    """One batch element: channel MLP on the MXU; 7x7 spatial conv as 98 lane-dense (H, W)
    scalar-FMAs over zero-padded 2-D scratch maps; gate, residual add and ReLU fused.
    Features stay bf16; only descriptors / maps / the final combine are f32."""
    _, H, W, C = x_ref.shape
    x = x_ref[0]                                                       # (H, W, C) bf16

    # --- channel attention: shared MLP over global avg / max pooled descriptors ---
    avg = (jnp.sum(x.astype(jnp.float32), axis=(0, 1)) *
           (1.0 / (H * W))).reshape(1, C)
    mx = jnp.max(x.astype(jnp.float32), axis=(0, 1)).reshape(1, C)
    v = jnp.concatenate([avg, mx], axis=0).astype(fc1_ref.dtype)       # (2, C)
    h = jnp.maximum(jnp.dot(v, fc1_ref[...], preferred_element_type=jnp.float32), 0.0)
    g = jnp.dot(h.astype(fc2_ref.dtype), fc2_ref[...],
                preferred_element_type=jnp.float32)                    # (2, C)
    ca = _sigmoid(g[0:1] + g[1:2])                                     # (1, C) f32
    xc = x * ca.reshape(1, 1, C).astype(x.dtype)                       # (H, W, C) bf16

    # --- spatial attention: 7x7 conv (pad 3) over lane-dense channel-avg / channel-max maps ---
    avg_m = jnp.sum(xc.astype(jnp.float32), axis=-1) * (1.0 / c_real)  # (H, W)
    if c_real == C:
        max_m = jnp.max(xc.astype(jnp.float32), axis=-1)               # (H, W)
    else:  # channel dim is lane-padded with zeros: mask them out of the max
        lane = jax.lax.broadcasted_iota(jnp.int32, (1, 1, C), 2)
        max_m = jnp.max(jnp.where(lane < c_real, xc.astype(jnp.float32), -jnp.inf), axis=-1)

    apad_ref[...] = jnp.zeros_like(apad_ref)                           # 2-D map: cheap
    mpad_ref[...] = jnp.zeros_like(mpad_ref)
    apad_ref[3:3 + H, 3:3 + W] = avg_m
    mpad_ref[3:3 + H, 3:3 + W] = max_m

    sa = jnp.zeros((H, W), jnp.float32)
    for di in range(7):
        for dj in range(7):
            t = di * 7 + dj                                            # wsp: [avg 49 | max 49]
            sa = sa + apad_ref[di:di + H, dj:dj + W] * wsp_ref[t]
            sa = sa + mpad_ref[di:di + H, dj:dj + W] * wsp_ref[49 + t]
    sa = _sigmoid(sa)                                                  # (H, W) f32

    # --- gate + residual add (FloatFunctional.add) + ReLU ---
    out = xc.astype(jnp.float32) * sa[:, :, None] + id_ref[0].astype(jnp.float32)
    o_ref[...] = jnp.maximum(out, 0.0)[None].astype(o_ref.dtype)


def cbam_residual_relu(x, identity, cbam_p, c_real):
    """x, identity: NHWC bf16 (channels possibly lane-padded). Returns relu(cbam(x)+identity)
    in bf16 with the same (padded) channel count."""
    N, H, W, C = x.shape
    fc1, fc2 = cbam_p['fc1'], cbam_p['fc2']
    r = fc1.shape[1]
    if fc1.shape[0] < C:                                     # pad MLP to the lane-padded C
        fc1 = jnp.pad(fc1, ((0, C - fc1.shape[0]), (0, 0)))
        fc2 = jnp.pad(fc2, ((0, 0), (0, C - fc2.shape[1])))

    # TODO(synk): add a VMEM-budget guard that splits pooling and gating into two spatially
    # tiled passes when a single image slab would not fit v7x's 64 MiB VMEM.
    return pl.pallas_call(
        functools.partial(_cbam_residual_relu_kernel, c_real=c_real),
        out_shape=jax.ShapeDtypeStruct((N, H, W, C), jnp.bfloat16),
        grid=(N,),
        in_specs=[
            pl.BlockSpec((1, H, W, C), lambda n: (n, 0, 0, 0)),
            pl.BlockSpec((1, H, W, C), lambda n: (n, 0, 0, 0)),
            pl.BlockSpec((C, r), lambda n: (0, 0)),
            pl.BlockSpec((r, C), lambda n: (0, 0)),
            pl.BlockSpec(memory_space=pltpu.MemorySpace.SMEM),   # flattened 7x7x2 weights
        ],
        out_specs=pl.BlockSpec((1, H, W, C), lambda n: (n, 0, 0, 0)),
        scratch_shapes=[pltpu.VMEM((H + 6, W + 6), jnp.float32),
                        pltpu.VMEM((H + 6, W + 6), jnp.float32)],
        compiler_params=pltpu.CompilerParams(
            dimension_semantics=("parallel",),
            vmem_limit_bytes=VMEM_LIMIT),
    )(x.astype(jnp.bfloat16), identity.astype(jnp.bfloat16),
      fc1.astype(jnp.bfloat16), fc2.astype(jnp.bfloat16),
      cbam_p['wsp'].astype(jnp.float32))


# --------------------------------------------------------------------------------------
# CBAM bottleneck block forward
# --------------------------------------------------------------------------------------

def cbam_bottleneck_block(x_nchw, p):
    """Forward of CBAMBottleneckBlock (inference). NCHW float32 in -> NCHW float32 out."""
    x = jnp.transpose(x_nchw, (0, 2, 3, 1)).astype(jnp.bfloat16)   # NCHW -> NHWC
    s = p['stride']
    xs = x[:, ::s, ::s, :] if s > 1 else x                         # shared by conv1 & shortcut
    cout = p['cout']

    # conv1 (1x1, stride) -> bn1 -> dropout(identity in eval) -> relu
    out = conv1x1_bn_act(xs, p['w1'], p['s1'], p['b1'], relu=True)
    # conv2 (3x3, pad 1)  -> bn2 -> dropout -> relu
    out = conv3x3_bn_act(out, p['w2'], p['s2'], p['b2'], relu=True)
    # conv3 (1x1)         -> bn3 -> dropout
    out = conv1x1_bn_act(out, p['w3'], p['s3'], p['b3'], relu=False)

    # shortcut (1x1 conv + bn) when stride != 1 or the channel count changes
    if p['shortcut'] is not None:
        ws, ss, bs = p['shortcut']
        identity = conv1x1_bn_act(xs, ws, ss, bs, relu=False)
    else:
        identity = xs
        if identity.shape[-1] < out.shape[-1]:                     # match lane padding
            identity = jnp.pad(identity, ((0, 0), (0, 0), (0, 0),
                                          (0, out.shape[-1] - identity.shape[-1])))

    # CBAM, residual add, ReLU — fused in a single Pallas kernel (bf16 output)
    y = cbam_residual_relu(out, identity, p['cbam'], cout)
    y = y[..., :cout]                                              # drop lane padding
    return jnp.transpose(y, (0, 3, 1, 2)).astype(jnp.float32)


# --------------------------------------------------------------------------------------
# Deterministic synthetic parameters (BatchNorm folded to scale/bias)
# --------------------------------------------------------------------------------------

class _ParamGen:
    def __init__(self, seed):
        self._key = jax.random.PRNGKey(seed)

    def _next(self):
        self._key, sub = jax.random.split(self._key)
        return sub

    def conv(self, kh, kw, cin, cout):
        fan_in = kh * kw * cin
        return (jax.random.normal(self._next(), (kh, kw, cin, cout), jnp.float32)
                * jnp.sqrt(2.0 / fan_in))

    def bn(self, c):
        eps = 1e-5
        gamma = 1.0 + 0.1 * jax.random.normal(self._next(), (c,), jnp.float32)
        beta = 0.1 * jax.random.normal(self._next(), (c,), jnp.float32)
        mean = 0.1 * jax.random.normal(self._next(), (c,), jnp.float32)
        var = 1.0 + 0.1 * jnp.abs(jax.random.normal(self._next(), (c,), jnp.float32))
        scale = gamma / jnp.sqrt(var + eps)
        bias = beta - mean * scale
        return scale, bias


def build_block_params(in_channels, channels, expansion=4, stride=1, seed=0):
    pg = _ParamGen(seed)
    cout = channels * expansion
    p = {'stride': stride, 'cout': cout}
    p['w1'] = pg.conv(1, 1, in_channels, channels).reshape(in_channels, channels)
    p['s1'], p['b1'] = pg.bn(channels)
    p['w2'] = pg.conv(3, 3, channels, channels).reshape(9, channels, channels)
    p['s2'], p['b2'] = pg.bn(channels)
    p['w3'] = pg.conv(1, 1, channels, cout).reshape(channels, cout)
    p['s3'], p['b3'] = pg.bn(cout)
    if stride != 1 or in_channels != cout:
        ws = pg.conv(1, 1, in_channels, cout).reshape(in_channels, cout)
        ss, bs = pg.bn(cout)
        p['shortcut'] = (ws, ss, bs)
    else:
        p['shortcut'] = None
    # TODO(synk): ConvolutionalBlockAttentionModule source is not in the reference file;
    # standard CBAM (reduction-16 bias-free channel MLP + 7x7 spatial gate over [avg,max])
    # is assumed.
    r = max(cout // 16, 1)
    wsp = pg.conv(7, 7, 2, 1).reshape(7, 7, 2)                     # (kh, kw, cin)
    p['cbam'] = {
        'fc1': pg.conv(1, 1, cout, r).reshape(cout, r),
        'fc2': pg.conv(1, 1, r, cout).reshape(r, cout),
        'wsp': jnp.transpose(wsp, (2, 0, 1)).reshape(-1),          # (98,): cin*49 + di*7 + dj
    }
    return p


if __name__ == "__main__":
    in_channels, channels, expansion, stride = 64, 32, 4, 2
    x = jax.random.normal(jax.random.PRNGKey(0), (2, in_channels, 16, 16), jnp.float32)
    params = build_block_params(in_channels, channels, expansion, stride, seed=0)

    fwd = jax.jit(lambda inp: cbam_bottleneck_block(inp, params))
    out = jax.block_until_ready(fwd(x))

    assert out.shape == (2, channels * expansion, 16 // stride, 16 // stride), out.shape
    assert out.dtype == jnp.float32
    assert bool(jnp.all(jnp.isfinite(out)))
    assert bool(jnp.all(out >= 0.0))          # block output is post-ReLU
    print("KERNEL_OK")
</pallas_src>

<mosaic_0001>
module attributes {stable_mosaic.version = 11 : i64} {
  func.func @_matmul_bn_act_kernel(%arg0: i32, %arg1: i32, %arg2: memref<64x64xbf16, #tpu.memory_space<vmem>>, %arg3: memref<64x128xbf16, #tpu.memory_space<vmem>>, %arg4: memref<1x128xf32, #tpu.memory_space<vmem>>, %arg5: memref<1x128xf32, #tpu.memory_space<vmem>>, %arg6: memref<64x128xbf16, #tpu.memory_space<vmem>>) attributes {dimension_semantics = [#tpu.dimension_semantics<parallel>, #tpu.dimension_semantics<parallel>], iteration_bounds = array<i64: 2, 1>, scalar_prefetch = 0 : i64, scratch_operands = 0 : i64, tpu.core_type = #tpu.core_type<tc>, window_params = [{transform_indices = @transform_0, window_bounds = array<i64: 64, 64>}, {transform_indices = @transform_1, window_bounds = array<i64: 64, 128>}, {transform_indices = @transform_2, window_bounds = array<i64: 1, 128>}, {transform_indices = @transform_3, window_bounds = array<i64: 1, 128>}, {transform_indices = @transform_4, window_bounds = array<i64: 64, 128>}]} {
    %c0 = arith.constant 0 : index
    %c0_0 = arith.constant 0 : index
    %0 = vector.load %arg2[%c0, %c0_0] : memref<64x64xbf16, #tpu.memory_space<vmem>>, vector<64x64xbf16>
    %c0_1 = arith.constant 0 : index
    %c0_2 = arith.constant 0 : index
    %1 = vector.load %arg3[%c0_1, %c0_2] : memref<64x128xbf16, #tpu.memory_space<vmem>>, vector<64x128xbf16>
    %cst = arith.constant dense<0.000000e+00> : vector<64x128xf32>
    %2 = tpu.matmul %0, %1, %cst {dimension_numbers = #tpu.dot_dimension_numbers<[1], [0], [0], [1], [0, 0, 1, 1], [], []>} : vector<64x64xbf16>, vector<64x128xbf16>, vector<64x128xf32> -> vector<64x128xf32>
    %c0_3 = arith.constant 0 : index
    %c0_4 = arith.constant 0 : index
    %3 = vector.load %arg4[%c0_3, %c0_4] : memref<1x128xf32, #tpu.memory_space<vmem>>, vector<1x128xf32>
    %4 = vector.broadcast %3 : vector<1x128xf32> to vector<64x128xf32>
    %5 = arith.mulf %2, %4 : vector<64x128xf32>
    %c0_5 = arith.constant 0 : index
    %c0_6 = arith.constant 0 : index
    %6 = vector.load %arg5[%c0_5, %c0_6] : memref<1x128xf32, #tpu.memory_space<vmem>>, vector<1x128xf32>
    %7 = vector.broadcast %6 : vector<1x128xf32> to vector<64x128xf32>
    %8 = arith.addf %5, %7 : vector<64x128xf32>
    %cst_7 = arith.constant 0.000000e+00 : f32
    %9 = vector.broadcast %cst_7 : f32 to vector<64x128xf32>
    %10 = arith.maximumf %8, %9 : vector<64x128xf32>
    %11 = arith.truncf %10 : vector<64x128xf32> to vector<64x128xbf16>
    %c0_8 = arith.constant 0 : index
    %c0_9 = arith.constant 0 : index
    %12 = vector.load %arg6[%c0_8, %c0_9] : memref<64x128xbf16, #tpu.memory_space<vmem>>, vector<64x128xbf16>
    tpu.vector_store %arg6[%c0_8, %c0_9], %11 {strides = array<i32>} : memref<64x128xbf16, #tpu.memory_space<vmem>>, vector<64x128xbf16>,
    return
  }
  func.func @transform_0(%arg0: i32, %arg1: i32) -> (i32, i32) {
    %c0_i32 = arith.constant 0 : i32
    %c0_i32_0 = arith.constant 0 : i32
    return %arg0, %c0_i32 : i32, i32
  }
  func.func @transform_1(%arg0: i32, %arg1: i32) -> (i32, i32) {
    %c0_i32 = arith.constant 0 : i32
    %c0_i32_0 = arith.constant 0 : i32
    return %c0_i32, %arg1 : i32, i32
  }
  func.func @transform_2(%arg0: i32, %arg1: i32) -> (i32, i32) {
    %c0_i32 = arith.constant 0 : i32
    %c0_i32_0 = arith.constant 0 : i32
    return %c0_i32, %arg1 : i32, i32
  }
  func.func @transform_3(%arg0: i32, %arg1: i32) -> (i32, i32) {
    %c0_i32 = arith.constant 0 : i32
    %c0_i32_0 = arith.constant 0 : i32
    return %c0_i32, %arg1 : i32, i32
  }
  func.func @transform_4(%arg0: i32, %arg1: i32) -> (i32, i32) {
    %c0_i32 = arith.constant 0 : i32
    return %arg0, %arg1 : i32, i32
  }
}

module attributes {stable_mosaic.version = 11 : i64} {
  func.func @_matmul_bn_act_kernel(%arg0: i32, %arg1: i32, %arg2: memref<64x64xbf16, #tpu.memory_space<vmem>>, %arg3: memref<64x128xbf16, #tpu.memory_space<vmem>>, %arg4: memref<1x128xf32, #tpu.memory_space<vmem>>, %arg5: memref<1x128xf32, #tpu.memory_space<vmem>>, %arg6: memref<64x128xbf16, #tpu.memory_space<vmem>>) attributes {dimension_semantics = [#tpu.dimension_semantics<parallel>, #tpu.dimension_semantics<parallel>], iteration_bounds = array<i64: 2, 1>, scalar_prefetch = 0 : i64, scratch_operands = 0 : i64, tpu.core_type = #tpu.core_type<tc>, window_params = [{transform_indices = @transform_0, window_bounds = array<i64: 64, 64>}, {transform_indices = @transform_1, window_bounds = array<i64: 64, 128>}, {transform_indices = @transform_2, window_bounds = array<i64: 1, 128>}, {transform_indices = @transform_3, window_bounds = array<i64: 1, 128>}, {transform_indices = @transform_4, window_bounds = array<i64: 64, 128>}]} {
    %c0 = arith.constant 0 : index
    %c0_0 = arith.constant 0 : index
    %0 = vector.load %arg2[%c0, %c0_0] : memref<64x64xbf16, #tpu.memory_space<vmem>>, vector<64x64xbf16>
    %c0_1 = arith.constant 0 : index
    %c0_2 = arith.constant 0 : index
    %1 = vector.load %arg3[%c0_1, %c0_2] : memref<64x128xbf16, #tpu.memory_space<vmem>>, vector<64x128xbf16>
    %cst = arith.constant dense<0.000000e+00> : vector<64x128xf32>
    %2 = tpu.matmul %0, %1, %cst {dimension_numbers = #tpu.dot_dimension_numbers<[1], [0], [0], [1], [0, 0, 1, 1], [], []>} : vector<64x64xbf16>, vector<64x128xbf16>, vector<64x128xf32> -> vector<64x128xf32>
    %c0_3 = arith.constant 0 : index
    %c0_4 = arith.constant 0 : index
    %3 = vector.load %arg4[%c0_3, %c0_4] : memref<1x128xf32, #tpu.memory_space<vmem>>, vector<1x128xf32>
    %4 = vector.broadcast %3 : vector<1x128xf32> to vector<64x128xf32>
    %5 = arith.mulf %2, %4 : vector<64x128xf32>
    %c0_5 = arith.constant 0 : index
    %c0_6 = arith.constant 0 : index
    %6 = vector.load %arg5[%c0_5, %c0_6] : memref<1x128xf32, #tpu.memory_space<vmem>>, vector<1x128xf32>
    %7 = vector.broadcast %6 : vector<1x128xf32> to vector<64x128xf32>
    %8 = arith.addf %5, %7 : vector<64x128xf32>
    %9 = arith.truncf %8 : vector<64x128xf32> to vector<64x128xbf16>
    %c0_7 = arith.constant 0 : index
    %c0_8 = arith.constant 0 : index
    %10 = vector.load %arg6[%c0_7, %c0_8] : memref<64x128xbf16, #tpu.memory_space<vmem>>, vector<64x128xbf16>
    tpu.vector_store %arg6[%c0_7, %c0_8], %9 {strides = array<i32>} : memref<64x128xbf16, #tpu.memory_space<vmem>>, vector<64x128xbf16>,
    return
  }
  func.func @transform_0(%arg0: i32, %arg1: i32) -> (i32, i32) {
    %c0_i32 = arith.constant 0 : i32
    %c0_i32_0 = arith.constant 0 : i32
    return %arg0, %c0_i32 : i32, i32
  }
  func.func @transform_1(%arg0: i32, %arg1: i32) -> (i32, i32) {
    %c0_i32 = arith.constant 0 : i32
    %c0_i32_0 = arith.constant 0 : i32
    return %c0_i32, %arg1 : i32, i32
  }
  func.func @transform_2(%arg0: i32, %arg1: i32) -> (i32, i32) {
    %c0_i32 = arith.constant 0 : i32
    %c0_i32_0 = arith.constant 0 : i32
    return %c0_i32, %arg1 : i32, i32
  }
  func.func @transform_3(%arg0: i32, %arg1: i32) -> (i32, i32) {
    %c0_i32 = arith.constant 0 : i32
    %c0_i32_0 = arith.constant 0 : i32
    return %c0_i32, %arg1 : i32, i32
  }
  func.func @transform_4(%arg0: i32, %arg1: i32) -> (i32, i32) {
    %c0_i32 = arith.constant 0 : i32
    return %arg0, %arg1 : i32, i32
  }
}

module attributes {stable_mosaic.version = 11 : i64} {
  func.func @_conv3x3_bn_act_kernel(%arg0: i32, %arg1: memref<1x8x8x128xbf16, #tpu.memory_space<vmem>>, %arg2: memref<1152x128xbf16, #tpu.memory_space<vmem>>, %arg3: memref<1x128xf32, #tpu.memory_space<vmem>>, %arg4: memref<1x128xf32, #tpu.memory_space<vmem>>, %arg5: memref<1x8x8x128xbf16, #tpu.memory_space<vmem>>, %arg6: memref<10x10x128xbf16, #tpu.memory_space<vmem>>, %arg7: memref<64x1152xbf16, #tpu.memory_space<vmem>>) attributes {dimension_semantics = [#tpu.dimension_semantics<parallel>], iteration_bounds = array<i64: 2>, scalar_prefetch = 0 : i64, scratch_operands = 2 : i64, tpu.core_type = #tpu.core_type<tc>, window_params = [{transform_indices = @transform_0, window_bounds = array<i64: 1, 8, 8, 128>}, {pipeline_mode = #tpu.pipeline_mode<synchronous>, transform_indices = @transform_1, window_bounds = array<i64: 1152, 128>}, {pipeline_mode = #tpu.pipeline_mode<synchronous>, transform_indices = @transform_2, window_bounds = array<i64: 1, 128>}, {pipeline_mode = #tpu.pipeline_mode<synchronous>, transform_indices = @transform_3, window_bounds = array<i64: 1, 128>}, {transform_indices = @transform_4, window_bounds = array<i64: 1, 8, 8, 128>}]} {
    %cst = arith.constant 0.000000e+00 : bf16
    %0 = vector.broadcast %cst : bf16 to vector<1x10x128xbf16>
    %cst_0 = arith.constant 0.000000e+00 : bf16
    %1 = vector.broadcast %cst_0 : bf16 to vector<8x1x128xbf16>
    %c0 = arith.constant 0 : index
    %c0_1 = arith.constant 0 : index
    %c0_2 = arith.constant 0 : index
    %2 = vector.load %arg6[%c0, %c0_1, %c0_2] : memref<10x10x128xbf16, #tpu.memory_space<vmem>>, vector<1x10x128xbf16>
    tpu.vector_store %arg6[%c0, %c0_1, %c0_2], %0 {strides = array<i32>} : memref<10x10x128xbf16, #tpu.memory_space<vmem>>, vector<1x10x128xbf16>,
    %c9 = arith.constant 9 : index
    %c0_3 = arith.constant 0 : index
    %c0_4 = arith.constant 0 : index
    %3 = vector.load %arg6[%c9, %c0_3, %c0_4] : memref<10x10x128xbf16, #tpu.memory_space<vmem>>, vector<1x10x128xbf16>
    tpu.vector_store %arg6[%c9, %c0_3, %c0_4], %0 {strides = array<i32>} : memref<10x10x128xbf16, #tpu.memory_space<vmem>>, vector<1x10x128xbf16>,
    %c1 = arith.constant 1 : index
    %c0_5 = arith.constant 0 : index
    %c0_6 = arith.constant 0 : index
    %4 = vector.load %arg6[%c1, %c0_5, %c0_6] : memref<10x10x128xbf16, #tpu.memory_space<vmem>>, vector<8x1x128xbf16>
    tpu.vector_store %arg6[%c1, %c0_5, %c0_6], %1 {strides = array<i32>} : memref<10x10x128xbf16, #tpu.memory_space<vmem>>, vector<8x1x128xbf16>,
    %c1_7 = arith.constant 1 : index
    %c9_8 = arith.constant 9 : index
    %c0_9 = arith.constant 0 : index
    %5 = vector.load %arg6[%c1_7, %c9_8, %c0_9] : memref<10x10x128xbf16, #tpu.memory_space<vmem>>, vector<8x1x128xbf16>
    tpu.vector_store %arg6[%c1_7, %c9_8, %c0_9], %1 {strides = array<i32>} : memref<10x10x128xbf16, #tpu.memory_space<vmem>>, vector<8x1x128xbf16>,
    %c0_10 = arith.constant 0 : index
    %c0_11 = arith.constant 0 : index
    %c0_12 = arith.constant 0 : index
    %c0_13 = arith.constant 0 : index
    %6 = vector.load %arg1[%c0_10, %c0_11, %c0_12, %c0_13] : memref<1x8x8x128xbf16, #tpu.memory_space<vmem>>, vector<1x8x8x128xbf16>
    %7 = vector.shape_cast %6 : vector<1x8x8x128xbf16> to vector<8x8x128xbf16>
    %c1_14 = arith.constant 1 : index
    %c1_15 = arith.constant 1 : index
    %c0_16 = arith.constant 0 : index
    %8 = vector.load %arg6[%c1_14, %c1_15, %c0_16] : memref<10x10x128xbf16, #tpu.memory_space<vmem>>, vector<8x8x128xbf16>
    tpu.vector_store %arg6[%c1_14, %c1_15, %c0_16], %7 {strides = array<i32>} : memref<10x10x128xbf16, #tpu.memory_space<vmem>>, vector<8x8x128xbf16>,
    %c0_17 = arith.constant 0 : index
    %c0_18 = arith.constant 0 : index
    %c0_19 = arith.constant 0 : index
    %9 = vector.load %arg6[%c0_17, %c0_18, %c0_19] : memref<10x10x128xbf16, #tpu.memory_space<vmem>>, vector<8x8x128xbf16>
    %10 = vector.shape_cast %9 : vector<8x8x128xbf16> to vector<64x128xbf16>
    %c0_20 = arith.constant 0 : index
    %c0_21 = arith.constant 0 : index
    %11 = vector.load %arg7[%c0_20, %c0_21] : memref<64x1152xbf16, #tpu.memory_space<vmem>>, vector<64x128xbf16>
    tpu.vector_store %arg7[%c0_20, %c0_21], %10 {strides = array<i32>} : memref<64x1152xbf16, #tpu.memory_space<vmem>>, vector<64x128xbf16>,
    %c0_22 = arith.constant 0 : index
    %c1_23 = arith.constant 1 : index
    %c0_24 = arith.constant 0 : index
    %12 = vector.load %arg6[%c0_22, %c1_23, %c0_24] : memref<10x10x128xbf16, #tpu.memory_space<vmem>>, vector<8x8x128xbf16>
    %13 = vector.shape_cast %12 : vector<8x8x128xbf16> to vector<64x128xbf16>
    %c0_25 = arith.constant 0 : index
    %c128 = arith.constant 128 : index
    %14 = vector.load %arg7[%c0_25, %c128] : memref<64x1152xbf16, #tpu.memory_space<vmem>>, vector<64x128xbf16>
    tpu.vector_store %arg7[%c0_25, %c128], %13 {strides = array<i32>} : memref<64x1152xbf16, #tpu.memory_space<vmem>>, vector<64x128xbf16>,
    %c0_26 = arith.constant 0 : index
    %c2 = arith.constant 2 : index
    %c0_27 = arith.constant 0 : index
    %15 = vector.load %arg6[%c0_26, %c2, %c0_27] : memref<10x10x128xbf16, #tpu.memory_space<vmem>>, vector<8x8x128xbf16>
    %16 = vector.shape_cast %15 : vector<8x8x128xbf16> to vector<64x128xbf16>
    %c0_28 = arith.constant 0 : index
    %c256 = arith.constant 256 : index
    %17 = vector.load %arg7[%c0_28, %c256] : memref<64x1152xbf16, #tpu.memory_space<vmem>>, vector<64x128xbf16>
    tpu.vector_store %arg7[%c0_28, %c256], %16 {strides = array<i32>} : memref<64x1152xbf16, #tpu.memory_space<vmem>>, vector<64x128xbf16>,
    %c1_29 = arith.constant 1 : index
    %c0_30 = arith.constant 0 : index
    %c0_31 = arith.constant 0 : index
    %18 = vector.load %arg6[%c1_29, %c0_30, %c0_31] : memref<10x10x128xbf16, #tpu.memory_space<vmem>>, vector<8x8x128xbf16>
    %19 = vector.shape_cast %18 : vector<8x8x128xbf16> to vector<64x128xbf16>
    %c0_32 = arith.constant 0 : index
    %c384 = arith.constant 384 : index
    %20 = vector.load %arg7[%c0_32, %c384] : memref<64x1152xbf16, #tpu.memory_space<vmem>>, vector<64x128xbf16>
    tpu.vector_store %arg7[%c0_32, %c384], %19 {strides = array<i32>} : memref<64x1152xbf16, #tpu.memory_space<vmem>>, vector<64x128xbf16>,
    %c1_33 = arith.constant 1 : index
    %c1_34 = arith.constant 1 : index
    %c0_35 = arith.constant 0 : index
    %21 = vector.load %arg6[%c1_33, %c1_34, %c0_35] : memref<10x10x128xbf16, #tpu.memory_space<vmem>>, vector<8x8x128xbf16>
    %22 = vector.shape_cast %21 : vector<8x8x128xbf16> to vector<64x128xbf16>
    %c0_36 = arith.constant 0 : index
    %c512 = arith.constant 512 : index
    %23 = vector.load %arg7[%c0_36, %c512] : memref<64x1152xbf16, #tpu.memory_space<vmem>>, vector<64x128xbf16>
    tpu.vector_store %arg7[%c0_36, %c512], %22 {strides = array<i32>} : memref<64x1152xbf16, #tpu.memory_space<vmem>>, vector<64x128xbf16>,
    %c1_37 = arith.constant 1 : index
    %c2_38 = arith.constant 2 : index
    %c0_39 = arith.constant 0 : index
    %24 = vector.load %arg6[%c1_37, %c2_38, %c0_39] : memref<10x10x128xbf16, #tpu.memory_space<vmem>>, vector<8x8x128xbf16>
    %25 = vector.shape_cast %24 : vector<8x8x128xbf16> to vector<64x128xbf16>
    %c0_40 = arith.constant 0 : index
    %c640 = arith.constant 640 : index
    %26 = vector.load %arg7[%c0_40, %c640] : memref<64x1152xbf16, #tpu.memory_space<vmem>>, vector<64x128xbf16>
    tpu.vector_store %arg7[%c0_40, %c640], %25 {strides = array<i32>} : memref<64x1152xbf16, #tpu.memory_space<vmem>>, vector<64x128xbf16>,
    %c2_41 = arith.constant 2 : index
    %c0_42 = arith.constant 0 : index
    %c0_43 = arith.constant 0 : index
    %27 = vector.load %arg6[%c2_41, %c0_42, %c0_43] : memref<10x10x128xbf16, #tpu.memory_space<vmem>>, vector<8x8x128xbf16>
    %28 = vector.shape_cast %27 : vector<8x8x128xbf16> to vector<64x128xbf16>
    %c0_44 = arith.constant 0 : index
    %c768 = arith.constant 768 : index
    %29 = vector.load %arg7[%c0_44, %c768] : memref<64x1152xbf16, #tpu.memory_space<vmem>>, vector<64x128xbf16>
    tpu.vector_store %arg7[%c0_44, %c768], %28 {strides = array<i32>} : memref<64x1152xbf16, #tpu.memory_space<vmem>>, vector<64x128xbf16>,
    %c2_45 = arith.constant 2 : index
    %c1_46 = arith.constant 1 : index
    %c0_47 = arith.constant 0 : index
    %30 = vector.load %arg6[%c2_45, %c1_46, %c0_47] : memref<10x10x128xbf16, #tpu.memory_space<vmem>>, vector<8x8x128xbf16>
    %31 = vector.shape_cast %30 : vector<8x8x128xbf16> to vector<64x128xbf16>
    %c0_48 = arith.constant 0 : index
    %c896 = arith.constant 896 : index
    %32 = vector.load %arg7[%c0_48, %c896] : memref<64x1152xbf16, #tpu.memory_space<vmem>>, vector<64x128xbf16>
    tpu.vector_store %arg7[%c0_48, %c896], %31 {strides = array<i32>} : memref<64x1152xbf16, #tpu.memory_space<vmem>>, vector<64x128xbf16>,
    %c2_49 = arith.constant 2 : index
    %c2_50 = arith.constant 2 : index
    %c0_51 = arith.constant 0 : index
    %33 = vector.load %arg6[%c2_49, %c2_50, %c0_51] : memref<10x10x128xbf16, #tpu.memory_space<vmem>>, vector<8x8x128xbf16>
    %34 = vector.shape_cast %33 : vector<8x8x128xbf16> to vector<64x128xbf16>
    %c0_52 = arith.constant 0 : index
    %c1024 = arith.constant 1024 : index
    %35 = vector.load %arg7[%c0_52, %c1024] : memref<64x1152xbf16, #tpu.memory_space<vmem>>, vector<64x128xbf16>
    tpu.vector_store %arg7[%c0_52, %c1024], %34 {strides = array<i32>} : memref<64x1152xbf16, #tpu.memory_space<vmem>>, vector<64x128xbf16>,
    %c0_53 = arith.constant 0 : index
    %c0_54 = arith.constant 0 : index
    %36 = vector.load %arg7[%c0_53, %c0_54] : memref<64x1152xbf16, #tpu.memory_space<vmem>>, vector<64x1152xbf16>
    %c0_55 = arith.constant 0 : index
    %c0_56 = arith.constant 0 : index
    %37 = vector.load %arg2[%c0_55, %c0_56] : memref<1152x128xbf16, #tpu.memory_space<vmem>>, vector<1152x128xbf16>
    %cst_57 = arith.constant dense<0.000000e+00> : vector<64x128xf32>
    %38 = tpu.matmul %36, %37, %cst_57 {dimension_numbers = #tpu.dot_dimension_numbers<[1], [0], [0], [1], [0, 0, 1, 1], [], []>} : vector<64x1152xbf16>, vector<1152x128xbf16>, vector<64x128xf32> -> vector<64x128xf32>
    %c0_58 = arith.constant 0 : index
    %c0_59 = arith.constant 0 : index
    %39 = vector.load %arg3[%c0_58, %c0_59] : memref<1x128xf32, #tpu.memory_space<vmem>>, vector<1x128xf32>
    %40 = vector.broadcast %39 : vector<1x128xf32> to vector<64x128xf32>
    %41 = arith.mulf %38, %40 : vector<64x128xf32>
    %c0_60 = arith.constant 0 : index
    %c0_61 = arith.constant 0 : index
    %42 = vector.load %arg4[%c0_60, %c0_61] : memref<1x128xf32, #tpu.memory_space<vmem>>, vector<1x128xf32>
    %43 = vector.broadcast %42 : vector<1x128xf32> to vector<64x128xf32>
    %44 = arith.addf %41, %43 : vector<64x128xf32>
    %cst_62 = arith.constant 0.000000e+00 : f32
    %45 = vector.broadcast %cst_62 : f32 to vector<64x128xf32>
    %46 = arith.maximumf %44, %45 : vector<64x128xf32>
    %47 = vector.shape_cast %46 : vector<64x128xf32> to vector<1x8x8x128xf32>
    %48 = arith.truncf %47 : vector<1x8x8x128xf32> to vector<1x8x8x128xbf16>
    %c0_63 = arith.constant 0 : index
    %c0_64 = arith.constant 0 : index
    %c0_65 = arith.constant 0 : index
    %c0_66 = arith.constant 0 : index
    %49 = vector.load %arg5[%c0_63, %c0_64, %c0_65, %c0_66] : memref<1x8x8x128xbf16, #tpu.memory_space<vmem>>, vector<1x8x8x128xbf16>
    tpu.vector_store %arg5[%c0_63, %c0_64, %c0_65, %c0_66], %48 {strides = array<i32>} : memref<1x8x8x128xbf16, #tpu.memory_space<vmem>>, vector<1x8x8x128xbf16>,
    return
  }
  func.func @transform_0(%arg0: i32) -> (i32, i32, i32, i32) {
    %c0_i32 = arith.constant 0 : i32
    %c0_i32_0 = arith.constant 0 : i32
    %c0_i32_1 = arith.constant 0 : i32
    %c0_i32_2 = arith.constant 0 : i32
    return %arg0, %c0_i32, %c0_i32_0, %c0_i32_1 : i32, i32, i32, i32
  }
  func.func @transform_1(%arg0: i32) -> (i32, i32) {
    %c0_i32 = arith.constant 0 : i32
    %c0_i32_0 = arith.constant 0 : i32
    %c0_i32_1 = arith.constant 0 : i32
    return %c0_i32, %c0_i32_0 : i32, i32
  }
  func.func @transform_2(%arg0: i32) -> (i32, i32) {
    %c0_i32 = arith.constant 0 : i32
    %c0_i32_0 = arith.constant 0 : i32
    %c0_i32_1 = arith.constant 0 : i32
    return %c0_i32, %c0_i32_0 : i32, i32
  }
  func.func @transform_3(%arg0: i32) -> (i32, i32) {
    %c0_i32 = arith.constant 0 : i32
    %c0_i32_0 = arith.constant 0 : i32
    %c0_i32_1 = arith.constant 0 : i32
    return %c0_i32, %c0_i32_0 : i32, i32
  }
  func.func @transform_4(%arg0: i32) -> (i32, i32, i32, i32) {
    %c0_i32 = arith.constant 0 : i32
    %c0_i32_0 = arith.constant 0 : i32
    %c0_i32_1 = arith.constant 0 : i32
    %c0_i32_2 = arith.constant 0 : i32
    return %arg0, %c0_i32, %c0_i32_0, %c0_i32_1 : i32, i32, i32, i32
  }
}

module attributes {stable_mosaic.version = 11 : i64} {
  func.func @_matmul_bn_act_kernel(%arg0: i32, %arg1: i32, %arg2: memref<64x128xbf16, #tpu.memory_space<vmem>>, %arg3: memref<128x128xbf16, #tpu.memory_space<vmem>>, %arg4: memref<1x128xf32, #tpu.memory_space<vmem>>, %arg5: memref<1x128xf32, #tpu.memory_space<vmem>>, %arg6: memref<64x128xbf16, #tpu.memory_space<vmem>>) attributes {dimension_semantics = [#tpu.dimension_semantics<parallel>, #tpu.dimension_semantics<parallel>], iteration_bounds = array<i64: 2, 1>, scalar_prefetch = 0 : i64, scratch_operands = 0 : i64, tpu.core_type = #tpu.core_type<tc>, window_params = [{transform_indices = @transform_0, window_bounds = array<i64: 64, 128>}, {transform_indices = @transform_1, window_bounds = array<i64: 128, 128>}, {transform_indices = @transform_2, window_bounds = array<i64: 1, 128>}, {transform_indices = @transform_3, window_bounds = array<i64: 1, 128>}, {transform_indices = @transform_4, window_bounds = array<i64: 64, 128>}]} {
    %c0 = arith.constant 0 : index
    %c0_0 = arith.constant 0 : index
    %0 = vector.load %arg2[%c0, %c0_0] : memref<64x128xbf16, #tpu.memory_space<vmem>>, vector<64x128xbf16>
    %c0_1 = arith.constant 0 : index
    %c0_2 = arith.constant 0 : index
    %1 = vector.load %arg3[%c0_1, %c0_2] : memref<128x128xbf16, #tpu.memory_space<vmem>>, vector<128x128xbf16>
    %cst = arith.constant dense<0.000000e+00> : vector<64x128xf32>
    %2 = tpu.matmul %0, %1, %cst {dimension_numbers = #tpu.dot_dimension_numbers<[1], [0], [0], [1], [0, 0, 1, 1], [], []>} : vector<64x128xbf16>, vector<128x128xbf16>, vector<64x128xf32> -> vector<64x128xf32>
    %c0_3 = arith.constant 0 : index
    %c0_4 = arith.constant 0 : index
    %3 = vector.load %arg4[%c0_3, %c0_4] : memref<1x128xf32, #tpu.memory_space<vmem>>, vector<1x128xf32>
    %4 = vector.broadcast %3 : vector<1x128xf32> to vector<64x128xf32>
    %5 = arith.mulf %2, %4 : vector<64x128xf32>
    %c0_5 = arith.constant 0 : index
    %c0_6 = arith.constant 0 : index
    %6 = vector.load %arg5[%c0_5, %c0_6] : memref<1x128xf32, #tpu.memory_space<vmem>>, vector<1x128xf32>
    %7 = vector.broadcast %6 : vector<1x128xf32> to vector<64x128xf32>
    %8 = arith.addf %5, %7 : vector<64x128xf32>
    %9 = arith.truncf %8 : vector<64x128xf32> to vector<64x128xbf16>
    %c0_7 = arith.constant 0 : index
    %c0_8 = arith.constant 0 : index
    %10 = vector.load %arg6[%c0_7, %c0_8] : memref<64x128xbf16, #tpu.memory_space<vmem>>, vector<64x128xbf16>
    tpu.vector_store %arg6[%c0_7, %c0_8], %9 {strides = array<i32>} : memref<64x128xbf16, #tpu.memory_space<vmem>>, vector<64x128xbf16>,
    return
  }
  func.func @transform_0(%arg0: i32, %arg1: i32) -> (i32, i32) {
    %c0_i32 = arith.constant 0 : i32
    %c0_i32_0 = arith.constant 0 : i32
    return %arg0, %c0_i32 : i32, i32
  }
  func.func @transform_1(%arg0: i32, %arg1: i32) -> (i32, i32) {
    %c0_i32 = arith.constant 0 : i32
    %c0_i32_0 = arith.constant 0 : i32
    return %c0_i32, %arg1 : i32, i32
  }
  func.func @transform_2(%arg0: i32, %arg1: i32) -> (i32, i32) {
    %c0_i32 = arith.constant 0 : i32
    %c0_i32_0 = arith.constant 0 : i32
    return %c0_i32, %arg1 : i32, i32
  }
  func.func @transform_3(%arg0: i32, %arg1: i32) -> (i32, i32) {
    %c0_i32 = arith.constant 0 : i32
    %c0_i32_0 = arith.constant 0 : i32
    return %c0_i32, %arg1 : i32, i32
  }
  func.func @transform_4(%arg0: i32, %arg1: i32) -> (i32, i32) {
    %c0_i32 = arith.constant 0 : i32
    return %arg0, %arg1 : i32, i32
  }
}

module attributes {stable_mosaic.version = 11 : i64} {
  func.func @_cbam_residual_relu_kernel(%arg0: i32, %arg1: memref<1x8x8x128xbf16, #tpu.memory_space<vmem>>, %arg2: memref<1x8x8x128xbf16, #tpu.memory_space<vmem>>, %arg3: memref<128x8xbf16, #tpu.memory_space<vmem>>, %arg4: memref<8x128xbf16, #tpu.memory_space<vmem>>, %arg5: memref<98xf32, #tpu.memory_space<smem>>, %arg6: memref<1x8x8x128xbf16, #tpu.memory_space<vmem>>, %arg7: memref<14x14xf32, #tpu.memory_space<vmem>>, %arg8: memref<14x14xf32, #tpu.memory_space<vmem>>) attributes {dimension_semantics = [#tpu.dimension_semantics<parallel>], iteration_bounds = array<i64: 2>, scalar_prefetch = 0 : i64, scratch_operands = 2 : i64, tpu.core_type = #tpu.core_type<tc>, window_params = [{transform_indices = @transform_0, window_bounds = array<i64: 1, 8, 8, 128>}, {transform_indices = @transform_1, window_bounds = array<i64: 1, 8, 8, 128>}, {pipeline_mode = #tpu.pipeline_mode<synchronous>, transform_indices = @transform_2, window_bounds = array<i64: 128, 8>}, {pipeline_mode = #tpu.pipeline_mode<synchronous>, transform_indices = @transform_3, window_bounds = array<i64: 8, 128>}, {transform_indices = @transform_4, window_bounds = array<i64: 98>}, {transform_indices = @transform_5, window_bounds = array<i64: 1, 8, 8, 128>}]} {
    %c0 = arith.constant 0 : index
    %c0_0 = arith.constant 0 : index
    %c0_1 = arith.constant 0 : index
    %c0_2 = arith.constant 0 : index
    %0 = vector.load %arg1[%c0, %c0_0, %c0_1, %c0_2] : memref<1x8x8x128xbf16, #tpu.memory_space<vmem>>, vector<1x8x8x128xbf16>
    %1 = vector.shape_cast %0 : vector<1x8x8x128xbf16> to vector<8x8x128xbf16>
    %2 = arith.extf %1 : vector<8x8x128xbf16> to vector<8x8x128xf32>
    %cst = arith.constant dense<0.000000e+00> : vector<128xf32>
    %3 = vector.multi_reduction <add>, %2, %cst [0, 1] : vector<8x8x128xf32> to vector<128xf32>
    %cst_3 = arith.constant 1.562500e-02 : f32
    %4 = vector.broadcast %cst_3 : f32 to vector<128xf32>
    %5 = arith.mulf %3, %4 : vector<128xf32>
    %6 = vector.shape_cast %5 : vector<128xf32> to vector<1x128xf32>
    %7 = arith.extf %1 : vector<8x8x128xbf16> to vector<8x8x128xf32>
    %cst_4 = arith.constant dense<0xFF800000> : vector<128xf32>
    %8 = vector.multi_reduction <maximumf>, %7, %cst_4 [0, 1] : vector<8x8x128xf32> to vector<128xf32>
    %9 = vector.shape_cast %8 : vector<128xf32> to vector<1x128xf32>
    %10 = tpu.concatenate %6, %9 in 0 : vector<1x128xf32>, vector<1x128xf32> -> vector<2x128xf32>
    %11 = arith.truncf %10 : vector<2x128xf32> to vector<2x128xbf16>
    %c0_5 = arith.constant 0 : index
    %c0_6 = arith.constant 0 : index
    %12 = vector.load %arg3[%c0_5, %c0_6] : memref<128x8xbf16, #tpu.memory_space<vmem>>, vector<128x8xbf16>
    %cst_7 = arith.constant dense<0.000000e+00> : vector<2x8xf32>
    %13 = tpu.matmul %11, %12, %cst_7 {dimension_numbers = #tpu.dot_dimension_numbers<[1], [0], [0], [1], [0, 0, 1, 1], [], []>} : vector<2x128xbf16>, vector<128x8xbf16>, vector<2x8xf32> -> vector<2x8xf32>
    %cst_8 = arith.constant 0.000000e+00 : f32
    %14 = vector.broadcast %cst_8 : f32 to vector<2x8xf32>
    %15 = arith.maximumf %13, %14 : vector<2x8xf32>
    %16 = arith.truncf %15 : vector<2x8xf32> to vector<2x8xbf16>
    %c0_9 = arith.constant 0 : index
    %c0_10 = arith.constant 0 : index
    %17 = vector.load %arg4[%c0_9, %c0_10] : memref<8x128xbf16, #tpu.memory_space<vmem>>, vector<8x128xbf16>
    %cst_11 = arith.constant dense<0.000000e+00> : vector<2x128xf32>
    %18 = tpu.matmul %16, %17, %cst_11 {dimension_numbers = #tpu.dot_dimension_numbers<[1], [0], [0], [1], [0, 0, 1, 1], [], []>} : vector<2x8xbf16>, vector<8x128xbf16>, vector<2x128xf32> -> vector<2x128xf32>
    %19 = vector.extract_strided_slice %18 {offsets = [0, 0], sizes = [1, 128], strides = [1, 1]} : vector<2x128xf32> to vector<1x128xf32>
    %20 = vector.extract_strided_slice %18 {offsets = [1, 0], sizes = [1, 128], strides = [1, 1]} : vector<2x128xf32> to vector<1x128xf32>
    %21 = arith.addf %19, %20 : vector<1x128xf32>
    %cst_12 = arith.constant 0.000000e+00 : f32
    %22 = vector.broadcast %cst_12 : f32 to vector<1x128xf32>
    %23 = arith.subf %22, %21 : vector<1x128xf32>
    %24 = math.exp %23 : vector<1x128xf32>
    %cst_13 = arith.constant 1.000000e+00 : f32
    %25 = vector.broadcast %cst_13 : f32 to vector<1x128xf32>
    %26 = arith.addf %25, %24 : vector<1x128xf32>
    %27 = tpu.reciprocal %26 {approx = true} : vector<1x128xf32> -> vector<1x128xf32>
    %28 = vector.shape_cast %27 : vector<1x128xf32> to vector<1x1x128xf32>
    %29 = arith.truncf %28 : vector<1x1x128xf32> to vector<1x1x128xbf16>
    %30 = vector.broadcast %29 : vector<1x1x128xbf16> to vector<8x8x128xbf16>
    %31 = arith.mulf %1, %30 : vector<8x8x128xbf16>
    %32 = arith.extf %31 : vector<8x8x128xbf16> to vector<8x8x128xf32>
    %cst_14 = arith.constant dense<0.000000e+00> : vector<8x8xf32>
    %33 = vector.multi_reduction <add>, %32, %cst_14 [2] : vector<8x8x128xf32> to vector<8x8xf32>
    %cst_15 = arith.constant 7.812500e-03 : f32
    %34 = vector.broadcast %cst_15 : f32 to vector<8x8xf32>
    %35 = arith.mulf %33, %34 : vector<8x8xf32>
    %36 = arith.extf %31 : vector<8x8x128xbf16> to vector<8x8x128xf32>
    %cst_16 = arith.constant dense<0xFF800000> : vector<8x8xf32>
    %37 = vector.multi_reduction <maximumf>, %36, %cst_16 [2] : vector<8x8x128xf32> to vector<8x8xf32>
    %cst_17 = arith.constant 0.000000e+00 : f32
    %38 = vector.broadcast %cst_17 : f32 to vector<14x14xf32>
    %c0_18 = arith.constant 0 : index
    %c0_19 = arith.constant 0 : index
    %39 = vector.load %arg7[%c0_18, %c0_19] : memref<14x14xf32, #tpu.memory_space<vmem>>, vector<14x14xf32>
    tpu.vector_store %arg7[%c0_18, %c0_19], %38 {strides = array<i32>} : memref<14x14xf32, #tpu.memory_space<vmem>>, vector<14x14xf32>,
    %cst_20 = arith.constant 0.000000e+00 : f32
    %40 = vector.broadcast %cst_20 : f32 to vector<14x14xf32>
    %c0_21 = arith.constant 0 : index
    %c0_22 = arith.constant 0 : index
    %41 = vector.load %arg8[%c0_21, %c0_22] : memref<14x14xf32, #tpu.memory_space<vmem>>, vector<14x14xf32>
    tpu.vector_store %arg8[%c0_21, %c0_22], %40 {strides = array<i32>} : memref<14x14xf32, #tpu.memory_space<vmem>>, vector<14x14xf32>,
    %c3 = arith.constant 3 : index
    %c3_23 = arith.constant 3 : index
    %42 = vector.load %arg7[%c3, %c3_23] : memref<14x14xf32, #tpu.memory_space<vmem>>, vector<8x8xf32>
    tpu.vector_store %arg7[%c3, %c3_23], %35 {strides = array<i32>} : memref<14x14xf32, #tpu.memory_space<vmem>>, vector<8x8xf32>,
    %c3_24 = arith.constant 3 : index
    %c3_25 = arith.constant 3 : index
    %43 = vector.load %arg8[%c3_24, %c3_25] : memref<14x14xf32, #tpu.memory_space<vmem>>, vector<8x8xf32>
    tpu.vector_store %arg8[%c3_24, %c3_25], %37 {strides = array<i32>} : memref<14x14xf32, #tpu.memory_space<vmem>>, vector<8x8xf32>,
    %cst_26 = arith.constant 0.000000e+00 : f32
    %44 = vector.broadcast %cst_26 : f32 to vector<8x8xf32>
    %c0_27 = arith.constant 0 : index
    %c0_28 = arith.constant 0 : index
    %45 = vector.load %arg7[%c0_27, %c0_28] : memref<14x14xf32, #tpu.memory_space<vmem>>, vector<8x8xf32>
    %c0_29 = arith.constant 0 : index
    %46 = memref.load %arg5[%c0_29] : memref<98xf32, #tpu.memory_space<smem>>
    %47 = vector.broadcast %46 : f32 to vector<8x8xf32>
    %48 = arith.mulf %45, %47 : vector<8x8xf32>
    %49 = arith.addf %44, %48 : vector<8x8xf32>
    %c0_30 = arith.constant 0 : index
    %c0_31 = arith.constant 0 : index
    %50 = vector.load %arg8[%c0_30, %c0_31] : memref<14x14xf32, #tpu.memory_space<vmem>>, vector<8x8xf32>
    %c49 = arith.constant 49 : index
    %51 = memref.load %arg5[%c49] : memref<98xf32, #tpu.memory_space<smem>>
    %52 = vector.broadcast %51 : f32 to vector<8x8xf32>
    %53 = arith.mulf %50, %52 : vector<8x8xf32>
    %54 = arith.addf %49, %53 : vector<8x8xf32>
    %c0_32 = arith.constant 0 : index
    %c1 = arith.constant 1 : index
    %55 = vector.load %arg7[%c0_32, %c1] : memref<14x14xf32, #tpu.memory_space<vmem>>, vector<8x8xf32>
    %c1_33 = arith.constant 1 : index
    %56 = memref.load %arg5[%c1_33] : memref<98xf32, #tpu.memory_space<smem>>
    %57 = vector.broadcast %56 : f32 to vector<8x8xf32>
    %58 = arith.mulf %55, %57 : vector<8x8xf32>
    %59 = arith.addf %54, %58 : vector<8x8xf32>
    %c0_34 = arith.constant 0 : index
    %c1_35 = arith.constant 1 : index
    %60 = vector.load %arg8[%c0_34, %c1_35] : memref<14x14xf32, #tpu.memory_space<vmem>>, vector<8x8xf32>
    %c50 = arith.constant 50 : index
    %61 = memref.load %arg5[%c50] : memref<98xf32, #tpu.memory_space<smem>>
    %62 = vector.broadcast %61 : f32 to vector<8x8xf32>
    %63 = arith.mulf %60, %62 : vector<8x8xf32>
    %64 = arith.addf %59, %63 : vector<8x8xf32>
    %c0_36 = arith.constant 0 : index
    %c2 = arith.constant 2 : index
    %65 = vector.load %arg7[%c0_36, %c2] : memref<14x14xf32, #tpu.memory_space<vmem>>, vector<8x8xf32>
    %c2_37 = arith.constant 2 : index
    %66 = memref.load %arg5[%c2_37] : memref<98xf32, #tpu.memory_space<smem>>
    %67 = vector.broadcast %66 : f32 to vector<8x8xf32>
    %68 = arith.mulf %65, %67 : vector<8x8xf32>
    %69 = arith.addf %64, %68 : vector<8x8xf32>
    %c0_38 = arith.constant 0 : index
    %c2_39 = arith.constant 2 : index
    %70 = vector.load %arg8[%c0_38, %c2_39] : memref<14x14xf32, #tpu.memory_space<vmem>>, vector<8x8xf32>
    %c51 = arith.constant 51 : index
    %71 = memref.load %arg5[%c51] : memref<98xf32, #tpu.memory_space<smem>>
    %72 = vector.broadcast %71 : f32 to vector<8x8xf32>
    %73 = arith.mulf %70, %72 : vector<8x8xf32>
    %74 = arith.addf %69, %73 : vector<8x8xf32>
    %c0_40 = arith.constant 0 : index
    %c3_41 = arith.constant 3 : index
    %75 = vector.load %arg7[%c0_40, %c3_41] : memref<14x14xf32, #tpu.memory_space<vmem>>, vector<8x8xf32>
    %c3_42 = arith.constant 3 : index
    %76 = memref.load %arg5[%c3_42] : memref<98xf32, #tpu.memory_space<smem>>
    %77 = vector.broadcast %76 : f32 to vector<8x8xf32>
    %78 = arith.mulf %75, %77 : vector<8x8xf32>
    %79 = arith.addf %74, %78 : vector<8x8xf32>
    %c0_43 = arith.constant 0 : index
    %c3_44 = arith.constant 3 : index
    %80 = vector.load %arg8[%c0_43, %c3_44] : memref<14x14xf32, #tpu.memory_space<vmem>>, vector<8x8xf32>
    %c52 = arith.constant 52 : index
    %81 = memref.load %arg5[%c52] : memref<98xf32, #tpu.memory_space<smem>>
    %82 = vector.broadcast %81 : f32 to vector<8x8xf32>
    %83 = arith.mulf %80, %82 : vector<8x8xf32>
    %84 = arith.addf %79, %83 : vector<8x8xf32>
    %c0_45 = arith.constant 0 : index
    %c4 = arith.constant 4 : index
    %85 = vector.load %arg7[%c0_45, %c4] : memref<14x14xf32, #tpu.memory_space<vmem>>, vector<8x8xf32>
    %c4_46 = arith.constant 4 : index
    %86 = memref.load %arg5[%c4_46] : memref<98xf32, #tpu.memory_space<smem>>
    %87 = vector.broadcast %86 : f32 to vector<8x8xf32>
    %88 = arith.mulf %85, %87 : vector<8x8xf32>
    %89 = arith.addf %84, %88 : vector<8x8xf32>
    %c0_47 = arith.constant 0 : index
    %c4_48 = arith.constant 4 : index
    %90 = vector.load %arg8[%c0_47, %c4_48] : memref<14x14xf32, #tpu.memory_space<vmem>>, vector<8x8xf32>
    %c53 = arith.constant 53 : index
    %91 = memref.load %arg5[%c53] : memref<98xf32, #tpu.memory_space<smem>>
    %92 = vector.broadcast %91 : f32 to vector<8x8xf32>
    %93 = arith.mulf %90, %92 : vector<8x8xf32>
    %94 = arith.addf %89, %93 : vector<8x8xf32>
    %c0_49 = arith.constant 0 : index
    %c5 = arith.constant 5 : index
    %95 = vector.load %arg7[%c0_49, %c5] : memref<14x14xf32, #tpu.memory_space<vmem>>, vector<8x8xf32>
    %c5_50 = arith.constant 5 : index
    %96 = memref.load %arg5[%c5_50] : memref<98xf32, #tpu.memory_space<smem>>
    %97 = vector.broadcast %96 : f32 to vector<8x8xf32>
    %98 = arith.mulf %95, %97 : vector<8x8xf32>
    %99 = arith.addf %94, %98 : vector<8x8xf32>
    %c0_51 = arith.constant 0 : index
    %c5_52 = arith.constant 5 : index
    %100 = vector.load %arg8[%c0_51, %c5_52] : memref<14x14xf32, #tpu.memory_space<vmem>>, vector<8x8xf32>
    %c54 = arith.constant 54 : index
    %101 = memref.load %arg5[%c54] : memref<98xf32, #tpu.memory_space<smem>>
    %102 = vector.broadcast %101 : f32 to vector<8x8xf32>
    %103 = arith.mulf %100, %102 : vector<8x8xf32>
    %104 = arith.addf %99, %103 : vector<8x8xf32>
    %c0_53 = arith.constant 0 : index
    %c6 = arith.constant 6 : index
    %105 = vector.load %arg7[%c0_53, %c6] : memref<14x14xf32, #tpu.memory_space<vmem>>, vector<8x8xf32>
    %c6_54 = arith.constant 6 : index
    %106 = memref.load %arg5[%c6_54] : memref<98xf32, #tpu.memory_space<smem>>
    %107 = vector.broadcast %106 : f32 to vector<8x8xf32>
    %108 = arith.mulf %105, %107 : vector<8x8xf32>
    %109 = arith.addf %104, %108 : vector<8x8xf32>
    %c0_55 = arith.constant 0 : index
    %c6_56 = arith.constant 6 : index
    %110 = vector.load %arg8[%c0_55, %c6_56] : memref<14x14xf32, #tpu.memory_space<vmem>>, vector<8x8xf32>
    %c55 = arith.constant 55 : index
    %111 = memref.load %arg5[%c55] : memref<98xf32, #tpu.memory_space<smem>>
    %112 = vector.broadcast %111 : f32 to vector<8x8xf32>
    %113 = arith.mulf %110, %112 : vector<8x8xf32>
    %114 = arith.addf %109, %113 : vector<8x8xf32>
    %c1_57 = arith.constant 1 : index
    %c0_58 = arith.constant 0 : index
    %115 = vector.load %arg7[%c1_57, %c0_58] : memref<14x14xf32, #tpu.memory_space<vmem>>, vector<8x8xf32>
    %c7 = arith.constant 7 : index
    %116 = memref.load %arg5[%c7] : memref<98xf32, #tpu.memory_space<smem>>
    %117 = vector.broadcast %116 : f32 to vector<8x8xf32>
    %118 = arith.mulf %115, %117 : vector<8x8xf32>
    %119 = arith.addf %114, %118 : vector<8x8xf32>
    %c1_59 = arith.constant 1 : index
    %c0_60 = arith.constant 0 : index
    %120 = vector.load %arg8[%c1_59, %c0_60] : memref<14x14xf32, #tpu.memory_space<vmem>>, vector<8x8xf32>
    %c56 = arith.constant 56 : index
    %121 = memref.load %arg5[%c56] : memref<98xf32, #tpu.memory_space<smem>>
    %122 = vector.broadcast %121 : f32 to vector<8x8xf32>
    %123 = arith.mulf %120, %122 : vector<8x8xf32>
    %124 = arith.addf %119, %123 : vector<8x8xf32>
    %c1_61 = arith.constant 1 : index
    %c1_62 = arith.constant 1 : index
    %125 = vector.load %arg7[%c1_61, %c1_62] : memref<14x14xf32, #tpu.memory_space<vmem>>, vector<8x8xf32>
    %c8 = arith.constant 8 : index
    %126 = memref.load %arg5[%c8] : memref<98xf32, #tpu.memory_space<smem>>
    %127 = vector.broadcast %126 : f32 to vector<8x8xf32>
    %128 = arith.mulf %125, %127 : vector<8x8xf32>
    %129 = arith.addf %124, %128 : vector<8x8xf32>
    %c1_63 = arith.constant 1 : index
    %c1_64 = arith.constant 1 : index
    %130 = vector.load %arg8[%c1_63, %c1_64] : memref<14x14xf32, #tpu.memory_space<vmem>>, vector<8x8xf32>
    %c57 = arith.constant 57 : index
    %131 = memref.load %arg5[%c57] : memref<98xf32, #tpu.memory_space<smem>>
    %132 = vector.broadcast %131 : f32 to vector<8x8xf32>
    %133 = arith.mulf %130, %132 : vector<8x8xf32>
    %134 = arith.addf %129, %133 : vector<8x8xf32>
    %c1_65 = arith.constant 1 : index
    %c2_66 = arith.constant 2 : index
    %135 = vector.load %arg7[%c1_65, %c2_66] : memref<14x14xf32, #tpu.memory_space<vmem>>, vector<8x8xf32>
    %c9 = arith.constant 9 : index
    %136 = memref.load %arg5[%c9] : memref<98xf32, #tpu.memory_space<smem>>
    %137 = vector.broadcast %136 : f32 to vector<8x8xf32>
    %138 = arith.mulf %135, %137 : vector<8x8xf32>
    %139 = arith.addf %134, %138 : vector<8x8xf32>
    %c1_67 = arith.constant 1 : index
    %c2_68 = arith.constant 2 : index
    %140 = vector.load %arg8[%c1_67, %c2_68] : memref<14x14xf32, #tpu.memory_space<vmem>>, vector<8x8xf32>
    %c58 = arith.constant 58 : index
    %141 = memref.load %arg5[%c58] : memref<98xf32, #tpu.memory_space<smem>>
    %142 = vector.broadcast %141 : f32 to vector<8x8xf32>
    %143 = arith.mulf %140, %142 : vector<8x8xf32>
    %144 = arith.addf %139, %143 : vector<8x8xf32>
    %c1_69 = arith.constant 1 : index
    %c3_70 = arith.constant 3 : index
    %145 = vector.load %arg7[%c1_69, %c3_70] : memref<14x14xf32, #tpu.memory_space<vmem>>, vector<8x8xf32>
    %c10 = arith.constant 10 : index
    %146 = memref.load %arg5[%c10] : memref<98xf32, #tpu.memory_space<smem>>
    %147 = vector.broadcast %146 : f32 to vector<8x8xf32>
    %148 = arith.mulf %145, %147 : vector<8x8xf32>
    %149 = arith.addf %144, %148 : vector<8x8xf32>
    %c1_71 = arith.constant 1 : index
    %c3_72 = arith.constant 3 : index
    %150 = vector.load %arg8[%c1_71, %c3_72] : memref<14x14xf32, #tpu.memory_space<vmem>>, vector<8x8xf32>
    %c59 = arith.constant 59 : index
    %151 = memref.load %arg5[%c59] : memref<98xf32, #tpu.memory_space<smem>>
    %152 = vector.broadcast %151 : f32 to vector<8x8xf32>
    %153 = arith.mulf %150, %152 : vector<8x8xf32>
    %154 = arith.addf %149, %153 : vector<8x8xf32>
    %c1_73 = arith.constant 1 : index
    %c4_74 = arith.constant 4 : index
    %155 = vector.load %arg7[%c1_73, %c4_74] : memref<14x14xf32, #tpu.memory_space<vmem>>, vector<8x8xf32>
    %c11 = arith.constant 11 : index
    %156 = memref.load %arg5[%c11] : memref<98xf32, #tpu.memory_space<smem>>
    %157 = vector.broadcast %156 : f32 to vector<8x8xf32>
    %158 = arith.mulf %155, %157 : vector<8x8xf32>
    %159 = arith.addf %154, %158 : vector<8x8xf32>
    %c1_75 = arith.constant 1 : index
    %c4_76 = arith.constant 4 : index
    %160 = vector.load %arg8[%c1_75, %c4_76] : memref<14x14xf32, #tpu.memory_space<vmem>>, vector<8x8xf32>
    %c60 = arith.constant 60 : index
    %161 = memref.load %arg5[%c60] : memref<98xf32, #tpu.memory_space<smem>>
    %162 = vector.broadcast %161 : f32 to vector<8x8xf32>
    %163 = arith.mulf %160, %162 : vector<8x8xf32>
    %164 = arith.addf %159, %163 : vector<8x8xf32>
    %c1_77 = arith.constant 1 : index
    %c5_78 = arith.constant 5 : index
    %165 = vector.load %arg7[%c1_77, %c5_78] : memref<14x14xf32, #tpu.memory_space<vmem>>, vector<8x8xf32>
    %c12 = arith.constant 12 : index
    %166 = memref.load %arg5[%c12] : memref<98xf32, #tpu.memory_space<smem>>
    %167 = vector.broadcast %166 : f32 to vector<8x8xf32>
    %168 = arith.mulf %165, %167 : vector<8x8xf32>
    %169 = arith.addf %164, %168 : vector<8x8xf32>
    %c1_79 = arith.constant 1 : index
    %c5_80 = arith.constant 5 : index
    %170 = vector.load %arg8[%c1_79, %c5_80] : memref<14x14xf32, #tpu.memory_space<vmem>>, vector<8x8xf32>
    %c61 = arith.constant 61 : index
    %171 = memref.load %arg5[%c61] : memref<98xf32, #tpu.memory_space<smem>>
    %172 = vector.broadcast %171 : f32 to vector<8x8xf32>
    %173 = arith.mulf %170, %172 : vector<8x8xf32>
    %174 = arith.addf %169, %173 : vector<8x8xf32>
    %c1_81 = arith.constant 1 : index
    %c6_82 = arith.constant 6 : index
    %175 = vector.load %arg7[%c1_81, %c6_82] : memref<14x14xf32, #tpu.memory_space<vmem>>, vector<8x8xf32>
    %c13 = arith.constant 13 : index
    %176 = memref.load %arg5[%c13] : memref<98xf32, #tpu.memory_space<smem>>
    %177 = vector.broadcast %176 : f32 to vector<8x8xf32>
    %178 = arith.mulf %175, %177 : vector<8x8xf32>
    %179 = arith.addf %174, %178 : vector<8x8xf32>
    %c1_83 = arith.constant 1 : index
    %c6_84 = arith.constant 6 : index
    %180 = vector.load %arg8[%c1_83, %c6_84] : memref<14x14xf32, #tpu.memory_space<vmem>>, vector<8x8xf32>
    %c62 = arith.constant 62 : index
    %181 = memref.load %arg5[%c62] : memref<98xf32, #tpu.memory_space<smem>>
    %182 = vector.broadcast %181 : f32 to vector<8x8xf32>
    %183 = arith.mulf %180, %182 : vector<8x8xf32>
    %184 = arith.addf %179, %183 : vector<8x8xf32>
    %c2_85 = arith.constant 2 : index
    %c0_86 = arith.constant 0 : index
    %185 = vector.load %arg7[%c2_85, %c0_86] : memref<14x14xf32, #tpu.memory_space<vmem>>, vector<8x8xf32>
    %c14 = arith.constant 14 : index
    %186 = memref.load %arg5[%c14] : memref<98xf32, #tpu.memory_space<smem>>
    %187 = vector.broadcast %186 : f32 to vector<8x8xf32>
    %188 = arith.mulf %185, %187 : vector<8x8xf32>
    %189 = arith.addf %184, %188 : vector<8x8xf32>
    %c2_87 = arith.constant 2 : index
    %c0_88 = arith.constant 0 : index
    %190 = vector.load %arg8[%c2_87, %c0_88] : memref<14x14xf32, #tpu.memory_space<vmem>>, vector<8x8xf32>
    %c63 = arith.constant 63 : index
    %191 = memref.load %arg5[%c63] : memref<98xf32, #tpu.memory_space<smem>>
    %192 = vector.broadcast %191 : f32 to vector<8x8xf32>
    %193 = arith.mulf %190, %192 : vector<8x8xf32>
    %194 = arith.addf %189, %193 : vector<8x8xf32>
    %c2_89 = arith.constant 2 : index
    %c1_90 = arith.constant 1 : index
    %195 = vector.load %arg7[%c2_89, %c1_90] : memref<14x14xf32, #tpu.memory_space<vmem>>, vector<8x8xf32>
    %c15 = arith.constant 15 : index
    %196 = memref.load %arg5[%c15] : memref<98xf32, #tpu.memory_space<smem>>
    %197 = vector.broadcast %196 : f32 to vector<8x8xf32>
    %198 = arith.mulf %195, %197 : vector<8x8xf32>
    %199 = arith.addf %194, %198 : vector<8x8xf32>
    %c2_91 = arith.constant 2 : index
    %c1_92 = arith.constant 1 : index
    %200 = vector.load %arg8[%c2_91, %c1_92] : memref<14x14xf32, #tpu.memory_space<vmem>>, vector<8x8xf32>
    %c64 = arith.constant 64 : index
    %201 = memref.load %arg5[%c64] : memref<98xf32, #tpu.memory_space<smem>>
    %202 = vector.broadcast %201 : f32 to vector<8x8xf32>
    %203 = arith.mulf %200, %202 : vector<8x8xf32>
    %204 = arith.addf %199, %203 : vector<8x8xf32>
    %c2_93 = arith.constant 2 : index
    %c2_94 = arith.constant 2 : index
    %205 = vector.load %arg7[%c2_93, %c2_94] : memref<14x14xf32, #tpu.memory_space<vmem>>, vector<8x8xf32>
    %c16 = arith.constant 16 : index
    %206 = memref.load %arg5[%c16] : memref<98xf32, #tpu.memory_space<smem>>
    %207 = vector.broadcast %206 : f32 to vector<8x8xf32>
    %208 = arith.mulf %205, %207 : vector<8x8xf32>
    %209 = arith.addf %204, %208 : vector<8x8xf32>
    %c2_95 = arith.constant 2 : index
    %c2_96 = arith.constant 2 : index
    %210 = vector.load %arg8[%c2_95, %c2_96] : memref<14x14xf32, #tpu.memory_space<vmem>>, vector<8x8xf32>
    %c65 = arith.constant 65 : index
    %211 = memref.load %arg5[%c65] : memref<98xf32, #tpu.memory_space<smem>>
    %212 = vector.broadcast %211 : f32 to vector<8x8xf32>
    %213 = arith.mulf %210, %212 : vector<8x8xf32>
    %214 = arith.addf %209, %213 : vector<8x8xf32>
    %c2_97 = arith.constant 2 : index
    %c3_98 = arith.constant 3 : index
    %215 = vector.load %arg7[%c2_97, %c3_98] : memref<14x14xf32, #tpu.memory_space<vmem>>, vector<8x8xf32>
    %c17 = arith.constant 17 : index
    %216 = memref.load %arg5[%c17] : memref<98xf32, #tpu.memory_space<smem>>
    %217 = vector.broadcast %216 : f32 to vector<8x8xf32>
    %218 = arith.mulf %215, %217 : vector<8x8xf32>
    %219 = arith.addf %214, %218 : vector<8x8xf32>
    %c2_99 = arith.constant 2 : index
    %c3_100 = arith.constant 3 : index
    %220 = vector.load %arg8[%c2_99, %c3_100] : memref<14x14xf32, #tpu.memory_space<vmem>>, vector<8x8xf32>
    %c66 = arith.constant 66 : index
    %221 = memref.load %arg5[%c66] : memref<98xf32, #tpu.memory_space<smem>>
    %222 = vector.broadcast %221 : f32 to vector<8x8xf32>
    %223 = arith.mulf %220, %222 : vector<8x8xf32>
    %224 = arith.addf %219, %223 : vector<8x8xf32>
    %c2_101 = arith.constant 2 : index
    %c4_102 = arith.constant 4 : index
    %225 = vector.load %arg7[%c2_101, %c4_102] : memref<14x14xf32, #tpu.memory_space<vmem>>, vector<8x8xf32>
    %c18 = arith.constant 18 : index
    %226 = memref.load %arg5[%c18] : memref<98xf32, #tpu.memory_space<smem>>
    %227 = vector.broadcast %226 : f32 to vector<8x8xf32>
    %228 = arith.mulf %225, %227 : vector<8x8xf32>
    %229 = arith.addf %224, %228 : vector<8x8xf32>
    %c2_103 = arith.constant 2 : index
    %c4_104 = arith.constant 4 : index
    %230 = vector.load %arg8[%c2_103, %c4_104] : memref<14x14xf32, #tpu.memory_space<vmem>>, vector<8x8xf32>
    %c67 = arith.constant 67 : index
    %231 = memref.load %arg5[%c67] : memref<98xf32, #tpu.memory_space<smem>>
    %232 = vector.broadcast %231 : f32 to vector<8x8xf32>
    %233 = arith.mulf %230, %232 : vector<8x8xf32>
    %234 = arith.addf %229, %233 : vector<8x8xf32>
    %c2_105 = arith.constant 2 : index
    %c5_106 = arith.constant 5 : index
    %235 = vector.load %arg7[%c2_105, %c5_106] : memref<14x14xf32, #tpu.memory_space<vmem>>, vector<8x8xf32>
    %c19 = arith.constant 19 : index
    %236 = memref.load %arg5[%c19] : memref<98xf32, #tpu.memory_space<smem>>
    %237 = vector.broadcast %236 : f32 to vector<8x8xf32>
    %238 = arith.mulf %235, %237 : vector<8x8xf32>
    %239 = arith.addf %234, %238 : vector<8x8xf32>
    %c2_107 = arith.constant 2 : index
    %c5_108 = arith.constant 5 : index
    %240 = vector.load %arg8[%c2_107, %c5_108] : memref<14x14xf32, #tpu.memory_space<vmem>>, vector<8x8xf32>
    %c68 = arith.constant 68 : index
    %241 = memref.load %arg5[%c68] : memref<98xf32, #tpu.memory_space<smem>>
    %242 = vector.broadcast %241 : f32 to vector<8x8xf32>
    %243 = arith.mulf %240, %242 : vector<8x8xf32>
    %244 = arith.addf %239, %243 : vector<8x8xf32>
    %c2_109 = arith.constant 2 : index
    %c6_110 = arith.constant 6 : index
    %245 = vector.load %arg7[%c2_109, %c6_110] : memref<14x14xf32, #tpu.memory_space<vmem>>, vector<8x8xf32>
    %c20 = arith.constant 20 : index
    %246 = memref.load %arg5[%c20] : memref<98xf32, #tpu.memory_space<smem>>
    %247 = vector.broadcast %246 : f32 to vector<8x8xf32>
    %248 = arith.mulf %245, %247 : vector<8x8xf32>
    %249 = arith.addf %244, %248 : vector<8x8xf32>
    %c2_111 = arith.constant 2 : index
    %c6_112 = arith.constant 6 : index
    %250 = vector.load %arg8[%c2_111, %c6_112] : memref<14x14xf32, #tpu.memory_space<vmem>>, vector<8x8xf32>
    %c69 = arith.constant 69 : index
    %251 = memref.load %arg5[%c69] : memref<98xf32, #tpu.memory_space<smem>>
    %252 = vector.broadcast %251 : f32 to vector<8x8xf32>
    %253 = arith.mulf %250, %252 : vector<8x8xf32>
    %254 = arith.addf %249, %253 : vector<8x8xf32>
    %c3_113 = arith.constant 3 : index
    %c0_114 = arith.constant 0 : index
    %255 = vector.load %arg7[%c3_113, %c0_114] : memref<14x14xf32, #tpu.memory_space<vmem>>, vector<8x8xf32>
    %c21 = arith.constant 21 : index
    %256 = memref.load %arg5[%c21] : memref<98xf32, #tpu.memory_space<smem>>
    %257 = vector.broadcast %256 : f32 to vector<8x8xf32>
    %258 = arith.mulf %255, %257 : vector<8x8xf32>
    %259 = arith.addf %254, %258 : vector<8x8xf32>
    %c3_115 = arith.constant 3 : index
    %c0_116 = arith.constant 0 : index
    %260 = vector.load %arg8[%c3_115, %c0_116] : memref<14x14xf32, #tpu.memory_space<vmem>>, vector<8x8xf32>
    %c70 = arith.constant 70 : index
    %261 = memref.load %arg5[%c70] : memref<98xf32, #tpu.memory_space<smem>>
    %262 = vector.broadcast %261 : f32 to vector<8x8xf32>
    %263 = arith.mulf %260, %262 : vector<8x8xf32>
    %264 = arith.addf %259, %263 : vector<8x8xf32>
    %c3_117 = arith.constant 3 : index
    %c1_118 = arith.constant 1 : index
    %265 = vector.load %arg7[%c3_117, %c1_118] : memref<14x14xf32, #tpu.memory_space<vmem>>, vector<8x8xf32>
    %c22 = arith.constant 22 : index
    %266 = memref.load %arg5[%c22] : memref<98xf32, #tpu.memory_space<smem>>
    %267 = vector.broadcast %266 : f32 to vector<8x8xf32>
    %268 = arith.mulf %265, %267 : vector<8x8xf32>
    %269 = arith.addf %264, %268 : vector<8x8xf32>
    %c3_119 = arith.constant 3 : index
    %c1_120 = arith.constant 1 : index
    %270 = vector.load %arg8[%c3_119, %c1_120] : memref<14x14xf32, #tpu.memory_space<vmem>>, vector<8x8xf32>
    %c71 = arith.constant 71 : index
    %271 = memref.load %arg5[%c71] : memref<98xf32, #tpu.memory_space<smem>>
    %272 = vector.broadcast %271 : f32 to vector<8x8xf32>
    %273 = arith.mulf %270, %272 : vector<8x8xf32>
    %274 = arith.addf %269, %273 : vector<8x8xf32>
    %c3_121 = arith.constant 3 : index
    %c2_122 = arith.constant 2 : index
    %275 = vector.load %arg7[%c3_121, %c2_122] : memref<14x14xf32, #tpu.memory_space<vmem>>, vector<8x8xf32>
    %c23 = arith.constant 23 : index
    %276 = memref.load %arg5[%c23] : memref<98xf32, #tpu.memory_space<smem>>
    %277 = vector.broadcast %276 : f32 to vector<8x8xf32>
    %278 = arith.mulf %275, %277 : vector<8x8xf32>
    %279 = arith.addf %274, %278 : vector<8x8xf32>
    %c3_123 = arith.constant 3 : index
    %c2_124 = arith.constant 2 : index
    %280 = vector.load %arg8[%c3_123, %c2_124] : memref<14x14xf32, #tpu.memory_space<vmem>>, vector<8x8xf32>
    %c72 = arith.constant 72 : index
    %281 = memref.load %arg5[%c72] : memref<98xf32, #tpu.memory_space<smem>>
    %282 = vector.broadcast %281 : f32 to vector<8x8xf32>
    %283 = arith.mulf %280, %282 : vector<8x8xf32>
    %284 = arith.addf %279, %283 : vector<8x8xf32>
    %c3_125 = arith.constant 3 : index
    %c3_126 = arith.constant 3 : index
    %285 = vector.load %arg7[%c3_125, %c3_126] : memref<14x14xf32, #tpu.memory_space<vmem>>, vector<8x8xf32>
    %c24 = arith.constant 24 : index
    %286 = memref.load %arg5[%c24] : memref<98xf32, #tpu.memory_space<smem>>
    %287 = vector.broadcast %286 : f32 to vector<8x8xf32>
    %288 = arith.mulf %285, %287 : vector<8x8xf32>
    %289 = arith.addf %284, %288 : vector<8x8xf32>
    %c3_127 = arith.constant 3 : index
    %c3_128 = arith.constant 3 : index
    %290 = vector.load %arg8[%c3_127, %c3_128] : memref<14x14xf32, #tpu.memory_space<vmem>>, vector<8x8xf32>
    %c73 = arith.constant 73 : index
    %291 = memref.load %arg5[%c73] : memref<98xf32, #tpu.memory_space<smem>>
    %292 = vector.broadcast %291 : f32 to vector<8x8xf32>
    %293 = arith.mulf %290, %292 : vector<8x8xf32>
    %294 = arith.addf %289, %293 : vector<8x8xf32>
    %c3_129 = arith.constant 3 : index
    %c4_130 = arith.constant 4 : index
    %295 = vector.load %arg7[%c3_129, %c4_130] : memref<14x14xf32, #tpu.memory_space<vmem>>, vector<8x8xf32>
    %c25 = arith.constant 25 : index
    %296 = memref.load %arg5[%c25] : memref<98xf32, #tpu.memory_space<smem>>
    %297 = vector.broadcast %296 : f32 to vector<8x8xf32>
    %298 = arith.mulf %295, %297 : vector<8x8xf32>
    %299 = arith.addf %294, %298 : vector<8x8xf32>
    %c3_131 = arith.constant 3 : index
    %c4_132 = arith.constant 4 : index
    %300 = vector.load %arg8[%c3_131, %c4_132] : memref<14x14xf32, #tpu.memory_space<vmem>>, vector<8x8xf32>
    %c74 = arith.constant 74 : index
    %301 = memref.load %arg5[%c74] : memref<98xf32, #tpu.memory_space<smem>>
    %302 = vector.broadcast %301 : f32 to vector<8x8xf32>
    %303 = arith.mulf %300, %302 : vector<8x8xf32>
    %304 = arith.addf %299, %303 : vector<8x8xf32>
    %c3_133 = arith.constant 3 : index
    %c5_134 = arith.constant 5 : index
    %305 = vector.load %arg7[%c3_133, %c5_134] : memref<14x14xf32, #tpu.memory_space<vmem>>, vector<8x8xf32>
    %c26 = arith.constant 26 : index
    %306 = memref.load %arg5[%c26] : memref<98xf32, #tpu.memory_space<smem>>
    %307 = vector.broadcast %306 : f32 to vector<8x8xf32>
    %308 = arith.mulf %305, %307 : vector<8x8xf32>
    %309 = arith.addf %304, %308 : vector<8x8xf32>
    %c3_135 = arith.constant 3 : index
    %c5_136 = arith.constant 5 : index
    %310 = vector.load %arg8[%c3_135, %c5_136] : memref<14x14xf32, #tpu.memory_space<vmem>>, vector<8x8xf32>
    %c75 = arith.constant 75 : index
    %311 = memref.load %arg5[%c75] : memref<98xf32, #tpu.memory_space<smem>>
    %312 = vector.broadcast %311 : f32 to vector<8x8xf32>
    %313 = arith.mulf %310, %312 : vector<8x8xf32>
    %314 = arith.addf %309, %313 : vector<8x8xf32>
    %c3_137 = arith.constant 3 : index
    %c6_138 = arith.constant 6 : index
    %315 = vector.load %arg7[%c3_137, %c6_138] : memref<14x14xf32, #tpu.memory_space<vmem>>, vector<8x8xf32>
    %c27 = arith.constant 27 : index
    %316 = memref.load %arg5[%c27] : memref<98xf32, #tpu.memory_space<smem>>
    %317 = vector.broadcast %316 : f32 to vector<8x8xf32>
    %318 = arith.mulf %315, %317 : vector<8x8xf32>
    %319 = arith.addf %314, %318 : vector<8x8xf32>
    %c3_139 = arith.constant 3 : index
    %c6_140 = arith.constant 6 : index
    %320 = vector.load %arg8[%c3_139, %c6_140] : memref<14x14xf32, #tpu.memory_space<vmem>>, vector<8x8xf32>
    %c76 = arith.constant 76 : index
    %321 = memref.load %arg5[%c76] : memref<98xf32, #tpu.memory_space<smem>>
    %322 = vector.broadcast %321 : f32 to vector<8x8xf32>
    %323 = arith.mulf %320, %322 : vector<8x8xf32>
    %324 = arith.addf %319, %323 : vector<8x8xf32>
    %c4_141 = arith.constant 4 : index
    %c0_142 = arith.constant 0 : index
    %325 = vector.load %arg7[%c4_141, %c0_142] : memref<14x14xf32, #tpu.memory_space<vmem>>, vector<8x8xf32>
    %c28 = arith.constant 28 : index
    %326 = memref.load %arg5[%c28] : memref<98xf32, #tpu.memory_space<smem>>
    %327 = vector.broadcast %326 : f32 to vector<8x8xf32>
    %328 = arith.mulf %325, %327 : vector<8x8xf32>
    %329 = arith.addf %324, %328 : vector<8x8xf32>
    %c4_143 = arith.constant 4 : index
    %c0_144 = arith.constant 0 : index
    %330 = vector.load %arg8[%c4_143, %c0_144] : memref<14x14xf32, #tpu.memory_space<vmem>>, vector<8x8xf32>
    %c77 = arith.constant 77 : index
    %331 = memref.load %arg5[%c77] : memref<98xf32, #tpu.memory_space<smem>>
    %332 = vector.broadcast %331 : f32 to vector<8x8xf32>
    %333 = arith.mulf %330, %332 : vector<8x8xf32>
    %334 = arith.addf %329, %333 : vector<8x8xf32>
    %c4_145 = arith.constant 4 : index
    %c1_146 = arith.constant 1 : index
    %335 = vector.load %arg7[%c4_145, %c1_146] : memref<14x14xf32, #tpu.memory_space<vmem>>, vector<8x8xf32>
    %c29 = arith.constant 29 : index
    %336 = memref.load %arg5[%c29] : memref<98xf32, #tpu.memory_space<smem>>
    %337 = vector.broadcast %336 : f32 to vector<8x8xf32>
    %338 = arith.mulf %335, %337 : vector<8x8xf32>
    %339 = arith.addf %334, %338 : vector<8x8xf32>
    %c4_147 = arith.constant 4 : index
    %c1_148 = arith.constant 1 : index
    %340 = vector.load %arg8[%c4_147, %c1_148] : memref<14x14xf32, #tpu.memory_space<vmem>>, vector<8x8xf32>
    %c78 = arith.constant 78 : index
    %341 = memref.load %arg5[%c78] : memref<98xf32, #tpu.memory_space<smem>>
    %342 = vector.broadcast %341 : f32 to vector<8x8xf32>
    %343 = arith.mulf %340, %342 : vector<8x8xf32>
    %344 = arith.addf %339, %343 : vector<8x8xf32>
    %c4_149 = arith.constant 4 : index
    %c2_150 = arith.constant 2 : index
    %345 = vector.load %arg7[%c4_149, %c2_150] : memref<14x14xf32, #tpu.memory_space<vmem>>, vector<8x8xf32>
    %c30 = arith.constant 30 : index
    %346 = memref.load %arg5[%c30] : memref<98xf32, #tpu.memory_space<smem>>
    %347 = vector.broadcast %346 : f32 to vector<8x8xf32>
    %348 = arith.mulf %345, %347 : vector<8x8xf32>
    %349 = arith.addf %344, %348 : vector<8x8xf32>
    %c4_151 = arith.constant 4 : index
    %c2_152 = arith.constant 2 : index
    %350 = vector.load %arg8[%c4_151, %c2_152] : memref<14x14xf32, #tpu.memory_space<vmem>>, vector<8x8xf32>
    %c79 = arith.constant 79 : index
    %351 = memref.load %arg5[%c79] : memref<98xf32, #tpu.memory_space<smem>>
    %352 = vector.broadcast %351 : f32 to vector<8x8xf32>
    %353 = arith.mulf %350, %352 : vector<8x8xf32>
    %354 = arith.addf %349, %353 : vector<8x8xf32>
    %c4_153 = arith.constant 4 : index
    %c3_154 = arith.constant 3 : index
    %355 = vector.load %arg7[%c4_153, %c3_154] : memref<14x14xf32, #tpu.memory_space<vmem>>, vector<8x8xf32>
    %c31 = arith.constant 31 : index
    %356 = memref.load %arg5[%c31] : memref<98xf32, #tpu.memory_space<smem>>
    %357 = vector.broadcast %356 : f32 to vector<8x8xf32>
    %358 = arith.mulf %355, %357 : vector<8x8xf32>
    %359 = arith.addf %354, %358 : vector<8x8xf32>
    %c4_155 = arith.constant 4 : index
    %c3_156 = arith.constant 3 : index
    %360 = vector.load %arg8[%c4_155, %c3_156] : memref<14x14xf32, #tpu.memory_space<vmem>>, vector<8x8xf32>
    %c80 = arith.constant 80 : index
    %361 = memref.load %arg5[%c80] : memref<98xf32, #tpu.memory_space<smem>>
    %362 = vector.broadcast %361 : f32 to vector<8x8xf32>
    %363 = arith.mulf %360, %362 : vector<8x8xf32>
    %364 = arith.addf %359, %363 : vector<8x8xf32>
    %c4_157 = arith.constant 4 : index
    %c4_158 = arith.constant 4 : index
    %365 = vector.load %arg7[%c4_157, %c4_158] : memref<14x14xf32, #tpu.memory_space<vmem>>, vector<8x8xf32>
    %c32 = arith.constant 32 : index
    %366 = memref.load %arg5[%c32] : memref<98xf32, #tpu.memory_space<smem>>
    %367 = vector.broadcast %366 : f32 to vector<8x8xf32>
    %368 = arith.mulf %365, %367 : vector<8x8xf32>
    %369 = arith.addf %364, %368 : vector<8x8xf32>
    %c4_159 = arith.constant 4 : index
    %c4_160 = arith.constant 4 : index
    %370 = vector.load %arg8[%c4_159, %c4_160] : memref<14x14xf32, #tpu.memory_space<vmem>>, vector<8x8xf32>
    %c81 = arith.constant 81 : index
    %371 = memref.load %arg5[%c81] : memref<98xf32, #tpu.memory_space<smem>>
    %372 = vector.broadcast %371 : f32 to vector<8x8xf32>
    %373 = arith.mulf %370, %372 : vector<8x8xf32>
    %374 = arith.addf %369, %373 : vector<8x8xf32>
    %c4_161 = arith.constant 4 : index
    %c5_162 = arith.constant 5 : index
    %375 = vector.load %arg7[%c4_161, %c5_162] : memref<14x14xf32, #tpu.memory_space<vmem>>, vector<8x8xf32>
    %c33 = arith.constant 33 : index
    %376 = memref.load %arg5[%c33] : memref<98xf32, #tpu.memory_space<smem>>
    %377 = vector.broadcast %376 : f32 to vector<8x8xf32>
    %378 = arith.mulf %375, %377 : vector<8x8xf32>
    %379 = arith.addf %374, %378 : vector<8x8xf32>
    %c4_163 = arith.constant 4 : index
    %c5_164 = arith.constant 5 : index
    %380 = vector.load %arg8[%c4_163, %c5_164] : memref<14x14xf32, #tpu.memory_space<vmem>>, vector<8x8xf32>
    %c82 = arith.constant 82 : index
    %381 = memref.load %arg5[%c82] : memref<98xf32, #tpu.memory_space<smem>>
    %382 = vector.broadcast %381 : f32 to vector<8x8xf32>
    %383 = arith.mulf %380, %382 : vector<8x8xf32>
    %384 = arith.addf %379, %383 : vector<8x8xf32>
    %c4_165 = arith.constant 4 : index
    %c6_166 = arith.constant 6 : index
    %385 = vector.load %arg7[%c4_165, %c6_166] : memref<14x14xf32, #tpu.memory_space<vmem>>, vector<8x8xf32>
    %c34 = arith.constant 34 : index
    %386 = memref.load %arg5[%c34] : memref<98xf32, #tpu.memory_space<smem>>
    %387 = vector.broadcast %386 : f32 to vector<8x8xf32>
    %388 = arith.mulf %385, %387 : vector<8x8xf32>
    %389 = arith.addf %384, %388 : vector<8x8xf32>
    %c4_167 = arith.constant 4 : index
    %c6_168 = arith.constant 6 : index
    %390 = vector.load %arg8[%c4_167, %c6_168] : memref<14x14xf32, #tpu.memory_space<vmem>>, vector<8x8xf32>
    %c83 = arith.constant 83 : index
    %391 = memref.load %arg5[%c83] : memref<98xf32, #tpu.memory_space<smem>>
    %392 = vector.broadcast %391 : f32 to vector<8x8xf32>
    %393 = arith.mulf %390, %392 : vector<8x8xf32>
    %394 = arith.addf %389, %393 : vector<8x8xf32>
    %c5_169 = arith.constant 5 : index
    %c0_170 = arith.constant 0 : index
    %395 = vector.load %arg7[%c5_169, %c0_170] : memref<14x14xf32, #tpu.memory_space<vmem>>, vector<8x8xf32>
    %c35 = arith.constant 35 : index
    %396 = memref.load %arg5[%c35] : memref<98xf32, #tpu.memory_space<smem>>
    %397 = vector.broadcast %396 : f32 to vector<8x8xf32>
    %398 = arith.mulf %395, %397 : vector<8x8xf32>
    %399 = arith.addf %394, %398 : vector<8x8xf32>
    %c5_171 = arith.constant 5 : index
    %c0_172 = arith.constant 0 : index
    %400 = vector.load %arg8[%c5_171, %c0_172] : memref<14x14xf32, #tpu.memory_space<vmem>>, vector<8x8xf32>
    %c84 = arith.constant 84 : index
    %401 = memref.load %arg5[%c84] : memref<98xf32, #tpu.memory_space<smem>>
    %402 = vector.broadcast %401 : f32 to vector<8x8xf32>
    %403 = arith.mulf %400, %402 : vector<8x8xf32>
    %404 = arith.addf %399, %403 : vector<8x8xf32>
    %c5_173 = arith.constant 5 : index
    %c1_174 = arith.constant 1 : index
    %405 = vector.load %arg7[%c5_173, %c1_174] : memref<14x14xf32, #tpu.memory_space<vmem>>, vector<8x8xf32>
    %c36 = arith.constant 36 : index
    %406 = memref.load %arg5[%c36] : memref<98xf32, #tpu.memory_space<smem>>
    %407 = vector.broadcast %406 : f32 to vector<8x8xf32>
    %408 = arith.mulf %405, %407 : vector<8x8xf32>
    %409 = arith.addf %404, %408 : vector<8x8xf32>
    %c5_175 = arith.constant 5 : index
    %c1_176 = arith.constant 1 : index
    %410 = vector.load %arg8[%c5_175, %c1_176] : memref<14x14xf32, #tpu.memory_space<vmem>>, vector<8x8xf32>
    %c85 = arith.constant 85 : index
    %411 = memref.load %arg5[%c85] : memref<98xf32, #tpu.memory_space<smem>>
    %412 = vector.broadcast %411 : f32 to vector<8x8xf32>
    %413 = arith.mulf %410, %412 : vector<8x8xf32>
    %414 = arith.addf %409, %413 : vector<8x8xf32>
    %c5_177 = arith.constant 5 : index
    %c2_178 = arith.constant 2 : index
    %415 = vector.load %arg7[%c5_177, %c2_178] : memref<14x14xf32, #tpu.memory_space<vmem>>, vector<8x8xf32>
    %c37 = arith.constant 37 : index
    %416 = memref.load %arg5[%c37] : memref<98xf32, #tpu.memory_space<smem>>
    %417 = vector.broadcast %416 : f32 to vector<8x8xf32>
    %418 = arith.mulf %415, %417 : vector<8x8xf32>
    %419 = arith.addf %414, %418 : vector<8x8xf32>
    %c5_179 = arith.constant 5 : index
    %c2_180 = arith.constant 2 : index
    %420 = vector.load %arg8[%c5_179, %c2_180] : memref<14x14xf32, #tpu.memory_space<vmem>>, vector<8x8xf32>
    %c86 = arith.constant 86 : index
    %421 = memref.load %arg5[%c86] : memref<98xf32, #tpu.memory_space<smem>>
    %422 = vector.broadcast %421 : f32 to vector<8x8xf32>
    %423 = arith.mulf %420, %422 : vector<8x8xf32>
    %424 = arith.addf %419, %423 : vector<8x8xf32>
    %c5_181 = arith.constant 5 : index
    %c3_182 = arith.constant 3 : index
    %425 = vector.load %arg7[%c5_181, %c3_182] : memref<14x14xf32, #tpu.memory_space<vmem>>, vector<8x8xf32>
    %c38 = arith.constant 38 : index
    %426 = memref.load %arg5[%c38] : memref<98xf32, #tpu.memory_space<smem>>
    %427 = vector.broadcast %426 : f32 to vector<8x8xf32>
    %428 = arith.mulf %425, %427 : vector<8x8xf32>
    %429 = arith.addf %424, %428 : vector<8x8xf32>
    %c5_183 = arith.constant 5 : index
    %c3_184 = arith.constant 3 : index
    %430 = vector.load %arg8[%c5_183, %c3_184] : memref<14x14xf32, #tpu.memory_space<vmem>>, vector<8x8xf32>
    %c87 = arith.constant 87 : index
    %431 = memref.load %arg5[%c87] : memref<98xf32, #tpu.memory_space<smem>>
    %432 = vector.broadcast %431 : f32 to vector<8x8xf32>
    %433 = arith.mulf %430, %432 : vector<8x8xf32>
    %434 = arith.addf %429, %433 : vector<8x8xf32>
    %c5_185 = arith.constant 5 : index
    %c4_186 = arith.constant 4 : index
    %435 = vector.load %arg7[%c5_185, %c4_186] : memref<14x14xf32, #tpu.memory_space<vmem>>, vector<8x8xf32>
    %c39 = arith.constant 39 : index
    %436 = memref.load %arg5[%c39] : memref<98xf32, #tpu.memory_space<smem>>
    %437 = vector.broadcast %436 : f32 to vector<8x8xf32>
    %438 = arith.mulf %435, %437 : vector<8x8xf32>
    %439 = arith.addf %434, %438 : vector<8x8xf32>
    %c5_187 = arith.constant 5 : index
    %c4_188 = arith.constant 4 : index
    %440 = vector.load %arg8[%c5_187, %c4_188] : memref<14x14xf32, #tpu.memory_space<vmem>>, vector<8x8xf32>
    %c88 = arith.constant 88 : index
    %441 = memref.load %arg5[%c88] : memref<98xf32, #tpu.memory_space<smem>>
    %442 = vector.broadcast %441 : f32 to vector<8x8xf32>
    %443 = arith.mulf %440, %442 : vector<8x8xf32>
    %444 = arith.addf %439, %443 : vector<8x8xf32>
    %c5_189 = arith.constant 5 : index
    %c5_190 = arith.constant 5 : index
    %445 = vector.load %arg7[%c5_189, %c5_190] : memref<14x14xf32, #tpu.memory_space<vmem>>, vector<8x8xf32>
    %c40 = arith.constant 40 : index
    %446 = memref.load %arg5[%c40] : memref<98xf32, #tpu.memory_space<smem>>
    %447 = vector.broadcast %446 : f32 to vector<8x8xf32>
    %448 = arith.mulf %445, %447 : vector<8x8xf32>
    %449 = arith.addf %444, %448 : vector<8x8xf32>
    %c5_191 = arith.constant 5 : index
    %c5_192 = arith.constant 5 : index
    %450 = vector.load %arg8[%c5_191, %c5_192] : memref<14x14xf32, #tpu.memory_space<vmem>>, vector<8x8xf32>
    %c89 = arith.constant 89 : index
    %451 = memref.load %arg5[%c89] : memref<98xf32, #tpu.memory_space<smem>>
    %452 = vector.broadcast %451 : f32 to vector<8x8xf32>
    %453 = arith.mulf %450, %452 : vector<8x8xf32>
    %454 = arith.addf %449, %453 : vector<8x8xf32>
    %c5_193 = arith.constant 5 : index
    %c6_194 = arith.constant 6 : index
    %455 = vector.load %arg7[%c5_193, %c6_194] : memref<14x14xf32, #tpu.memory_space<vmem>>, vector<8x8xf32>
    %c41 = arith.constant 41 : index
    %456 = memref.load %arg5[%c41] : memref<98xf32, #tpu.memory_space<smem>>
    %457 = vector.broadcast %456 : f32 to vector<8x8xf32>
    %458 = arith.mulf %455, %457 : vector<8x8xf32>
    %459 = arith.addf %454, %458 : vector<8x8xf32>
    %c5_195 = arith.constant 5 : index
    %c6_196 = arith.constant 6 : index
    %460 = vector.load %arg8[%c5_195, %c6_196] : memref<14x14xf32, #tpu.memory_space<vmem>>, vector<8x8xf32>
    %c90 = arith.constant 90 : index
    %461 = memref.load %arg5[%c90] : memref<98xf32, #tpu.memory_space<smem>>
    %462 = vector.broadcast %461 : f32 to vector<8x8xf32>
    %463 = arith.mulf %460, %462 : vector<8x8xf32>
    %464 = arith.addf %459, %463 : vector<8x8xf32>
    %c6_197 = arith.constant 6 : index
    %c0_198 = arith.constant 0 : index
    %465 = vector.load %arg7[%c6_197, %c0_198] : memref<14x14xf32, #tpu.memory_space<vmem>>, vector<8x8xf32>
    %c42 = arith.constant 42 : index
    %466 = memref.load %arg5[%c42] : memref<98xf32, #tpu.memory_space<smem>>
    %467 = vector.broadcast %466 : f32 to vector<8x8xf32>
    %468 = arith.mulf %465, %467 : vector<8x8xf32>
    %469 = arith.addf %464, %468 : vector<8x8xf32>
    %c6_199 = arith.constant 6 : index
    %c0_200 = arith.constant 0 : index
    %470 = vector.load %arg8[%c6_199, %c0_200] : memref<14x14xf32, #tpu.memory_space<vmem>>, vector<8x8xf32>
    %c91 = arith.constant 91 : index
    %471 = memref.load %arg5[%c91] : memref<98xf32, #tpu.memory_space<smem>>
    %472 = vector.broadcast %471 : f32 to vector<8x8xf32>
    %473 = arith.mulf %470, %472 : vector<8x8xf32>
    %474 = arith.addf %469, %473 : vector<8x8xf32>
    %c6_201 = arith.constant 6 : index
    %c1_202 = arith.constant 1 : index
    %475 = vector.load %arg7[%c6_201, %c1_202] : memref<14x14xf32, #tpu.memory_space<vmem>>, vector<8x8xf32>
    %c43 = arith.constant 43 : index
    %476 = memref.load %arg5[%c43] : memref<98xf32, #tpu.memory_space<smem>>
    %477 = vector.broadcast %476 : f32 to vector<8x8xf32>
    %478 = arith.mulf %475, %477 : vector<8x8xf32>
    %479 = arith.addf %474, %478 : vector<8x8xf32>
    %c6_203 = arith.constant 6 : index
    %c1_204 = arith.constant 1 : index
    %480 = vector.load %arg8[%c6_203, %c1_204] : memref<14x14xf32, #tpu.memory_space<vmem>>, vector<8x8xf32>
    %c92 = arith.constant 92 : index
    %481 = memref.load %arg5[%c92] : memref<98xf32, #tpu.memory_space<smem>>
    %482 = vector.broadcast %481 : f32 to vector<8x8xf32>
    %483 = arith.mulf %480, %482 : vector<8x8xf32>
    %484 = arith.addf %479, %483 : vector<8x8xf32>
    %c6_205 = arith.constant 6 : index
    %c2_206 = arith.constant 2 : index
    %485 = vector.load %arg7[%c6_205, %c2_206] : memref<14x14xf32, #tpu.memory_space<vmem>>, vector<8x8xf32>
    %c44 = arith.constant 44 : index
    %486 = memref.load %arg5[%c44] : memref<98xf32, #tpu.memory_space<smem>>
    %487 = vector.broadcast %486 : f32 to vector<8x8xf32>
    %488 = arith.mulf %485, %487 : vector<8x8xf32>
    %489 = arith.addf %484, %488 : vector<8x8xf32>
    %c6_207 = arith.constant 6 : index
    %c2_208 = arith.constant 2 : index
    %490 = vector.load %arg8[%c6_207, %c2_208] : memref<14x14xf32, #tpu.memory_space<vmem>>, vector<8x8xf32>
    %c93 = arith.constant 93 : index
    %491 = memref.load %arg5[%c93] : memref<98xf32, #tpu.memory_space<smem>>
    %492 = vector.broadcast %491 : f32 to vector<8x8xf32>
    %493 = arith.mulf %490, %492 : vector<8x8xf32>
    %494 = arith.addf %489, %493 : vector<8x8xf32>
    %c6_209 = arith.constant 6 : index
    %c3_210 = arith.constant 3 : index
    %495 = vector.load %arg7[%c6_209, %c3_210] : memref<14x14xf32, #tpu.memory_space<vmem>>, vector<8x8xf32>
    %c45 = arith.constant 45 : index
    %496 = memref.load %arg5[%c45] : memref<98xf32, #tpu.memory_space<smem>>
    %497 = vector.broadcast %496 : f32 to vector<8x8xf32>
    %498 = arith.mulf %495, %497 : vector<8x8xf32>
    %499 = arith.addf %494, %498 : vector<8x8xf32>
    %c6_211 = arith.constant 6 : index
    %c3_212 = arith.constant 3 : index
    %500 = vector.load %arg8[%c6_211, %c3_212] : memref<14x14xf32, #tpu.memory_space<vmem>>, vector<8x8xf32>
    %c94 = arith.constant 94 : index
    %501 = memref.load %arg5[%c94] : memref<98xf32, #tpu.memory_space<smem>>
    %502 = vector.broadcast %501 : f32 to vector<8x8xf32>
    %503 = arith.mulf %500, %502 : vector<8x8xf32>
    %504 = arith.addf %499, %503 : vector<8x8xf32>
    %c6_213 = arith.constant 6 : index
    %c4_214 = arith.constant 4 : index
    %505 = vector.load %arg7[%c6_213, %c4_214] : memref<14x14xf32, #tpu.memory_space<vmem>>, vector<8x8xf32>
    %c46 = arith.constant 46 : index
    %506 = memref.load %arg5[%c46] : memref<98xf32, #tpu.memory_space<smem>>
    %507 = vector.broadcast %506 : f32 to vector<8x8xf32>
    %508 = arith.mulf %505, %507 : vector<8x8xf32>
    %509 = arith.addf %504, %508 : vector<8x8xf32>
    %c6_215 = arith.constant 6 : index
    %c4_216 = arith.constant 4 : index
    %510 = vector.load %arg8[%c6_215, %c4_216] : memref<14x14xf32, #tpu.memory_space<vmem>>, vector<8x8xf32>
    %c95 = arith.constant 95 : index
    %511 = memref.load %arg5[%c95] : memref<98xf32, #tpu.memory_space<smem>>
    %512 = vector.broadcast %511 : f32 to vector<8x8xf32>
    %513 = arith.mulf %510, %512 : vector<8x8xf32>
    %514 = arith.addf %509, %513 : vector<8x8xf32>
    %c6_217 = arith.constant 6 : index
    %c5_218 = arith.constant 5 : index
    %515 = vector.load %arg7[%c6_217, %c5_218] : memref<14x14xf32, #tpu.memory_space<vmem>>, vector<8x8xf32>
    %c47 = arith.constant 47 : index
    %516 = memref.load %arg5[%c47] : memref<98xf32, #tpu.memory_space<smem>>
    %517 = vector.broadcast %516 : f32 to vector<8x8xf32>
    %518 = arith.mulf %515, %517 : vector<8x8xf32>
    %519 = arith.addf %514, %518 : vector<8x8xf32>
    %c6_219 = arith.constant 6 : index
    %c5_220 = arith.constant 5 : index
    %520 = vector.load %arg8[%c6_219, %c5_220] : memref<14x14xf32, #tpu.memory_space<vmem>>, vector<8x8xf32>
    %c96 = arith.constant 96 : index
    %521 = memref.load %arg5[%c96] : memref<98xf32, #tpu.memory_space<smem>>
    %522 = vector.broadcast %521 : f32 to vector<8x8xf32>
    %523 = arith.mulf %520, %522 : vector<8x8xf32>
    %524 = arith.addf %519, %523 : vector<8x8xf32>
    %c6_221 = arith.constant 6 : index
    %c6_222 = arith.constant 6 : index
    %525 = vector.load %arg7[%c6_221, %c6_222] : memref<14x14xf32, #tpu.memory_space<vmem>>, vector<8x8xf32>
    %c48 = arith.constant 48 : index
    %526 = memref.load %arg5[%c48] : memref<98xf32, #tpu.memory_space<smem>>
    %527 = vector.broadcast %526 : f32 to vector<8x8xf32>
    %528 = arith.mulf %525, %527 : vector<8x8xf32>
    %529 = arith.addf %524, %528 : vector<8x8xf32>
    %c6_223 = arith.constant 6 : index
    %c6_224 = arith.constant 6 : index
    %530 = vector.load %arg8[%c6_223, %c6_224] : memref<14x14xf32, #tpu.memory_space<vmem>>, vector<8x8xf32>
    %c97 = arith.constant 97 : index
    %531 = memref.load %arg5[%c97] : memref<98xf32, #tpu.memory_space<smem>>
    %532 = vector.broadcast %531 : f32 to vector<8x8xf32>
    %533 = arith.mulf %530, %532 : vector<8x8xf32>
    %534 = arith.addf %529, %533 : vector<8x8xf32>
    %cst_225 = arith.constant 0.000000e+00 : f32
    %535 = vector.broadcast %cst_225 : f32 to vector<8x8xf32>
    %536 = arith.subf %535, %534 : vector<8x8xf32>
    %537 = math.exp %536 : vector<8x8xf32>
    %cst_226 = arith.constant 1.000000e+00 : f32
    %538 = vector.broadcast %cst_226 : f32 to vector<8x8xf32>
    %539 = arith.addf %538, %537 : vector<8x8xf32>
    %540 = tpu.reciprocal %539 {approx = true} : vector<8x8xf32> -> vector<8x8xf32>
    %541 = arith.extf %31 : vector<8x8x128xbf16> to vector<8x8x128xf32>
    %542 = vector.shape_cast %540 : vector<8x8xf32> to vector<8x8x1xf32>
    %543 = vector.broadcast %542 : vector<8x8x1xf32> to vector<8x8x128xf32>
    %544 = arith.mulf %541, %543 : vector<8x8x128xf32>
    %c0_227 = arith.constant 0 : index
    %c0_228 = arith.constant 0 : index
    %c0_229 = arith.constant 0 : index
    %c0_230 = arith.constant 0 : index
    %545 = vector.load %arg2[%c0_227, %c0_228, %c0_229, %c0_230] : memref<1x8x8x128xbf16, #tpu.memory_space<vmem>>, vector<1x8x8x128xbf16>
    %546 = vector.shape_cast %545 : vector<1x8x8x128xbf16> to vector<8x8x128xbf16>
    %547 = arith.extf %546 : vector<8x8x128xbf16> to vector<8x8x128xf32>
    %548 = arith.addf %544, %547 : vector<8x8x128xf32>
    %cst_231 = arith.constant 0.000000e+00 : f32
    %549 = vector.broadcast %cst_231 : f32 to vector<8x8x128xf32>
    %550 = arith.maximumf %548, %549 : vector<8x8x128xf32>
    %551 = vector.shape_cast %550 : vector<8x8x128xf32> to vector<1x8x8x128xf32>
    %552 = arith.truncf %551 : vector<1x8x8x128xf32> to vector<1x8x8x128xbf16>
    %c0_232 = arith.constant 0 : index
    %c0_233 = arith.constant 0 : index
    %c0_234 = arith.constant 0 : index
    %c0_235 = arith.constant 0 : index
    %553 = vector.load %arg6[%c0_232, %c0_233, %c0_234, %c0_235] : memref<1x8x8x128xbf16, #tpu.memory_space<vmem>>, vector<1x8x8x128xbf16>
    tpu.vector_store %arg6[%c0_232, %c0_233, %c0_234, %c0_235], %552 {strides = array<i32>} : memref<1x8x8x128xbf16, #tpu.memory_space<vmem>>, vector<1x8x8x128xbf16>,
    return
  }
  func.func @transform_0(%arg0: i32) -> (i32, i32, i32, i32) {
    %c0_i32 = arith.constant 0 : i32
    %c0_i32_0 = arith.constant 0 : i32
    %c0_i32_1 = arith.constant 0 : i32
    %c0_i32_2 = arith.constant 0 : i32
    return %arg0, %c0_i32, %c0_i32_0, %c0_i32_1 : i32, i32, i32, i32
  }
  func.func @transform_1(%arg0: i32) -> (i32, i32, i32, i32) {
    %c0_i32 = arith.constant 0 : i32
    %c0_i32_0 = arith.constant 0 : i32
    %c0_i32_1 = arith.constant 0 : i32
    %c0_i32_2 = arith.constant 0 : i32
    return %arg0, %c0_i32, %c0_i32_0, %c0_i32_1 : i32, i32, i32, i32
  }
  func.func @transform_2(%arg0: i32) -> (i32, i32) {
    %c0_i32 = arith.constant 0 : i32
    %c0_i32_0 = arith.constant 0 : i32
    %c0_i32_1 = arith.constant 0 : i32
    return %c0_i32, %c0_i32_0 : i32, i32
  }
  func.func @transform_3(%arg0: i32) -> (i32, i32) {
    %c0_i32 = arith.constant 0 : i32
    %c0_i32_0 = arith.constant 0 : i32
    %c0_i32_1 = arith.constant 0 : i32
    return %c0_i32, %c0_i32_0 : i32, i32
  }
  func.func @transform_4(%arg0: i32) -> i32 {
    %c0_i32 = arith.constant 0 : i32
    %c0_i32_0 = arith.constant 0 : i32
    return %c0_i32 : i32
  }
  func.func @transform_5(%arg0: i32) -> (i32, i32, i32, i32) {
    %c0_i32 = arith.constant 0 : i32
    %c0_i32_0 = arith.constant 0 : i32
    %c0_i32_1 = arith.constant 0 : i32
    %c0_i32_2 = arith.constant 0 : i32
    return %arg0, %c0_i32, %c0_i32_0, %c0_i32_1 : i32, i32, i32, i32
  }
}

</mosaic_0001>

<bundles_post_ra>
// kernel: _lambda_.5
= control target key start
LH: loop header
LB: loop body
LE: loop exit
PB: predicated region body
PF: predicated region fallthrough
CT: control target
= control target key end

     0   :  { %s777_s15 = smov 0   ;;  %s779_s16 = smov 0   ;;  %s839_s0 = inlined_call_operand.vmem [shape: bf16[128,64], index: 0, kind: input, shape index: {}]   ;;  %s840_s1 = inlined_call_operand.vmem [shape: bf16[64,128], index: 1, kind: input, shape index: {}]   ;;  %s841_s2 = inlined_call_operand.vmem [shape: f32[1,128], index: 2, kind: input, shape index: {}]   ;;  %s842_s3 = inlined_call_operand.vmem [shape: f32[1,128], index: 3, kind: input, shape index: {}]   ;;  %s843_s4 = inlined_call_operand.vmem [shape: bf16[128,128], index: 4, kind: output, shape index: {}]  }
   0x1   :  { %s781_s17 = smov 0  }
   0x2 LB: > { %s26_s18 = sadd.s32 1, %s746_s16  ;;  %p604_p0 = scmp.ge.s32.totalorder %s750_s17, 1  ;;  %s750_s17 = sphi %s781_s17, %s14_s17   ;;  %s746_s16 = sphi %s779_s16, %s845_s16   ;;  %s742_s15 = sphi %s777_s15, %s844_s15  }
   0x3   : > { %p28_p1 = scmp.ge.s32.totalorder %s26_s18, 2  ;;  %p202_p2 = scmp.lt.s32.totalorder %s750_s17, 3 }
   0x5   : > { %s847_s18 = smov (%p28_p1, %s26_s18), 0  ;;  %p203_p3 = pnand %p604_p0, %p202_p2 }
   0x6   : > { %v720_v0 = vld [vmem:[%s840_s1] sm:$0xff] (!%p203_p3)   ;;  %s605_s21 = sshll.u32 (!%p203_p3), %s742_s15, 3  ;;  %v721_v1 = vld [vmem:[%s840_s1 + $0x8] sm:$0xff] (!%p203_p3)   ;;  %v722_v2 = vld [vmem:[%s840_s1 + $0x10] sm:$0xff] (!%p203_p3)   ;;  %vm327_vm0 = vcmask (!%p203_p3), 523264  }
   0x7   : > { %206 = sbr.rel (%p203_p3) target bundleno = 247 (0xf7), region = 36  ;;  %p242_p4 = scmp.lt.s32.totalorder (!%p203_p3), %s605_s21, 15  ;;  %672 = vmatprep.subr.bf16.mxu0 (!%p203_p3), %v720_v0  ;;  %688 = vmatprep.subr.bf16.mxu1 (!%p203_p3), %v720_v0  ;;  %v723_v3 = vld [vmem:[%s840_s1 + $0x18] sm:$0xff] (!%p203_p3)   ;;  %v621_v8 = vld [vmem:[%s841_s2] ss:$0 sm:$0xff] (!%p203_p3) }
   0x8   : > { %673 = vmatpush3.bf16.msra.mxu0 (!%p203_p3), %v720_v0  ;;  %692 = vmatpush3.bf16.msra.mxu1 (!%p203_p3), %v720_v0  ;;  %v622_v10 = vld [vmem:[%s842_s3] ss:$0 sm:$0xff] (!%p203_p3) }
   0x9   : > { %674 = vmatprep.subr.bf16.mxu0 (!%p203_p3), %v721_v1  ;;  %689 = vmatprep.subr.bf16.mxu1 (!%p203_p3), %v721_v1 }
   0xc   : > { %675 = vmatpush3.bf16.msra.mxu0 (!%p203_p3), %v721_v1  ;;  %693 = vmatpush3.bf16.msra.mxu1 (!%p203_p3), %v721_v1 }
   0xd   : > { %676 = vmatprep.subr.bf16.mxu0 (!%p203_p3), %v722_v2  ;;  %690 = vmatprep.subr.bf16.mxu1 (!%p203_p3), %v722_v2 }
   0xe   : > { %s849_s21 = smov (!%p242_p4, %s605_s21), 15 }
   0xf   : > { %s606_s26 = sshll.u32 %s849_s21, 2 }
  0x10   : > { %s245_s5 = scalar_lea.vmem %s839_s0, %s606_s26  ;;  %677 = vmatpush3.bf16.msra.mxu0 %v722_v2  ;;  %694 = vmatpush3.bf16.msra.mxu1 %v722_v2  ;;  %s264_s12 = scalar_lea.vmem %s843_s4, %s606_s26 }
  0x11   : > { %v724_v4 = vld [vmem:[%s245_s5] sm:$0xff]   ;;  %v725_v5 = vld [vmem:[%s245_s5 + $0x10] sm:$0xff]   ;;  %678 = vmatprep.subr.bf16.mxu0 %v723_v3  ;;  %691 = vmatprep.subr.bf16.mxu1 %v723_v3  ;;  %v726_v6 = vld [vmem:[%s245_s5 + $0x8] sm:$0xff]  }
  0x12   : > { %680 = vmatprep.mubr.msk.bf16.mxu0 %vm327_vm0, %v724_v4  ;;  %684 = vmatprep.mubr.msk.bf16.mxu1 %vm327_vm0, %v725_v5  ;;  %v727_v7 = vld [vmem:[%s245_s5 + $0x18] sm:$0xff]  }
  0x14   : > { %679 = vmatpush3.bf16.msra.mxu0 %v723_v3  ;;  %695 = vmatpush3.bf16.msra.mxu1 %v723_v3 }
  0x17   : > { %681 = vmatmul.mubr.msk.bf16.vlgmr.msra.gmra.mrb[0].mxu0 %vm327_vm0, %v726_v6  ;;  %685 = vmatmul.mubr.msk.bf16.vlgmr.msra.gmra.mrb[0].mxu1 %vm327_vm0, %v727_v7 }
  0xea   : > { %v682_v9 = vpop.f32.mrb[0].mxu0  ;;  %v686_v11 = vpop.f32.mrb[0].mxu1 }
  0xeb   : > { %v414_v12 = vmul.f32 %v682_v9, %v621_v8  ;;  %v418_v13 = vmul.f32 %v686_v11, %v621_v8  ;;  %v374_v14 = vpop.f32.mrb[1].mxu0  ;;  %v390_v15 = vpop.f32.mrb[1].mxu1 }
  0xec   : > { %v412_v16 = vmul.f32 %v621_v8, %v374_v14  ;;  %v416_v17 = vmul.f32 %v621_v8, %v390_v15  ;;  %v683_v18 = vpop.f32.mrb[2].mxu0  ;;  %v687_v19 = vpop.f32.mrb[2].mxu1 }
  0xed   : > { %v429_v20 = vadd.f32 %v622_v10, %v414_v12  ;;  %v433_v21 = vadd.f32 %v622_v10, %v418_v13  ;;  %v415_v22 = vmul.f32 %v683_v18, %v621_v8  ;;  %v419_v23 = vmul.f32 %v687_v19, %v621_v8  ;;  %v377_v24 = vpop.f32.mrb[3].mxu0  ;;  %v393_v25 = vpop.f32.mrb[3].mxu1 }
  0xee   : > { %v427_v26 = vadd.f32 %v622_v10, %v412_v16  ;;  %v431_v27 = vadd.f32 %v622_v10, %v416_v17  ;;  %v413_v28 = vmul.f32 %v621_v8, %v377_v24  ;;  %v417_v29 = vmul.f32 %v621_v8, %v393_v25 }
  0xef   : > { %v430_v30 = vadd.f32 %v622_v10, %v415_v22  ;;  %v434_v31 = vadd.f32 %v622_v10, %v419_v23  ;;  %v437_v34 = vmax.f32 %v429_v20, 0.0  ;;  %v441_v35 = vmax.f32 %v433_v21, 0.0 }
  0xf0   : > { %v428_v32 = vadd.f32 %v622_v10, %v413_v28  ;;  %v432_v33 = vadd.f32 %v622_v10, %v417_v29  ;;  %v435_v38 = vmax.f32 %v427_v26, 0.0  ;;  %v439_v39 = vmax.f32 %v431_v27, 0.0 }
  0xf1   : > { %v438_v36 = vmax.f32 %v430_v30, 0.0  ;;  %v442_v37 = vmax.f32 %v434_v31, 0.0 }
  0xf2   : > { %v436_v40 = vmax.f32 %v428_v32, 0.0  ;;  %v440_v41 = vmax.f32 %v432_v33, 0.0 }
  0xf3   : > { %v649_v42 = vpack.c.bf16 %v438_v36, %v437_v34  ;;  %v659_v43 = vpack.c.bf16 %v442_v37, %v441_v35 }
  0xf4   : > { %v644_v44 = vpack.c.bf16 %v436_v40, %v435_v38  ;;  %v654_v45 = vpack.c.bf16 %v440_v41, %v439_v39 }
  0xf5   : > { %661 = vst [vmem:[%s264_s12 + $0x8] sm:$0xff] %v649_v42   ;;  %663 = vst [vmem:[%s264_s12 + $0x18] sm:$0xff] %v659_v43  }
  0xf6   : > { %645 = vst [vmem:[%s264_s12] sm:$0xff] %v644_v44   ;;  %662 = vst [vmem:[%s264_s12 + $0x10] sm:$0xff] %v654_v45  }
  0xf7 PF: > { %s14_s17 = sadd.s32 1, %s750_s17   ;;  %s844_s15 = smov %s746_s16 }
  0xf8   : > { %p11_p5 = scmp.ge.s32.totalorder %s14_s17, 4   ;;  %s845_s16 = smov %s847_s18 }
  0xfa   :  { %13 = sbr.rel (!%p11_p5) target bundleno = 2 (0x2), region = 75 }

// kernel: _lambda_.8
= control target key start
LH: loop header
LB: loop body
LE: loop exit
PB: predicated region body
PF: predicated region fallthrough
CT: control target
= control target key end

     0   :  { %s769_s15 = smov 0   ;;  %s771_s16 = smov 0   ;;  %s831_s0 = inlined_call_operand.vmem [shape: bf16[128,64], index: 0, kind: input, shape index: {}]   ;;  %s832_s1 = inlined_call_operand.vmem [shape: bf16[64,128], index: 1, kind: input, shape index: {}]   ;;  %s833_s2 = inlined_call_operand.vmem [shape: f32[1,128], index: 2, kind: input, shape index: {}]   ;;  %s834_s3 = inlined_call_operand.vmem [shape: f32[1,128], index: 3, kind: input, shape index: {}]   ;;  %s835_s4 = inlined_call_operand.vmem [shape: bf16[128,128], index: 4, kind: output, shape index: {}]  }
   0x1   :  { %s773_s17 = smov 0  }
   0x2 LB: > { %s26_s18 = sadd.s32 1, %s738_s16  ;;  %p596_p0 = scmp.ge.s32.totalorder %s742_s17, 1  ;;  %s742_s17 = sphi %s773_s17, %s14_s17   ;;  %s738_s16 = sphi %s771_s16, %s837_s16   ;;  %s734_s15 = sphi %s769_s15, %s836_s15  }
   0x3   : > { %p28_p1 = scmp.ge.s32.totalorder %s26_s18, 2  ;;  %p202_p2 = scmp.lt.s32.totalorder %s742_s17, 3 }
   0x5   : > { %s839_s18 = smov (%p28_p1, %s26_s18), 0  ;;  %p203_p3 = pnand %p596_p0, %p202_p2 }
   0x6   : > { %v712_v0 = vld [vmem:[%s832_s1] sm:$0xff] (!%p203_p3)   ;;  %s597_s21 = sshll.u32 (!%p203_p3), %s734_s15, 3  ;;  %v713_v1 = vld [vmem:[%s832_s1 + $0x8] sm:$0xff] (!%p203_p3)   ;;  %v714_v2 = vld [vmem:[%s832_s1 + $0x10] sm:$0xff] (!%p203_p3)   ;;  %vm327_vm0 = vcmask (!%p203_p3), 523264  }
   0x7   : > { %206 = sbr.rel (%p203_p3) target bundleno = 245 (0xf5), region = 36  ;;  %p242_p4 = scmp.lt.s32.totalorder (!%p203_p3), %s597_s21, 15  ;;  %664 = vmatprep.subr.bf16.mxu0 (!%p203_p3), %v712_v0  ;;  %680 = vmatprep.subr.bf16.mxu1 (!%p203_p3), %v712_v0  ;;  %v715_v3 = vld [vmem:[%s832_s1 + $0x18] sm:$0xff] (!%p203_p3)   ;;  %v613_v8 = vld [vmem:[%s833_s2] ss:$0 sm:$0xff] (!%p203_p3) }
   0x8   : > { %665 = vmatpush3.bf16.msra.mxu0 (!%p203_p3), %v712_v0  ;;  %684 = vmatpush3.bf16.msra.mxu1 (!%p203_p3), %v712_v0  ;;  %v614_v15 = vld [vmem:[%s834_s3] ss:$0 sm:$0xff] (!%p203_p3) }
   0x9   : > { %666 = vmatprep.subr.bf16.mxu0 (!%p203_p3), %v713_v1  ;;  %681 = vmatprep.subr.bf16.mxu1 (!%p203_p3), %v713_v1 }
   0xc   : > { %667 = vmatpush3.bf16.msra.mxu0 (!%p203_p3), %v713_v1  ;;  %685 = vmatpush3.bf16.msra.mxu1 (!%p203_p3), %v713_v1 }
   0xd   : > { %668 = vmatprep.subr.bf16.mxu0 (!%p203_p3), %v714_v2  ;;  %682 = vmatprep.subr.bf16.mxu1 (!%p203_p3), %v714_v2 }
   0xe   : > { %s841_s21 = smov (!%p242_p4, %s597_s21), 15 }
   0xf   : > { %s598_s26 = sshll.u32 %s841_s21, 2 }
  0x10   : > { %s245_s5 = scalar_lea.vmem %s831_s0, %s598_s26  ;;  %669 = vmatpush3.bf16.msra.mxu0 %v714_v2  ;;  %686 = vmatpush3.bf16.msra.mxu1 %v714_v2  ;;  %s264_s12 = scalar_lea.vmem %s835_s4, %s598_s26 }
  0x11   : > { %v716_v4 = vld [vmem:[%s245_s5] sm:$0xff]   ;;  %v717_v5 = vld [vmem:[%s245_s5 + $0x10] sm:$0xff]   ;;  %670 = vmatprep.subr.bf16.mxu0 %v715_v3  ;;  %683 = vmatprep.subr.bf16.mxu1 %v715_v3  ;;  %v718_v6 = vld [vmem:[%s245_s5 + $0x8] sm:$0xff]  }
  0x12   : > { %672 = vmatprep.mubr.msk.bf16.mxu0 %vm327_vm0, %v716_v4  ;;  %676 = vmatprep.mubr.msk.bf16.mxu1 %vm327_vm0, %v717_v5  ;;  %v719_v7 = vld [vmem:[%s245_s5 + $0x18] sm:$0xff]  }
  0x14   : > { %671 = vmatpush3.bf16.msra.mxu0 %v715_v3  ;;  %687 = vmatpush3.bf16.msra.mxu1 %v715_v3 }
  0x17   : > { %673 = vmatmul.mubr.msk.bf16.vlgmr.msra.gmra.mrb[0].mxu0 %vm327_vm0, %v718_v6  ;;  %677 = vmatmul.mubr.msk.bf16.vlgmr.msra.gmra.mrb[0].mxu1 %vm327_vm0, %v719_v7 }
  0xea   : > { %v674_v9 = vpop.f32.mrb[0].mxu0  ;;  %v678_v10 = vpop.f32.mrb[0].mxu1 }
  0xeb   : > { %v414_v11 = vmul.f32 %v674_v9, %v613_v8  ;;  %v418_v12 = vmul.f32 %v678_v10, %v613_v8  ;;  %v374_v13 = vpop.f32.mrb[1].mxu0  ;;  %v390_v14 = vpop.f32.mrb[1].mxu1 }
  0xec   : > { %v412_v16 = vmul.f32 %v613_v8, %v374_v13  ;;  %v416_v17 = vmul.f32 %v613_v8, %v390_v14  ;;  %v675_v18 = vpop.f32.mrb[2].mxu0  ;;  %v679_v19 = vpop.f32.mrb[2].mxu1 }
  0xed   : > { %v415_v20 = vmul.f32 %v675_v18, %v613_v8  ;;  %v419_v21 = vmul.f32 %v679_v19, %v613_v8  ;;  %v377_v22 = vpop.f32.mrb[3].mxu0  ;;  %v393_v23 = vpop.f32.mrb[3].mxu1  ;;  %v429_v26 = vadd.f32 %v614_v15, %v414_v11  ;;  %v433_v27 = vadd.f32 %v614_v15, %v418_v12 }
  0xee   : > { %v413_v24 = vmul.f32 %v613_v8, %v377_v22  ;;  %v417_v25 = vmul.f32 %v613_v8, %v393_v23  ;;  %v427_v30 = vadd.f32 %v614_v15, %v412_v16  ;;  %v431_v31 = vadd.f32 %v614_v15, %v416_v17 }
  0xef   : > { %v430_v28 = vadd.f32 %v614_v15, %v415_v20  ;;  %v434_v29 = vadd.f32 %v614_v15, %v419_v21 }
  0xf0   : > { %v428_v32 = vadd.f32 %v614_v15, %v413_v24  ;;  %v432_v33 = vadd.f32 %v614_v15, %v417_v25 }
  0xf1   : > { %v641_v34 = vpack.c.bf16 %v430_v28, %v429_v26  ;;  %v651_v35 = vpack.c.bf16 %v434_v29, %v433_v27 }
  0xf2   : > { %v636_v36 = vpack.c.bf16 %v428_v32, %v427_v30  ;;  %v646_v37 = vpack.c.bf16 %v432_v33, %v431_v31 }
  0xf3   : > { %653 = vst [vmem:[%s264_s12 + $0x8] sm:$0xff] %v641_v34   ;;  %655 = vst [vmem:[%s264_s12 + $0x18] sm:$0xff] %v651_v35  }
  0xf4   : > { %637 = vst [vmem:[%s264_s12] sm:$0xff] %v636_v36   ;;  %654 = vst [vmem:[%s264_s12 + $0x10] sm:$0xff] %v646_v37  }
  0xf5 PF: > { %s14_s17 = sadd.s32 1, %s742_s17   ;;  %s836_s15 = smov %s738_s16 }
  0xf6   : > { %p11_p5 = scmp.ge.s32.totalorder %s14_s17, 4   ;;  %s837_s16 = smov %s839_s18 }
  0xf8   :  { %13 = sbr.rel (!%p11_p5) target bundleno = 2 (0x2), region = 75 }

// kernel: _lambda_.7
= control target key start
LH: loop header
LB: loop body
LE: loop exit
PB: predicated region body
PF: predicated region fallthrough
CT: control target
= control target key end

     0   :  { %s816_s15 = smov 0   ;;  %s818_s16 = smov 0   ;;  %s892_s0 = inlined_call_operand.vmem [shape: bf16[128,128], index: 0, kind: input, shape index: {}]   ;;  %s893_s1 = inlined_call_operand.vmem [shape: bf16[128,128], index: 1, kind: input, shape index: {}]   ;;  %s894_s2 = inlined_call_operand.vmem [shape: f32[1,128], index: 2, kind: input, shape index: {}]   ;;  %s895_s3 = inlined_call_operand.vmem [shape: f32[1,128], index: 3, kind: input, shape index: {}]   ;;  %s896_s4 = inlined_call_operand.vmem [shape: bf16[128,128], index: 4, kind: output, shape index: {}]  }
   0x1   :  { %s820_s17 = smov 0  }
   0x2 LB: > { %s26_s18 = sadd.s32 1, %s785_s16  ;;  %p619_p0 = scmp.ge.s32.totalorder %s789_s17, 1  ;;  %s789_s17 = sphi %s820_s17, %s14_s17   ;;  %s785_s16 = sphi %s818_s16, %s898_s16   ;;  %s781_s15 = sphi %s816_s15, %s897_s15  }
   0x3   : > { %p28_p1 = scmp.ge.s32.totalorder %s26_s18, 2  ;;  %p202_p2 = scmp.lt.s32.totalorder %s789_s17, 3 }
   0x5   : > { %s900_s18 = smov (%p28_p1, %s26_s18), 0  ;;  %p203_p3 = pnand %p619_p0, %p202_p2 }
   0x6   : > { %v755_v0 = vld [vmem:[%s893_s1] sm:$0xff] (!%p203_p3)   ;;  %s620_s21 = sshll.u32 (!%p203_p3), %s781_s15, 3  ;;  %v756_v1 = vld [vmem:[%s893_s1 + $0x8] sm:$0xff] (!%p203_p3)   ;;  %v757_v2 = vld [vmem:[%s893_s1 + $0x10] sm:$0xff] (!%p203_p3)  }
   0x7   : > { %206 = sbr.rel (%p203_p3) target bundleno = 261 (0x105), region = 36  ;;  %p242_p4 = scmp.lt.s32.totalorder (!%p203_p3), %s620_s21, 15  ;;  %691 = vmatprep.subr.bf16.mxu0 (!%p203_p3), %v755_v0  ;;  %715 = vmatprep.subr.bf16.mxu1 (!%p203_p3), %v755_v0  ;;  %v758_v3 = vld [vmem:[%s893_s1 + $0x18] sm:$0xff] (!%p203_p3)   ;;  %v759_v6 = vld [vmem:[%s893_s1 + $0x20] sm:$0xff] (!%p203_p3)   ;;  %v760_v7 = vld [vmem:[%s893_s1 + $0x28] sm:$0xff] (!%p203_p3)  }
   0x8   : > { %692 = vmatpush3.bf16.msra.mxu0 (!%p203_p3), %v755_v0  ;;  %723 = vmatpush3.bf16.msra.mxu1 (!%p203_p3), %v755_v0  ;;  %v761_v8 = vld [vmem:[%s893_s1 + $0x30] sm:$0xff] (!%p203_p3)   ;;  %v762_v9 = vld [vmem:[%s893_s1 + $0x38] sm:$0xff] (!%p203_p3)   ;;  %v636_v12 = vld [vmem:[%s894_s2] ss:$0 sm:$0xff] (!%p203_p3) }
   0x9   : > { %693 = vmatprep.subr.bf16.mxu0 (!%p203_p3), %v756_v1  ;;  %716 = vmatprep.subr.bf16.mxu1 (!%p203_p3), %v756_v1  ;;  %v637_v19 = vld [vmem:[%s895_s3] ss:$0 sm:$0xff] (!%p203_p3) }
   0xc   : > { %694 = vmatpush3.bf16.msra.mxu0 (!%p203_p3), %v756_v1  ;;  %724 = vmatpush3.bf16.msra.mxu1 (!%p203_p3), %v756_v1 }
   0xd   : > { %695 = vmatprep.subr.bf16.mxu0 (!%p203_p3), %v757_v2  ;;  %717 = vmatprep.subr.bf16.mxu1 (!%p203_p3), %v757_v2 }
   0xe   : > { %s902_s21 = smov (!%p242_p4, %s620_s21), 15 }
   0xf   : > { %s621_s26 = sshll.u32 %s902_s21, 2 }
  0x10   : > { %s851_s29 = scalar_lea.vmem %s892_s0, %s621_s26  ;;  %696 = vmatpush3.bf16.msra.mxu0 %v757_v2  ;;  %725 = vmatpush3.bf16.msra.mxu1 %v757_v2  ;;  %s264_s24 = scalar_lea.vmem %s896_s4, %s621_s26 }
  0x11   : > { %v763_v4 = vld [vmem:[%s851_s29] sm:$0xff]   ;;  %v764_v5 = vld [vmem:[%s851_s29 + $0x10] sm:$0xff]   ;;  %697 = vmatprep.subr.bf16.mxu0 %v758_v3  ;;  %718 = vmatprep.subr.bf16.mxu1 %v758_v3  ;;  %v765_v10 = vld [vmem:[%s851_s29 + $0x8] sm:$0xff]  }
  0x12   : > { %707 = vmatprep.mubr.bf16.mxu0 %v763_v4  ;;  %711 = vmatprep.mubr.bf16.mxu1 %v764_v5  ;;  %v766_v11 = vld [vmem:[%s851_s29 + $0x18] sm:$0xff]  }
  0x14   : > { %698 = vmatpush3.bf16.msra.mxu0 %v758_v3  ;;  %726 = vmatpush3.bf16.msra.mxu1 %v758_v3 }
  0x15   : > { %699 = vmatprep.subr.bf16.mxu0 %v759_v6  ;;  %719 = vmatprep.subr.bf16.mxu1 %v759_v6 }
  0x18   : > { %700 = vmatpush3.bf16.msra.mxu0 %v759_v6  ;;  %727 = vmatpush3.bf16.msra.mxu1 %v759_v6 }
  0x19   : > { %701 = vmatprep.subr.bf16.mxu0 %v760_v7  ;;  %720 = vmatprep.subr.bf16.mxu1 %v760_v7 }
  0x1c   : > { %702 = vmatpush3.bf16.msra.mxu0 %v760_v7  ;;  %728 = vmatpush3.bf16.msra.mxu1 %v760_v7 }
  0x1d   : > { %703 = vmatprep.subr.bf16.mxu0 %v761_v8  ;;  %721 = vmatprep.subr.bf16.mxu1 %v761_v8 }
  0x20   : > { %704 = vmatpush3.bf16.msra.mxu0 %v761_v8  ;;  %729 = vmatpush3.bf16.msra.mxu1 %v761_v8 }
  0x21   : > { %705 = vmatprep.subr.bf16.mxu0 %v762_v9  ;;  %722 = vmatprep.subr.bf16.mxu1 %v762_v9 }
  0x24   : > { %706 = vmatpush3.bf16.msra.mxu0 %v762_v9  ;;  %730 = vmatpush3.bf16.msra.mxu1 %v762_v9 }
  0x27   : > { %708 = vmatmul.mubr.bf16.vlgmr.msra.gmra.mrb[0].mxu0 %v765_v10  ;;  %712 = vmatmul.mubr.bf16.vlgmr.msra.gmra.mrb[0].mxu1 %v766_v11 }
  0xfa   : > { %v709_v13 = vpop.f32.mrb[0].mxu0  ;;  %v713_v14 = vpop.f32.mrb[0].mxu1 }
  0xfb   : > { %v437_v15 = vmul.f32 %v709_v13, %v636_v12  ;;  %v441_v16 = vmul.f32 %v713_v14, %v636_v12  ;;  %v397_v17 = vpop.f32.mrb[1].mxu0  ;;  %v413_v18 = vpop.f32.mrb[1].mxu1 }
  0xfc   : > { %v435_v20 = vmul.f32 %v636_v12, %v397_v17  ;;  %v439_v21 = vmul.f32 %v636_v12, %v413_v18  ;;  %v710_v22 = vpop.f32.mrb[2].mxu0  ;;  %v714_v23 = vpop.f32.mrb[2].mxu1 }
  0xfd   : > { %v438_v24 = vmul.f32 %v710_v22, %v636_v12  ;;  %v442_v25 = vmul.f32 %v714_v23, %v636_v12  ;;  %v400_v26 = vpop.f32.mrb[3].mxu0  ;;  %v416_v27 = vpop.f32.mrb[3].mxu1  ;;  %v452_v30 = vadd.f32 %v637_v19, %v437_v15  ;;  %v456_v31 = vadd.f32 %v637_v19, %v441_v16 }
  0xfe   : > { %v436_v28 = vmul.f32 %v636_v12, %v400_v26  ;;  %v440_v29 = vmul.f32 %v636_v12, %v416_v27  ;;  %v450_v34 = vadd.f32 %v637_v19, %v435_v20  ;;  %v454_v35 = vadd.f32 %v637_v19, %v439_v21 }
  0xff   : > { %v453_v32 = vadd.f32 %v637_v19, %v438_v24  ;;  %v457_v33 = vadd.f32 %v637_v19, %v442_v25 }
 0x100   : > { %v451_v36 = vadd.f32 %v637_v19, %v436_v28  ;;  %v455_v37 = vadd.f32 %v637_v19, %v440_v29 }
 0x101   : > { %v664_v38 = vpack.c.bf16 %v453_v32, %v452_v30  ;;  %v674_v39 = vpack.c.bf16 %v457_v33, %v456_v31 }
 0x102   : > { %v659_v40 = vpack.c.bf16 %v451_v36, %v450_v34  ;;  %v669_v41 = vpack.c.bf16 %v455_v37, %v454_v35 }
 0x103   : > { %676 = vst [vmem:[%s264_s24 + $0x8] sm:$0xff] %v664_v38   ;;  %678 = vst [vmem:[%s264_s24 + $0x18] sm:$0xff] %v674_v39  }
 0x104   : > { %660 = vst [vmem:[%s264_s24] sm:$0xff] %v659_v40   ;;  %677 = vst [vmem:[%s264_s24 + $0x10] sm:$0xff] %v669_v41  }
 0x105 PF: > { %s14_s17 = sadd.s32 1, %s789_s17   ;;  %s897_s15 = smov %s785_s16 }
 0x106   : > { %p11_p5 = scmp.ge.s32.totalorder %s14_s17, 4   ;;  %s898_s16 = smov %s900_s18 }
 0x108   :  { %13 = sbr.rel (!%p11_p5) target bundleno = 2 (0x2), region = 75 }

// kernel: _lambda_.9
= control target key start
LH: loop header
LB: loop body
LE: loop exit
PB: predicated region body
PF: predicated region fallthrough
CT: control target
= control target key end

     0   :  { %10 = vsyncpa [#allocation5], 0  ;;  %s1899_s18 = smov 0   ;;  %s2358_s0 = inlined_call_operand.vmem [shape: bf16[2,8,8,128], index: 0, kind: input, shape index: {}]   ;;  %s2359_s1 = inlined_call_operand.vmem [shape: bf16[2,8,8,128], index: 1, kind: input, shape index: {}]   ;;  %s2360_s2 = inlined_call_operand.vmem [shape: bf16[128,8], index: 2, kind: input, shape index: {}]   ;;  %s2361_s3 = inlined_call_operand.vmem [shape: bf16[8,128], index: 3, kind: input, shape index: {}]   ;;  %s2362_s4 = inlined_call_operand.vmem [shape: f32[98], index: 4, kind: input, shape index: {}]   ;;  %s2363_s5 = inlined_call_operand.vmem [shape: bf16[2,8,8,128], index: 5, kind: output, shape index: {}]  }
   0x1 LB: > { %s1905_s19 = sadd.s32 4294967295, %s1858_s18   ;;  %p1589_p0 = scmp.ge.s32.totalorder %s1858_s18, 1  ;;  %s1858_s18 = sphi %s1899_s18, %s16_s18  }
   0x2   : > { %p162_p1 = scmp.lt.s32.totalorder %s1858_s18, 3  ;;  %s181_s22 = sshll.u32 %s2362_s4, 4  ;;  %s182_s22 = int_to_ptr.vmem [resolvable:$true] %s181_s22 }
   0x3   : > { %p1798_p3 = scmp.eq.s32.totalorder %s1905_s19, 0  ;;  %s1833_s24 = scalar_lea.vmem %s182_s22, 16 }
   0x4   : > { %p1912_p2 = pnand %p1589_p0, %p162_p1  ;;  %p1834_p6 = scmp.ne.s32.totalorder %s182_s22, %s1833_s24 }
   0x5   : > { %p1841_p10 = scmp.lt.s32.totalorder %s182_s22, %s182_s22  ;;  %p1842_p11 = scmp.lt.s32.totalorder %s1833_s24, %s1833_s24 }
   0x6   : > { %p1794_p4 = pneg %p1912_p2 }
   0x7   : > { %p1843_p12 = por %p1842_p11, %p1841_p10 }
   0x8   : > { %p1795_p5 = pnand %p1798_p3, %p1794_p4 }
   0xa   : > { %p1835_p7 = pneg %p1795_p5 }
   0xc   : > { %p1836_p8 = pnand %p1835_p7, %p1834_p6 }
   0xe   : > { %p1837_p9 = pneg %p1836_p8 }
  0x10   : > { %p1844_p13 = pnand %p1843_p12, %p1837_p9 }
  0x12   : > { %1847 = shalt.err (!%p1844_p13)
}
  0x13   : > { %s1860_s25 = smov [#allocation4]   ;;  %210 = sbr.rel (%p1912_p2) target bundleno = 1197 (0x4ad), region = 40 }
  0x14   : > { %1797 = dma.vmem_to_smem (!%p1795_p5), %s182_s22, 16, %s1860_s25, [#allocation5]  }
  0x1a   : > { %1853 = dma.done.wait (%p1798_p3), [#allocation5], 16  }
  0x1b   : > { %1855 = vsyncadd (%p1798_p3), [#allocation5], 4294967280 }
  0x1c   : > { %216 = sfence }
  0x1d   : > { %v1817_v0 = vld [vmem:[%s2360_s2] sm:$0xff]   ;;  %v1861_v1 = vmov 0.0   ;;  %v1818_v2 = vld [vmem:[%s2360_s2 + $0x8] sm:$0xff]   ;;  %vm1862_vm0 = vmmov 0   ;;  %p244_p0 = scmp.lt.s32.totalorder %s1905_s19, 1  ;;  %v1819_v3 = vld [vmem:[%s2360_s2 + $0x10] sm:$0xff]  }
  0x1e   : > { %1764 = vmatprep.subr.bf16.mxu0 %v1861_v1  ;;  %1784 = vmatprep.subr.bf16.mxu1 %v1861_v1  ;;  %v1820_v13 = vld [vmem:[%s2360_s2 + $0x18] sm:$0xff]   ;;  %v1821_v27 = vld [vmem:[%s2360_s2 + $0x20] sm:$0xff]   ;;  %v1822_v33 = vld [vmem:[%s2360_s2 + $0x28] sm:$0xff]   ;;  %vm303_vm1 = vcmask 1040384   ;;  %vm417_vm2 = vcmask 1043456   ;;  %vm413_vm3 = vcmask 64512  }
  0x1f   : > { %1765 = vmatpush3.bf16.msra.mxu0 %v1817_v0  ;;  %1780 = vmatprep.mubr.msk.bf16.mxu0 %vm1862_vm0, %v1861_v1  ;;  %s2366_s19 = smov (!%p244_p0, %s1905_s19), 1  ;;  %v1823_v38 = vld [vmem:[%s2360_s2 + $0x30] sm:$0xff]   ;;  %v1824_v42 = vld [vmem:[%s2360_s2 + $0x38] sm:$0xff]   ;;  %v412_v54 = vld [vmem:[%s2361_s3] sm:$0xf]  ;;  %vm534_vm4 = vcmask 113664  }
  0x20   : > { %1766 = vmatprep.subr.bf16.mxu0 %v1861_v1  ;;  %1786 = vmatprep.mubr.msk.bf16.mxu1 %vm1862_vm0, %v1861_v1  ;;  %s1943_s7 = sshll.u32 %s2366_s19, 5  ;;  %v419_v55 = vsel %vm417_vm2, %v412_v54, 0  ;;  %vm536_vm5 = vcmask 111616   ;;  %535 = vst.msk [vmem:[#allocation2] sm:$0xff] %vm534_vm4, %v1861_v1  ;;  %538 = vst.msk [vmem:[#allocation3] sm:$0xff] %vm534_vm4, %v1861_v1  ;;  %vm583_vm6 = vcmask 1041409  }
  0x21   : > { %s248_s10 = scalar_lea.vmem %s2358_s0, %s1943_s7  ;;  %1785 = vmatpush3.bf16.msra.mxu1 %v419_v55  ;;  %537 = vst.msk [vmem:[#allocation2 + $0x8] sm:$0x3f] %vm536_vm5, %v1861_v1  ;;  %539 = vst.msk [vmem:[#allocation3 + $0x8] sm:$0x3f] %vm536_vm5, %v1861_v1  ;;  %vm585_vm7 = vcmask 1042434   ;;  %vm587_vm8 = vcmask 1043459  }
  0x22   : > { %v1950_v4 = vld [vmem:[%s248_s10] sm:$0xf]  ;;  %v1952_v5 = vld [vmem:[%s248_s10 + $0x4] sm:$0xf]  ;;  %v1954_v6 = vld [vmem:[%s248_s10 + $0x8] sm:$0xf] }
  0x23   : > { %1767 = vmatpush3.bf16.msra.mxu0 %v1818_v2  ;;  %v1956_v7 = vld [vmem:[%s248_s10 + $0xc] sm:$0xf]  ;;  %v1958_v8 = vld [vmem:[%s248_s10 + $0x10] sm:$0xf]  ;;  %v1960_v9 = vld [vmem:[%s248_s10 + $0x14] sm:$0xf]  ;;  %v268_v10 = vunpack.c.l.bf16 %v1950_v4  ;;  %v269_v11 = vunpack.c.l.bf16 %v1952_v5  ;;  %v270_v12 = vunpack.c.l.bf16 %v1954_v6 }
  0x24   : > { %1768 = vmatprep.subr.bf16.mxu0 %v1861_v1  ;;  %v1968_v14 = vld [vmem:[%s248_s10 + $0x18] sm:$0xf]  ;;  %v1970_v15 = vld [vmem:[%s248_s10 + $0x1c] sm:$0xf]  ;;  %v272_v16 = vunpack.c.l.bf16 %v1958_v8  ;;  %v273_v17 = vunpack.c.l.bf16 %v1960_v9  ;;  %v271_v18 = vunpack.c.l.bf16 %v1956_v7  ;;  %vm589_vm9 = vcmask 1044484   ;;  %s1610_s24 = sld [smem:[#allocation4 + $0x1]] }
  0x25   : > { %v274_v19 = vunpack.c.l.bf16 %v1968_v14  ;;  %v275_v20 = vunpack.c.l.bf16 %v1970_v15  ;;  %v276_v21 = vadd.f32 %v269_v11, %v268_v10  ;;  %vm591_vm10 = vcmask 1045509   ;;  %s1614_s25 = sld [smem:[#allocation4 + $0x3]]  ;;  %s650_s26 = sld [smem:[#allocation4]] }
  0x26   : > { %v290_v22 = vmax.f32 %v268_v10, %v272_v16  ;;  %v291_v23 = vmax.f32 %v269_v11, %v273_v17  ;;  %vm593_vm11 = vcmask 1046534   ;;  %vm595_vm12 = vcmask 1047559   ;;  %s1609_s27 = sld [smem:[#allocation4 + $0x31]]  ;;  %s1611_s28 = sld [smem:[#allocation4 + $0x32]] }
  0x27   : > { %1769 = vmatpush3.bf16.msra.mxu0 %v1819_v3  ;;  %v277_v24 = vadd.f32 %v276_v21, %v270_v12  ;;  %v292_v25 = vmax.f32 %v270_v12, %v274_v19  ;;  %v293_v26 = vmax.f32 %v271_v18, %v275_v20  ;;  %vm598_vm13 = vcmask 89112   ;;  %s1616_s29 = sld [smem:[#allocation4 + $0x4]]  ;;  %s1612_s30 = sld [smem:[#allocation4 + $0x2]] }
  0x28   : > { %1770 = vmatprep.subr.bf16.mxu0 %v1861_v1  ;;  %v294_v28 = vmax.f32 %v290_v22, %v291_v23  ;;  %s1618_s6 = sld [smem:[#allocation4 + $0x5]]  ;;  %s1863_s8 = smov 127  }
  0x29   : > { %v278_v29 = vadd.f32 %v277_v24, %v271_v18  ;;  %v295_v30 = vmax.f32 %v292_v25, %v293_v26  ;;  %s1613_s9 = sld [smem:[#allocation4 + $0x33]]  ;;  %s1620_s10 = sld [smem:[#allocation4 + $0x6]] }
  0x2a   : > { %s1864_s11 = smov 125   ;;  %s1615_s12 = sld [smem:[#allocation4 + $0x34]] }
  0x2b   : > { %1771 = vmatpush3.bf16.msra.mxu0 %v1820_v13  ;;  %v279_v31 = vadd.f32 %v278_v29, %v272_v16  ;;  %v296_v32 = vmax.f32 %v294_v28, %v295_v30  ;;  %s1624_s13 = sld [smem:[#allocation4 + $0x8]]  ;;  %s1865_s14 = smov 124  }
  0x2c   : > { %1772 = vmatprep.subr.bf16.mxu0 %v1861_v1  ;;  %s1617_s15 = sld [smem:[#allocation4 + $0x35]]  ;;  %s1866_s16 = smov 126  }
  0x2d   : > { %v280_v34 = vadd.f32 %v279_v31, %v273_v17  ;;  %v297_v35 = vrot.slane %v296_v32, 4  ;;  %v474_v17 = vlaneseq  ;;  %s1626_s17 = sld [smem:[#allocation4 + $0x9]]  ;;  %s1867_s19 = smov 123  }
  0x2e   : > { %s1619_s20 = sld [smem:[#allocation4 + $0x36]]  ;;  %s1628_s21 = sld [smem:[#allocation4 + $0xa]] }
  0x2f   : > { %1773 = vmatpush3.bf16.msra.mxu0 %v1821_v27  ;;  %v281_v36 = vadd.f32 %v280_v34, %v274_v19  ;;  %v298_v37 = vmax.f32 %v296_v32, %v297_v35  ;;  %v1997_v18 = vshrl.u32 %v474_v17, 7  ;;  %s1868_s22 = smov 122   ;;  %s1621_s23 = sld [smem:[#allocation4 + $0x37]] }
  0x30   : > { %1774 = vmatprep.subr.bf16.mxu0 %v1861_v1 }
  0x31   : > { %v282_v39 = vadd.f32 %v281_v36, %v275_v20  ;;  %v299_v40 = vrot.slane %v298_v37, 2  ;;  %v476_v21 = vsub.s32 0, %v1997_v18 }
  0x33   : > { %1775 = vmatpush3.bf16.msra.mxu0 %v1822_v33  ;;  %v283_v41 = vrot.slane %v282_v39, 4  ;;  %v300_v44 = vmax.f32 %v298_v37, %v299_v40 }
  0x34   : > { %1776 = vmatprep.subr.bf16.mxu0 %v1861_v1 }
  0x35   : > { %v284_v43 = vadd.f32 %v283_v41, %v282_v39  ;;  %v301_v47 = vrot.slane %v300_v44, 1 }
  0x37   : > { %1777 = vmatpush3.bf16.msra.mxu0 %v1823_v38  ;;  %v285_v45 = vrot.slane %v284_v43, 2  ;;  %v302_v50 = vmax.f32 %v300_v44, %v301_v47 }
  0x38   : > { %1778 = vmatprep.subr.bf16.mxu0 %v1861_v1 }
  0x39   : > { %v286_v46 = vadd.f32 %v285_v45, %v284_v43 }
  0x3b   : > { %1779 = vmatpush3.bf16.msra.mxu0 %v1824_v42  ;;  %v287_v48 = vrot.slane %v286_v46, 1 }
  0x3d   : > { %v288_v49 = vadd.f32 %v287_v48, %v286_v46 }
  0x3f   : > { %v289_v51 = vmul.f32 0.015625, %v288_v49 }
  0x41   : > { %v304_v52 = vsel %vm303_vm1, %v289_v51, %v302_v50 }
  0x42   : > { %v305_v53 = vpack.c.bf16 %v304_v52, %v304_v52 }
  0x44   : > { %1781 = vmatmul.mubr.bf16.vlgmr.msra.gmra.mrb[0].mxu0 %v305_v53 }
 0x117   : > { %v404_v56 = vpop.f32.mrb[0].mxu0 }
 0x118   : > { %v410_v57 = vmax.f32 %v404_v56, 0.0  ;;  %v1782_v58 = vpop.f32.mrb[1].mxu0 }
 0x119   : > { %v407_v59 = vpop.f32.mrb[2].mxu0 }
 0x11a   : > { %v411_v60 = vpack.c.bf16 %v410_v57, %v410_v57  ;;  %v1783_v61 = vpop.f32.mrb[3].mxu0 }
 0x11c   : > { %1787 = vmatmul.mubr.msk.bf16.vlgmr.msra.gmra.mrb[0].mxu1 %vm413_vm3, %v411_v60 }
 0x1ef   : > { %v455_v62 = vpop.f32.mrb[0].mxu1 }
 0x1f0   : > { %v462_v63 = vrot.slane %v455_v62, 1  ;;  %v1788_v0 = vpop.f32.mrb[1].mxu1 }
 0x1f1   : > { %v458_v2 = vpop.f32.mrb[2].mxu1 }
 0x1f2   : > { %v464_v3 = vadd.f32 %v462_v63, %v455_v62  ;;  %v1789_v10 = vpop.f32.mrb[3].mxu1 }
 0x1f4   : > { %v465_v11 = vsub.f32 0.0, %v464_v3 }
 0x1f6   : > { %v466_v12 = vmul.f32 1.442695, %v465_v11 }
 0x1f8   : > { %1825 = vpow2.f32 %v466_v12 }
 0x202   : > { %v1826_v13 = vpop.eup %1825 }
 0x203   : > { %v468_v16 = vadd.f32 1.0, %v1826_v13 }
 0x205   : > { %1827 = vrcp.f32 %v468_v16 }
 0x20f   : > { %v1828_v19 = vpop.eup %1827 }
 0x210   : > { %v470_v20 = vpack.c.bf16 %v1828_v19, %v1828_v19 }
 0x212   : > { %v472_v22 = vpack.i.b16 %v470_v20, %v470_v20 }
 0x214   : > { %v477_v23 = vrot.slane %v472_v22, %v476_v21 }
 0x216   : > { %v480_v24 = vmul.bf16 %v477_v23, %v1954_v6  ;;  %v478_v25 = vmul.bf16 %v477_v23, %v1950_v4  ;;  %v481_v28 = vmul.bf16 %v477_v23, %v1956_v7  ;;  %v479_v29 = vmul.bf16 %v477_v23, %v1952_v5 }
 0x217   : > { %v483_v6 = vmul.bf16 %v477_v23, %v1960_v9  ;;  %v482_v4 = vmul.bf16 %v477_v23, %v1958_v8  ;;  %v484_v5 = vmul.bf16 %v477_v23, %v1968_v14  ;;  %v485_v8 = vmul.bf16 %v477_v23, %v1970_v15 }
 0x218   : > { %v2004_v26 = vunpack.c.l.bf16 %v480_v24  ;;  %v2006_v27 = vunpack.c.l.bf16 %v478_v25  ;;  %v2012_v30 = vunpack.c.l.bf16 %v481_v28  ;;  %v2014_v31 = vunpack.c.l.bf16 %v479_v29 }
 0x219   : > { %v2020_v32 = vunpack.c.l.bf16 %v483_v6  ;;  %v2022_v7 = vunpack.c.l.bf16 %v482_v4  ;;  %v2029_v9 = vunpack.c.l.bf16 %v484_v5  ;;  %v2034_v33 = vunpack.c.l.bf16 %v485_v8 }
 0x21a   : > { %498 = vadd.xlane.f32.xlu1 %v2004_v26  ;;  %494 = vadd.xlane.f32.xlu0 %v2006_v27  ;;  %v549_v14 = vand.u32 127, %v474_v17 }
 0x21c   : > { %v550_v35 = vadd.s32 4294967293, %v549_v14 }
 0x21e   : > { %500 = vadd.xlane.f32.xlu1 %v2012_v30  ;;  %496 = vadd.xlane.f32.xlu0 %v2014_v31  ;;  %v2047_v38 = vsub.s32 %v550_v35, %v1997_v18 }
 0x222   : > { %504 = vadd.xlane.f32.xlu1 %v2020_v32  ;;  %502 = vadd.xlane.f32.xlu0 %v2022_v7 }
 0x226   : > { %520 = vmax.xlane.f32.xlu1 %v2014_v31  ;;  %518 = vmax.xlane.f32.xlu0 %v2006_v27 }
 0x22a   : > { %522 = vmax.xlane.f32.xlu1 %v2004_v26  ;;  %506 = vadd.xlane.f32.xlu0 %v2029_v9 }
 0x22e   : > { %524 = vmax.xlane.f32.xlu1 %v2012_v30  ;;  %508 = vadd.xlane.f32.xlu0 %v2034_v33 }
 0x232   : > { %528 = vmax.xlane.f32.xlu1 %v2020_v32  ;;  %526 = vmax.xlane.f32.xlu0 %v2022_v7 }
 0x236   : > { %532 = vmax.xlane.f32.xlu1 %v2034_v33  ;;  %530 = vmax.xlane.f32.xlu0 %v2029_v9 }
 0x2a7   : > { %v499_v15 = vpop.xlane.xlu1 %498  ;;  %v495_v34 = vpop.xlane.xlu0 %494 }
 0x2a8   : > { %v510_v39 = vmul.f32 0.0078125, %v495_v34  ;;  %v512_v42 = vmul.f32 0.0078125, %v499_v15  ;;  %v660_v34 = vstv %s1610_s24  ;;  %s1630_s24 = sld [smem:[#allocation4 + $0xb]] }
 0x2aa   : > { %v554_v45 = vrot.slane %v510_v39, %v2047_v38  ;;  %v562_v47 = vrot.slane %v512_v42, %v2047_v38  ;;  %v692_v39 = vstv %s1614_s25  ;;  %v668_v42 = vstv %s1611_s28  ;;  %s1625_s25 = sld [smem:[#allocation4 + $0x39]]  ;;  %s1634_s28 = sld [smem:[#allocation4 + $0xd]] }
 0x2ab   : > { %v501_v36 = vpop.xlane.xlu1 %500  ;;  %v497_v37 = vpop.xlane.xlu0 %496 }
 0x2ac   : > { %v511_v40 = vmul.f32 0.0078125, %v497_v37  ;;  %v513_v1 = vmul.f32 0.0078125, %v501_v36 }
 0x2ae   : > { %v558_v41 = vrot.slane %v511_v40, %v2047_v38  ;;  %v566_v52 = vrot.slane %v513_v1, %v2047_v38  ;;  %v656_v40 = vstv %s1609_s27  ;;  %s1627_s27 = sld [smem:[#allocation4 + $0x3a]] }
 0x2af   : > { %v505_v43 = vpop.xlane.xlu1 %504  ;;  %v503_v44 = vpop.xlane.xlu0 %502 }
 0x2b0   : > { %v584_v46 = vsel %vm583_vm6, %v558_v41, %v554_v45  ;;  %v514_v48 = vmul.f32 0.0078125, %v503_v44  ;;  %v515_v53 = vmul.f32 0.0078125, %v505_v43  ;;  %v708_v43 = vstv %s1616_s29  ;;  %s1629_s29 = sld [smem:[#allocation4 + $0x3b]] }
 0x2b1   : > { %v586_v51 = vsel %vm585_vm7, %v562_v47, %v584_v46 }
 0x2b2   : > { %v570_v54 = vrot.slane %v514_v48, %v2047_v38  ;;  %v588_v57 = vsel %vm587_vm8, %v566_v52, %v586_v51  ;;  %v574_v59 = vrot.slane %v515_v53, %v2047_v38  ;;  %v676_v48 = vstv %s1612_s30  ;;  %s1638_s30 = sld [smem:[#allocation4 + $0xf]] }
 0x2b3   : > { %v521_v49 = vpop.xlane.xlu1 %520  ;;  %v519_v50 = vpop.xlane.xlu0 %518  ;;  %v684_v53 = vstv %s1613_s9  ;;  %s1640_s9 = sld [smem:[#allocation4 + $0x10]] }
 0x2b4   : > { %v615_v60 = vrot.slane %v521_v49, %v2047_v38  ;;  %v611_v61 = vrot.slane %v519_v50, %v2047_v38  ;;  %v590_v62 = vsel %vm589_vm9, %v570_v54, %v588_v57  ;;  %v724_v50 = vstv %s1618_s6  ;;  %s1631_s6 = sld [smem:[#allocation4 + $0x3c]] }
 0x2b5   : > { %v592_v12 = vsel %vm591_vm10, %v574_v59, %v590_v62  ;;  %v740_v54 = vstv %s1620_s10  ;;  %v700_v57 = vstv %s1615_s12  ;;  %v766_v59 = vstv %s1624_s13  ;;  %s1633_s10 = sld [smem:[#allocation4 + $0x3d]]  ;;  %s1642_s12 = sld [smem:[#allocation4 + $0x11]] }
 0x2b6   : > { %v640_v16 = vsel %vm583_vm6, %v615_v60, %v611_v61  ;;  %v716_v62 = vstv %s1617_s15  ;;  %s1635_s13 = sld [smem:[#allocation4 + $0x3e]]  ;;  %s1644_s15 = sld [smem:[#allocation4 + $0x12]] }
 0x2b7   : > { %v523_v55 = vpop.xlane.xlu1 %522  ;;  %v507_v56 = vpop.xlane.xlu0 %506 }
 0x2b8   : > { %v516_v58 = vmul.f32 0.0078125, %v507_v56  ;;  %v619_v3 = vrot.slane %v523_v55, %v2047_v38 }
 0x2ba   : > { %v578_v63 = vrot.slane %v516_v58, %v2047_v38  ;;  %v641_v22 = vsel %vm585_vm7, %v619_v3, %v640_v16  ;;  %v732_v3 = vstv %s1619_s20  ;;  %v814_v16 = vstv %s1630_s24  ;;  %s1646_s20 = sld [smem:[#allocation4 + $0x13]]  ;;  %s1643_s24 = sld [smem:[#allocation4 + $0x42]] }
 0x2bb   : > { %v525_v0 = vpop.xlane.xlu1 %524  ;;  %v509_v2 = vpop.xlane.xlu0 %508 }
 0x2bc   : > { %v517_v10 = vmul.f32 0.0078125, %v509_v2  ;;  %v623_v11 = vrot.slane %v525_v0, %v2047_v38  ;;  %v594_v17 = vsel %vm593_vm11, %v578_v63, %v592_v12  ;;  %v782_v63 = vstv %s1626_s17  ;;  %s1639_s17 = sld [smem:[#allocation4 + $0x40]] }
 0x2be   : > { %v582_v13 = vrot.slane %v517_v10, %v2047_v38  ;;  %v642_v25 = vsel %vm587_vm8, %v623_v11, %v641_v22  ;;  %v798_v10 = vstv %s1628_s21  ;;  %v774_v22 = vstv %s1625_s25  ;;  %s1641_s21 = sld [smem:[#allocation4 + $0x41]]  ;;  %s1652_s25 = sld [smem:[#allocation4 + $0x16]] }
 0x2bf   : > { %v529_v19 = vpop.xlane.xlu1 %528  ;;  %v527_v20 = vpop.xlane.xlu0 %526 }
 0x2c0   : > { %v596_v23 = vsel %vm595_vm12, %v582_v13, %v594_v17  ;;  %v627_v24 = vrot.slane %v527_v20, %v2047_v38  ;;  %v631_v28 = vrot.slane %v529_v19, %v2047_v38  ;;  %v748_v13 = vstv %s1621_s23  ;;  %s1648_s23 = sld [smem:[#allocation4 + $0x14]] }
 0x2c1   : > { %599 = vst.msk [vmem:[#allocation2 + $0x3] sm:$0xff] %vm598_vm13, %v596_v23 }
 0x2c2   : > { %v643_v29 = vsel %vm589_vm9, %v627_v24, %v642_v25 }
 0x2c3   : > { %v533_v6 = vpop.xlane.xlu1 %532  ;;  %v531_v4 = vpop.xlane.xlu0 %530  ;;  %v644_v14 = vsel %vm591_vm10, %v631_v28, %v643_v29  ;;  %v790_v28 = vstv %s1627_s27  ;;  %v846_v29 = vstv %s1634_s28  ;;  %s1654_s27 = sld [smem:[#allocation4 + $0x17]]  ;;  %s1647_s28 = sld [smem:[#allocation4 + $0x44]] }
 0x2c4   : > { %v639_v5 = vrot.slane %v533_v6, %v2047_v38  ;;  %v635_v8 = vrot.slane %v531_v4, %v2047_v38  ;;  %v651_v38 = vstv %s650_s26  ;;  %s1632_s26 = sld [smem:[#allocation4 + $0xc]] }
 0x2c6   : > { %v645_v15 = vsel %vm593_vm11, %v635_v8, %v644_v14  ;;  %v872_v14 = vstv %s1638_s30  ;;  %s1649_s30 = sld [smem:[#allocation4 + $0x45]] }
 0x2c7   : > { %v646_v35 = vsel %vm595_vm12, %v639_v5, %v645_v15  ;;  %v806_v5 = vstv %s1629_s29  ;;  %s1656_s29 = sld [smem:[#allocation4 + $0x18]] }
 0x2c8   : > { %v649_v36 = vld [vmem:[#allocation2] sm:$0xff]  ;;  %648 = vst.msk [vmem:[#allocation3 + $0x3] sm:$0xff] %vm598_vm13, %v646_v35  ;;  %v822_v35 = vstv %s1631_s6  ;;  %s1658_s6 = sld [smem:[#allocation4 + $0x19]] }
 0x2c9   : > { %v661_v37 = vmul.f32 %v660_v34, %v649_v36  ;;  %v693_v41 = vmul.f32 %v692_v39, %v649_v36  ;;  %v652_v45 = vmul.f32 %v651_v38, %v649_v36  ;;  %v709_v47 = vmul.f32 %v708_v43, %v649_v36  ;;  %v2090_v58 = vld [vmem:[#allocation2 + $0x1] sm:$0xff] }
 0x2ca   : > { %v677_v51 = vmul.f32 %v676_v48, %v649_v36  ;;  %v725_v52 = vmul.f32 %v724_v50, %v649_v36  ;;  %v741_v56 = vmul.f32 %v740_v54, %v649_v36  ;;  %v767_v61 = vmul.f32 %v766_v59, %v2090_v58  ;;  %v2114_v8 = vld [vmem:[#allocation2 + $0x2] sm:$0xff] }
 0x2cb   : > { %663 = vrot.lane.b32.xlu0 %v661_v37, %s1863_s8  ;;  %v783_v2 = vmul.f32 %v782_v63, %v2090_v58  ;;  %v799_v12 = vmul.f32 %v798_v10, %v2090_v58  ;;  %v815_v19 = vmul.f32 %v814_v16, %v2090_v58  ;;  %v830_v23 = vstv %s1632_s26  ;;  %s1645_s26 = sld [smem:[#allocation4 + $0x43]] }
 0x2cc   : > { %v831_v25 = vmul.f32 %v830_v23, %v2090_v58  ;;  %v847_v4 = vmul.f32 %v846_v29, %v2090_v58  ;;  %v873_v34 = vmul.f32 %v872_v14, %v2114_v8  ;;  %v888_v36 = vstv %s1640_s9  ;;  %s1653_s9 = sld [smem:[#allocation4 + $0x47]] }
 0x2cd   : > { %v889_v39 = vmul.f32 %v888_v36, %v2114_v8  ;;  %v838_v38 = vstv %s1633_s10  ;;  %v854_v43 = vstv %s1635_s13  ;;  %v936_v48 = vstv %s1646_s20  ;;  %s1660_s10 = sld [smem:[#allocation4 + $0x1a]]  ;;  %s1662_s13 = sld [smem:[#allocation4 + $0x1b]] }
 0x2ce   : > { %v978_v59 = vstv %s1652_s25  ;;  %v994_v63 = vstv %s1654_s27  ;;  %v1010_v10 = vstv %s1656_s29  ;;  %v1026_v16 = vstv %s1658_s6  ;;  %s1659_s20 = sld [smem:[#allocation4 + $0x4a]]  ;;  %s1663_s25 = sld [smem:[#allocation4 + $0x4c]] }
 0x2cf   : > { %v654_v44 = vld [vmem:[#allocation3] sm:$0xff]  ;;  %695 = vrot.lane.b32.xlu0 %v693_v41, %s1864_s11  ;;  %s1667_s27 = sld [smem:[#allocation4 + $0x4e]]  ;;  %s1669_s29 = sld [smem:[#allocation4 + $0x4f]] }
 0x2d0   : > { %v657_v1 = vmul.f32 %v656_v40, %v654_v44  ;;  %v669_v46 = vmul.f32 %v668_v42, %v654_v44  ;;  %v685_v55 = vmul.f32 %v684_v53, %v654_v44  ;;  %v701_v60 = vmul.f32 %v700_v57, %v654_v44  ;;  %v2103_v20 = vld [vmem:[#allocation3 + $0x1] sm:$0xff]  ;;  %v2142_v57 = vld [vmem:[#allocation2 + $0x3] sm:$0xff]  ;;  %s1671_s6 = sld [smem:[#allocation4 + $0x50]] }
 0x2d1   : > { %v717_v0 = vmul.f32 %v716_v62, %v654_v44  ;;  %v733_v11 = vmul.f32 %v732_v3, %v654_v44  ;;  %v749_v17 = vmul.f32 %v748_v13, %v654_v44  ;;  %v775_v24 = vmul.f32 %v774_v22, %v2103_v20  ;;  %v2159_v22 = vld [vmem:[#allocation3 + $0x3] sm:$0xff] }
 0x2d2   : > { %v2083_v49 = vadd.f32 %v657_v1, %v652_v45  ;;  %671 = vrot.lane.b32.xlu1 %v669_v46, %s1863_s8  ;;  %v791_v6 = vmul.f32 %v790_v28, %v2103_v20  ;;  %v807_v15 = vmul.f32 %v806_v5, %v2103_v20  ;;  %v823_v37 = vmul.f32 %v822_v35, %v2103_v20  ;;  %v2131_v46 = vld [vmem:[#allocation3 + $0x2] sm:$0xff] }
 0x2d3   : > { %711 = vrot.lane.b32.xlu0 %v709_v47, %s1865_s14  ;;  %v904_v40 = vstv %s1642_s12  ;;  %v839_v41 = vmul.f32 %v838_v38, %v2103_v20  ;;  %v920_v44 = vstv %s1644_s15  ;;  %v855_v45 = vmul.f32 %v854_v43, %v2103_v20  ;;  %s1655_s12 = sld [smem:[#allocation4 + $0x48]]  ;;  %s1657_s15 = sld [smem:[#allocation4 + $0x49]] }
 0x2d4   : > { %v905_v42 = vmul.f32 %v904_v40, %v2114_v8  ;;  %v921_v1 = vmul.f32 %v920_v44, %v2114_v8  ;;  %v880_v47 = vstv %s1639_s17  ;;  %v952_v53 = vstv %s1648_s23  ;;  %s1666_s17 = sld [smem:[#allocation4 + $0x1d]]  ;;  %s1661_s23 = sld [smem:[#allocation4 + $0x4b]] }
 0x2d5   : > { %v881_v50 = vmul.f32 %v880_v47, %v2131_v46  ;;  %v928_v62 = vstv %s1645_s26  ;;  %v944_v3 = vstv %s1647_s28  ;;  %v960_v13 = vstv %s1649_s30  ;;  %s1672_s26 = sld [smem:[#allocation4 + $0x20]]  ;;  %s1674_s28 = sld [smem:[#allocation4 + $0x21]] }
 0x2d6   : > { %679 = vrot.lane.b32.xlu1 %v677_v51, %s1866_s16  ;;  %v937_v51 = vmul.f32 %v936_v48, %v2114_v8  ;;  %v986_v23 = vstv %s1653_s9  ;;  %s1676_s30 = sld [smem:[#allocation4 + $0x22]]  ;;  %s1680_s9 = sld [smem:[#allocation4 + $0x24]] }
 0x2d7   : > { %727 = vrot.lane.b32.xlu0 %v725_v52, %s1867_s19  ;;  %v896_v52 = vstv %s1641_s21  ;;  %s1668_s21 = sld [smem:[#allocation4 + $0x1e]] }
 0x2d8   : > { %v897_v54 = vmul.f32 %v896_v52, %v2131_v46 }
 0x2d9   : > { %v1002_v29 = vstv %s1655_s12  ;;  %v1018_v14 = vstv %s1657_s15  ;;  %s1682_s12 = sld [smem:[#allocation4 + $0x25]]  ;;  %s1684_s15 = sld [smem:[#allocation4 + $0x26]] }
 0x2da   : > { %687 = vrot.lane.b32.xlu1 %v685_v55, %s1866_s16  ;;  %v953_v55 = vmul.f32 %v952_v53, %v2114_v8  ;;  %v1019_v35 = vmul.f32 %v1018_v14, %v2159_v22 }
 0x2db   : > { %743 = vrot.lane.b32.xlu0 %v741_v56, %s1868_s22  ;;  %v912_v56 = vstv %s1643_s24  ;;  %s1670_s24 = sld [smem:[#allocation4 + $0x1f]]  ;;  %v1148_v52 = vstv %s1674_s28  ;;  %s2231_s28 = sld [smem:[#allocation4 + $0x58]] }
 0x2de   : > { %703 = vrot.lane.b32.xlu1 %v701_v60, %s1864_s11  ;;  %v913_v60 = vmul.f32 %v912_v56, %v2131_v46  ;;  %v1164_v56 = vstv %s1676_s30  ;;  %s2241_s30 = sld [smem:[#allocation4 + $0x59]] }
 0x2df   : > { %769 = vrot.lane.b32.xlu0 %v767_v61, %s1863_s8  ;;  %v979_v61 = vmul.f32 %v978_v59, %v2142_v57 }
 0x2e2   : > { %719 = vrot.lane.b32.xlu1 %v717_v0, %s1865_s14  ;;  %v929_v0 = vmul.f32 %v928_v62, %v2131_v46  ;;  %v2198_v62 = vld [vmem:[#allocation2 + $0x5] sm:$0xff] }
 0x2e3   : > { %785 = vrot.lane.b32.xlu0 %v783_v2, %s1866_s16  ;;  %v995_v2 = vmul.f32 %v994_v63, %v2142_v57  ;;  %v1190_v63 = vstv %s1680_s9  ;;  %s2249_s9 = sld [smem:[#allocation4 + $0x2d]] }
 0x2e6   : > { %735 = vrot.lane.b32.xlu1 %v733_v11, %s1867_s19  ;;  %v945_v11 = vmul.f32 %v944_v3, %v2131_v46  ;;  %v1191_v3 = vmul.f32 %v1190_v63, %v2198_v62 }
 0x2e7   : > { %801 = vrot.lane.b32.xlu0 %v799_v12, %s1864_s11  ;;  %v1011_v12 = vmul.f32 %v1010_v10, %v2142_v57 }
 0x2ea   : > { %751 = vrot.lane.b32.xlu1 %v749_v17, %s1868_s22  ;;  %v961_v17 = vmul.f32 %v960_v13, %v2131_v46 }
 0x2eb   : > { %817 = vrot.lane.b32.xlu0 %v815_v19, %s1865_s14  ;;  %v1027_v19 = vmul.f32 %v1026_v16, %v2142_v57 }
 0x2ee   : > { %777 = vrot.lane.b32.xlu1 %v775_v24, %s1863_s8  ;;  %v1042_v24 = vstv %s1660_s10  ;;  %s1673_s10 = sld [smem:[#allocation4 + $0x51]] }
 0x2ef   : > { %833 = vrot.lane.b32.xlu0 %v831_v25, %s1867_s19  ;;  %v987_v25 = vmul.f32 %v986_v23, %v2159_v22  ;;  %v1043_v28 = vmul.f32 %v1042_v24, %v2142_v57 }
 0x2f2   : > { %793 = vrot.lane.b32.xlu1 %v791_v6, %s1866_s16  ;;  %v1058_v6 = vstv %s1662_s13  ;;  %s1675_s13 = sld [smem:[#allocation4 + $0x52]] }
 0x2f3   : > { %849 = vrot.lane.b32.xlu0 %v847_v4, %s1868_s22  ;;  %v1003_v4 = vmul.f32 %v1002_v29, %v2159_v22  ;;  %v1059_v5 = vmul.f32 %v1058_v6, %v2142_v57 }
 0x2f4   : > { %v1140_v10 = vstv %s1673_s10  ;;  %s2253_s10 = sld [smem:[#allocation4 + $0x38]] }
 0x2f6   : > { %809 = vrot.lane.b32.xlu1 %v807_v15, %s1864_s11  ;;  %v2170_v15 = vld [vmem:[#allocation2 + $0x4] sm:$0xff] }
 0x2f7   : > { %875 = vrot.lane.b32.xlu0 %v873_v34, %s1863_s8  ;;  %v1084_v34 = vstv %s1666_s17  ;;  %s1677_s17 = sld [smem:[#allocation4 + $0x53]] }
 0x2f8   : > { %v1085_v36 = vmul.f32 %v1084_v34, %v2170_v15 }
 0x2fa   : > { %825 = vrot.lane.b32.xlu1 %v823_v37, %s1865_s14  ;;  %v1034_v37 = vstv %s1659_s20  ;;  %s1686_s20 = sld [smem:[#allocation4 + $0x27]] }
 0x2fb   : > { %891 = vrot.lane.b32.xlu0 %v889_v39, %s1866_s16  ;;  %v1100_v39 = vstv %s1668_s21  ;;  %v1035_v38 = vmul.f32 %v1034_v37, %v2159_v22  ;;  %s1681_s21 = sld [smem:[#allocation4 + $0x55]]  ;;  %v2220_v37 = vld [vmem:[#allocation3 + $0x5] sm:$0xff] }
 0x2fc   : > { %v1101_v40 = vmul.f32 %v1100_v39, %v2170_v15 }
 0x2fd   : > { %v1172_v29 = vstv %s1677_s17  ;;  %s2272_s17 = sld [smem:[#allocation4 + $0x2f]] }
 0x2fe   : > { %841 = vrot.lane.b32.xlu1 %v839_v41, %s1867_s19  ;;  %v1050_v41 = vstv %s1661_s23  ;;  %s1688_s23 = sld [smem:[#allocation4 + $0x28]] }
 0x2ff   : > { %907 = vrot.lane.b32.xlu0 %v905_v42, %s1864_s11  ;;  %v1116_v42 = vstv %s1670_s24  ;;  %v1051_v43 = vmul.f32 %v1050_v41, %v2159_v22  ;;  %s2211_s24 = sld [smem:[#allocation4 + $0x56]] }
 0x300   : > { %v1117_v44 = vmul.f32 %v1116_v42, %v2170_v15  ;;  %v1238_v6 = vstv %s1686_s20  ;;  %s2280_s20 = sld [smem:[#allocation4 + $0x5d]] }
 0x301   : > { %v1198_v39 = vstv %s1681_s21  ;;  %s2284_s21 = sld [smem:[#allocation4 + $0x30]] }
 0x302   : > { %857 = vrot.lane.b32.xlu1 %v855_v45, %s1868_s22  ;;  %v1066_v45 = vstv %s1663_s25  ;;  %s2214_s25 = sld [smem:[#allocation4 + $0x29]]  ;;  %v1199_v41 = vmul.f32 %v1198_v39, %v2220_v37 }
 0x303   : > { %923 = vrot.lane.b32.xlu0 %v921_v1, %s1865_s14  ;;  %v1132_v1 = vstv %s1672_s26  ;;  %v1067_v47 = vmul.f32 %v1066_v45, %v2159_v22  ;;  %s2222_s26 = sld [smem:[#allocation4 + $0x57]] }
 0x304   : > { %v1133_v48 = vmul.f32 %v1132_v1, %v2170_v15 }
 0x305   : > { %v1214_v45 = vstv %s2211_s24  ;;  %s1701_s24 = sld [smem:[#allocation4 + $0x5f]] }
 0x306   : > { %883 = vrot.lane.b32.xlu1 %v881_v50, %s1863_s8  ;;  %v2187_v50 = vld [vmem:[#allocation3 + $0x4] sm:$0xff] }
 0x307   : > { %939 = vrot.lane.b32.xlu0 %v937_v51, %s1867_s19  ;;  %v1092_v51 = vstv %s1667_s27  ;;  %v1173_v14 = vmul.f32 %v1172_v29, %v2187_v50  ;;  %s2225_s27 = sld [smem:[#allocation4 + $0x2b]] }
 0x308   : > { %v1093_v53 = vmul.f32 %v1092_v51, %v2187_v50  ;;  %v1270_v1 = vstv %s2214_s25  ;;  %v1215_v51 = vmul.f32 %v1214_v45, %v2220_v37  ;;  %v2290_v45 = vld [vmem:[#allocation3 + $0x6] sm:$0xff]  ;;  %s1703_s25 = sld [smem:[#allocation4 + $0x60]] }
 0x30a   : > { %899 = vrot.lane.b32.xlu1 %v897_v54, %s1866_s16  ;;  %v1149_v54 = vmul.f32 %v1148_v52, %v2170_v15 }
 0x30b   : > { %955 = vrot.lane.b32.xlu0 %v953_v55, %s1868_s22  ;;  %v1108_v55 = vstv %s1669_s29  ;;  %s2235_s29 = sld [smem:[#allocation4 + $0x2c]] }
 0x30c   : > { %v1109_v59 = vmul.f32 %v1108_v55, %v2187_v50  ;;  %v1230_v55 = vstv %s2222_s26  ;;  %s1636_s26 = sld [smem:[#allocation4 + $0xe]] }
 0x30d   : > { %v1231_v63 = vmul.f32 %v1230_v55, %v2220_v37 }
 0x30e   : > { %915 = vrot.lane.b32.xlu1 %v913_v60, %s1864_s11  ;;  %v1165_v60 = vmul.f32 %v1164_v56, %v2170_v15  ;;  %v2244_v56 = vld [vmem:[#allocation2 + $0x6] sm:$0xff] }
 0x30f   : > { %981 = vrot.lane.b32.xlu0 %v979_v61, %s1863_s8  ;;  %v1124_v61 = vstv %s1671_s6  ;;  %s2247_s6 = sld [smem:[#allocation4 + $0x7]] }
 0x312   : > { %931 = vrot.lane.b32.xlu1 %v929_v0, %s1865_s14  ;;  %v1125_v0 = vmul.f32 %v1124_v61, %v2187_v50 }
 0x313   : > { %997 = vrot.lane.b32.xlu0 %v995_v2, %s1866_s16 }
 0x316   : > { %947 = vrot.lane.b32.xlu1 %v945_v11, %s1867_s19  ;;  %v1206_v11 = vstv %s1682_s12  ;;  %s2257_s12 = sld [smem:[#allocation4 + $0x5a]] }
 0x317   : > { %1013 = vrot.lane.b32.xlu0 %v1011_v12, %s1864_s11  ;;  %v1141_v12 = vmul.f32 %v1140_v10, %v2187_v50  ;;  %v1207_v16 = vmul.f32 %v1206_v11, %v2198_v62  ;;  %v1246_v10 = vstv %s2231_s28  ;;  %v1312_v11 = vstv %s2235_s29  ;;  %s1679_s28 = sld [smem:[#allocation4 + $0x54]]  ;;  %s1692_s29 = sld [smem:[#allocation4 + $0x2a]] }
 0x31a   : > { %963 = vrot.lane.b32.xlu1 %v961_v17, %s1868_s22  ;;  %v1156_v17 = vstv %s1675_s13  ;;  %s2261_s13 = sld [smem:[#allocation4 + $0x2e]] }
 0x31b   : > { %1029 = vrot.lane.b32.xlu0 %v1027_v19, %s1865_s14  ;;  %v1222_v19 = vstv %s1684_s15  ;;  %v1157_v24 = vmul.f32 %v1156_v17, %v2187_v50  ;;  %s2267_s15 = sld [smem:[#allocation4 + $0x5c]] }
 0x31c   : > { %v1278_v39 = vstv %s2257_s12 }
 0x31e   : > { %989 = vrot.lane.b32.xlu1 %v987_v25, %s1863_s8 }
 0x31f   : > { %1045 = vrot.lane.b32.xlu0 %v1043_v28, %s1867_s19  ;;  %v1223_v28 = vmul.f32 %v1222_v19, %v2198_v62 }
 0x322   : > { %1005 = vrot.lane.b32.xlu1 %v1003_v4, %s1866_s16 }
 0x323   : > { %1061 = vrot.lane.b32.xlu0 %v1059_v5, %s1868_s22 }
 0x326   : > { %1021 = vrot.lane.b32.xlu1 %v1019_v35, %s1864_s11 }
 0x327   : > { %1087 = vrot.lane.b32.xlu0 %v1085_v36, %s1863_s8  ;;  %v1239_v36 = vmul.f32 %v1238_v6, %v2198_v62  ;;  %v762_v6 = vstv %s2253_s10  ;;  %s253_s10 = scalar_lea.vmem %s2359_s1, %s1943_s7 }
 0x32a   : > { %1037 = vrot.lane.b32.xlu1 %v1035_v38, %s1865_s14  ;;  %v1254_v38 = vstv %s1688_s23  ;;  %s1699_s23 = sld [smem:[#allocation4 + $0x5e]] }
 0x32b   : > { %1103 = vrot.lane.b32.xlu0 %v1101_v40, %s1866_s16 }
 0x32e   : > { %1053 = vrot.lane.b32.xlu1 %v1051_v43, %s1867_s19 }
 0x32f   : > { %1119 = vrot.lane.b32.xlu0 %v1117_v44, %s1864_s11  ;;  %v1255_v44 = vmul.f32 %v1254_v38, %v2198_v62  ;;  %v1344_v38 = vstv %s2261_s13 }
 0x332   : > { %1069 = vrot.lane.b32.xlu1 %v1067_v47, %s1868_s22 }
 0x333   : > { %1135 = vrot.lane.b32.xlu0 %v1133_v48, %s1865_s14 }
 0x336   : > { %1095 = vrot.lane.b32.xlu1 %v1093_v53, %s1863_s8 }
 0x337   : > { %1151 = vrot.lane.b32.xlu0 %v1149_v54, %s1867_s19  ;;  %v1271_v54 = vmul.f32 %v1270_v1, %v2198_v62  ;;  %v1304_v1 = vstv %s2267_s15  ;;  %s2345_s15 = scalar_lea.vmem %s2363_s5, %s1943_s7 }
 0x33a   : > { %1111 = vrot.lane.b32.xlu1 %v1109_v59, %s1866_s16  ;;  %v1296_v59 = vstv %s2225_s27  ;;  %s1637_s27 = sld [smem:[#allocation4 + $0x3f]] }
 0x33b   : > { %1167 = vrot.lane.b32.xlu0 %v1165_v60, %s1868_s22 }
 0x33d   : > { %v664_v2 = vpop.permute.xlu0 %663 }
 0x33e   : > { %1127 = vrot.lane.b32.xlu1 %v1125_v0, %s1864_s11  ;;  %v666_v4 = vadd.f32 %v664_v2, %v2083_v49 }
 0x33f   : > { %1193 = vrot.lane.b32.xlu0 %v1191_v3, %s1863_s8  ;;  %v1297_v3 = vmul.f32 %v1296_v59, %v2244_v56  ;;  %v1320_v59 = vstv %s2280_s20 }
 0x341   : > { %v696_v13 = vpop.permute.xlu0 %695 }
 0x342   : > { %1143 = vrot.lane.b32.xlu1 %v1141_v12, %s1865_s14 }
 0x343   : > { %1209 = vrot.lane.b32.xlu0 %v1207_v16, %s1866_s16  ;;  %v1247_v16 = vmul.f32 %v1246_v10, %v2220_v37 }
 0x344   : > { %v672_v23 = vpop.permute.xlu1 %671 }
 0x345   : > { %v712_v25 = vpop.permute.xlu0 %711  ;;  %v674_v34 = vadd.f32 %v672_v23, %v666_v4  ;;  %v1313_v23 = vmul.f32 %v1312_v11, %v2244_v56  ;;  %v1336_v11 = vstv %s1699_s23 }
 0x346   : > { %1159 = vrot.lane.b32.xlu1 %v1157_v24, %s1867_s19  ;;  %v1262_v24 = vstv %s2241_s30  ;;  %s1693_s30 = sld [smem:[#allocation4 + $0x5b]] }
 0x347   : > { %1225 = vrot.lane.b32.xlu0 %v1223_v28, %s1864_s11  ;;  %v1328_v28 = vstv %s2249_s9 }
 0x348   : > { %v680_v5 = vpop.permute.xlu1 %679 }
 0x349   : > { %v728_v35 = vpop.permute.xlu0 %727  ;;  %v682_v49 = vadd.f32 %v680_v5, %v674_v34  ;;  %v1263_v5 = vmul.f32 %v1262_v24, %v2220_v37 }
 0x34a   : > { %1175 = vrot.lane.b32.xlu1 %v1173_v14, %s1868_s22 }
 0x34b   : > { %1241 = vrot.lane.b32.xlu0 %v1239_v36, %s1865_s14  ;;  %v1329_v36 = vmul.f32 %v1328_v28, %v2244_v56 }
 0x34c   : > { %v688_v40 = vpop.permute.xlu1 %687 }
 0x34d   : > { %v690_v42 = vadd.f32 %v688_v40, %v682_v49  ;;  %v744_v43 = vpop.permute.xlu0 %743  ;;  %v763_v49 = vmul.f32 %v762_v6, %v2103_v20 }
 0x34e   : > { %1201 = vrot.lane.b32.xlu1 %v1199_v41, %s1863_s8  ;;  %v1279_v41 = vmul.f32 %v1278_v39, %v2220_v37 }
 0x34f   : > { %v698_v47 = vadd.f32 %v696_v13, %v690_v42  ;;  %1257 = vrot.lane.b32.xlu0 %v1255_v44, %s1867_s19  ;;  %v1345_v44 = vmul.f32 %v1344_v38, %v2244_v56  ;;  %v863_v38 = vstv %s1636_s26 }
 0x350   : > { %v704_v48 = vpop.permute.xlu1 %703 }
 0x351   : > { %v706_v52 = vadd.f32 %v704_v48, %v698_v47  ;;  %v770_v53 = vpop.permute.xlu0 %769  ;;  %v1360_v47 = vstv %s2272_s17 }
 0x352   : > { %1217 = vrot.lane.b32.xlu1 %v1215_v51, %s1866_s16  ;;  %v1305_v51 = vmul.f32 %v1304_v1, %v2290_v45  ;;  %v1361_v55 = vmul.f32 %v1360_v47, %v2244_v56 }
 0x353   : > { %v714_v60 = vadd.f32 %v712_v25, %v706_v52  ;;  %1273 = vrot.lane.b32.xlu0 %v1271_v54, %s1868_s22  ;;  %v757_v25 = vstv %s2247_s6 }
 0x354   : > { %v720_v61 = vpop.permute.xlu1 %719  ;;  %v758_v14 = vmul.f32 %v757_v25, %v2090_v58 }
 0x355   : > { %v722_v0 = vadd.f32 %v720_v61, %v714_v60  ;;  %v786_v2 = vpop.permute.xlu0 %785  ;;  %v1376_v60 = vstv %s2284_s21 }
 0x356   : > { %1233 = vrot.lane.b32.xlu1 %v1231_v63, %s1864_s11  ;;  %v1377_v10 = vmul.f32 %v1376_v60, %v2244_v56 }
 0x357   : > { %v730_v12 = vadd.f32 %v728_v35, %v722_v0  ;;  %1299 = vrot.lane.b32.xlu0 %v1297_v3, %s1863_s8 }
 0x358   : > { %v736_v13 = vpop.permute.xlu1 %735 }
 0x359   : > { %v738_v17 = vadd.f32 %v736_v13, %v730_v12  ;;  %v802_v19 = vpop.permute.xlu0 %801 }
 0x35a   : > { %1249 = vrot.lane.b32.xlu1 %v1247_v16, %s1865_s14  ;;  %v1337_v16 = vmul.f32 %v1336_v11, %v2290_v45 }
 0x35b   : > { %v746_v29 = vadd.f32 %v744_v43, %v738_v17  ;;  %1315 = vrot.lane.b32.xlu0 %v1313_v23, %s1866_s16  ;;  %v1352_v23 = vstv %s1701_s24 }
 0x35c   : > { %v752_v4 = vpop.permute.xlu1 %751  ;;  %v1353_v28 = vmul.f32 %v1352_v23, %v2290_v45 }
 0x35d   : > { %v754_v34 = vadd.f32 %v752_v4, %v746_v29  ;;  %v818_v35 = vpop.permute.xlu0 %817 }
 0x35e   : > { %1265 = vrot.lane.b32.xlu1 %v1263_v5, %s1867_s19 }
 0x35f   : > { %v759_v40 = vadd.f32 %v758_v14, %v754_v34  ;;  %1331 = vrot.lane.b32.xlu0 %v1329_v36, %s1864_s11 }
 0x360   : > { %v778_v58 = vpop.permute.xlu1 %777 }
 0x361   : > { %v764_v42 = vadd.f32 %v763_v49, %v759_v40  ;;  %v834_v43 = vpop.permute.xlu0 %833  ;;  %v868_v49 = vstv %s1637_s27 }
 0x362   : > { %1281 = vrot.lane.b32.xlu1 %v1279_v41, %s1868_s22  ;;  %v864_v41 = vmul.f32 %v863_v38, %v2114_v8 }
 0x363   : > { %v772_v20 = vadd.f32 %v770_v53, %v764_v42  ;;  %1347 = vrot.lane.b32.xlu0 %v1345_v44, %s1865_s14  ;;  %v1321_v53 = vmul.f32 %v1320_v59, %v2290_v45 }
 0x364   : > { %v794_v48 = vpop.permute.xlu1 %793 }
 0x365   : > { %v780_v52 = vadd.f32 %v778_v58, %v772_v20  ;;  %v850_v54 = vpop.permute.xlu0 %849 }
 0x366   : > { %1307 = vrot.lane.b32.xlu1 %v1305_v51, %s1863_s8  ;;  %s1705_s8 = sld [smem:[#allocation4 + $0x61]] }
 0x367   : > { %v788_v61 = vadd.f32 %v786_v2, %v780_v52  ;;  %1363 = vrot.lane.b32.xlu0 %v1361_v55, %s1867_s19 }
 0x368   : > { %v810_v63 = vpop.permute.xlu1 %809 }
 0x369   : > { %v796_v0 = vadd.f32 %v794_v48, %v788_v61  ;;  %v876_v3 = vpop.permute.xlu0 %875 }
 0x36a   : > { %1323 = vrot.lane.b32.xlu1 %v1321_v53, %s1866_s16  ;;  %s1664_s16 = sld [smem:[#allocation4 + $0x1c]] }
 0x36b   : > { %v804_v12 = vadd.f32 %v802_v19, %v796_v0  ;;  %1379 = vrot.lane.b32.xlu0 %v1377_v10, %s1868_s22  ;;  %v1368_v19 = vstv %s1703_s25 }
 0x36c   : > { %v826_v13 = vpop.permute.xlu1 %825  ;;  %v1369_v14 = vmul.f32 %v1368_v19, %v2290_v45  ;;  %v1384_v39 = vstv %s1705_s8 }
 0x36d   : > { %v812_v2 = vadd.f32 %v810_v63, %v804_v12  ;;  %v892_v17 = vpop.permute.xlu0 %891  ;;  %v1385_v58 = vmul.f32 %v1384_v39, %v2290_v45 }
 0x36e   : > { %1339 = vrot.lane.b32.xlu1 %v1337_v16, %s1864_s11  ;;  %s1650_s11 = sld [smem:[#allocation4 + $0x15]] }
 0x36f   : > { %v820_v24 = vadd.f32 %v818_v35, %v812_v2 }
 0x370   : > { %v842_v25 = vpop.permute.xlu1 %841 }
 0x371   : > { %v828_v29 = vadd.f32 %v826_v13, %v820_v24  ;;  %v908_v6 = vpop.permute.xlu0 %907 }
 0x372   : > { %1355 = vrot.lane.b32.xlu1 %v1353_v28, %s1865_s14  ;;  %s1651_s14 = sld [smem:[#allocation4 + $0x46]] }
 0x373   : > { %v836_v4 = vadd.f32 %v834_v43, %v828_v29  ;;  %v869_v43 = vmul.f32 %v868_v49, %v2131_v46 }
 0x374   : > { %v858_v5 = vpop.permute.xlu1 %857  ;;  %v969_v24 = vstv %s1650_s11 }
 0x375   : > { %v844_v34 = vadd.f32 %v842_v25, %v836_v4  ;;  %v924_v36 = vpop.permute.xlu0 %923  ;;  %v970_v29 = vmul.f32 %v969_v24, %v2142_v57 }
 0x376   : > { %1371 = vrot.lane.b32.xlu1 %v1369_v14, %s1867_s19  ;;  %s1665_s19 = sld [smem:[#allocation4 + $0x4d]] }
 0x377   : > { %v852_v35 = vadd.f32 %v850_v54, %v844_v34 }
 0x378   : > { %v884_v40 = vpop.permute.xlu1 %883 }
 0x379   : > { %v860_v42 = vadd.f32 %v858_v5, %v852_v35  ;;  %v940_v44 = vpop.permute.xlu0 %939 }
 0x37a   : > { %1387 = vrot.lane.b32.xlu1 %v1385_v58, %s1868_s22  ;;  %s1678_s22 = sld [smem:[#allocation4 + $0x23]] }
 0x37b   : > { %v865_v1 = vadd.f32 %v864_v41, %v860_v42 }
 0x37c   : > { %v900_v47 = vpop.permute.xlu1 %899 }
 0x37d   : > { %v870_v20 = vadd.f32 %v869_v43, %v865_v1  ;;  %v956_v48 = vpop.permute.xlu0 %955 }
 0x37f   : > { %v878_v51 = vadd.f32 %v876_v3, %v870_v20 }
 0x380   : > { %v916_v52 = vpop.permute.xlu1 %915 }
 0x381   : > { %v886_v55 = vadd.f32 %v884_v40, %v878_v51  ;;  %v982_v54 = vpop.permute.xlu0 %981 }
 0x383   : > { %v894_v59 = vadd.f32 %v892_v17, %v886_v55  ;;  %v974_v17 = vstv %s1651_s14 }
 0x384   : > { %v932_v60 = vpop.permute.xlu1 %931  ;;  %v975_v5 = vmul.f32 %v974_v17, %v2159_v22 }
 0x385   : > { %v902_v61 = vadd.f32 %v900_v47, %v894_v59  ;;  %v998_v63 = vpop.permute.xlu0 %997  ;;  %v1080_v59 = vstv %s1665_s19 }
 0x387   : > { %v910_v53 = vadd.f32 %v908_v6, %v902_v61 }
 0x388   : > { %v948_v8 = vpop.permute.xlu1 %947 }
 0x389   : > { %v918_v0 = vadd.f32 %v916_v52, %v910_v53  ;;  %v1014_v10 = vpop.permute.xlu0 %1013  ;;  %v1075_v52 = vstv %s1664_s16 }
 0x38a   : > { %v1076_v61 = vmul.f32 %v1075_v52, %v2170_v15 }
 0x38b   : > { %v926_v11 = vadd.f32 %v924_v36, %v918_v0 }
 0x38c   : > { %v964_v12 = vpop.permute.xlu1 %963 }
 0x38d   : > { %v934_v46 = vadd.f32 %v932_v60, %v926_v11  ;;  %v1030_v13 = vpop.permute.xlu0 %1029 }
 0x38f   : > { %v942_v16 = vadd.f32 %v940_v44, %v934_v46 }
 0x390   : > { %v990_v2 = vpop.permute.xlu1 %989 }
 0x391   : > { %v950_v3 = vadd.f32 %v948_v8, %v942_v16  ;;  %v1046_v23 = vpop.permute.xlu0 %1045  ;;  %v1081_v8 = vmul.f32 %v1080_v59, %v2187_v50 }
 0x393   : > { %v958_v25 = vadd.f32 %v956_v48, %v950_v3 }
 0x394   : > { %v1006_v28 = vpop.permute.xlu1 %1005 }
 0x395   : > { %v966_v6 = vadd.f32 %v964_v12, %v958_v25  ;;  %v1062_v19 = vpop.permute.xlu0 %1061 }
 0x397   : > { %v971_v4 = vadd.f32 %v970_v29, %v966_v6 }
 0x398   : > { %v1022_v14 = vpop.permute.xlu1 %1021 }
 0x399   : > { %v976_v34 = vadd.f32 %v975_v5, %v971_v4  ;;  %v1088_v39 = vpop.permute.xlu0 %1087  ;;  %v1181_v5 = vstv %s1678_s22 }
 0x39b   : > { %v984_v36 = vadd.f32 %v982_v54, %v976_v34 }
 0x39c   : > { %v1038_v38 = vpop.permute.xlu1 %1037 }
 0x39d   : > { %v992_v35 = vadd.f32 %v990_v2, %v984_v36  ;;  %v1104_v41 = vpop.permute.xlu0 %1103  ;;  %v1186_v36 = vstv %s1679_s28 }
 0x39f   : > { %v1000_v49 = vadd.f32 %v998_v63, %v992_v35 }
 0x3a0   : > { %v1054_v40 = vpop.permute.xlu1 %1053 }
 0x3a1   : > { %v1008_v58 = vadd.f32 %v1006_v28, %v1000_v49  ;;  %v1120_v1 = vpop.permute.xlu0 %1119 }
 0x3a3   : > { %v1016_v42 = vadd.f32 %v1014_v10, %v1008_v58 }
 0x3a4   : > { %v1070_v44 = vpop.permute.xlu1 %1069 }
 0x3a5   : > { %v1024_v43 = vadd.f32 %v1022_v14, %v1016_v42  ;;  %v1136_v55 = vpop.permute.xlu0 %1135 }
 0x3a7   : > { %v1032_v57 = vadd.f32 %v1030_v13, %v1024_v43 }
 0x3a8   : > { %v1096_v47 = vpop.permute.xlu1 %1095 }
 0x3a9   : > { %v1040_v20 = vadd.f32 %v1038_v38, %v1032_v57  ;;  %v1152_v0 = vpop.permute.xlu0 %1151 }
 0x3ab   : > { %v1048_v22 = vadd.f32 %v1046_v23, %v1040_v20 }
 0x3ac   : > { %v1112_v48 = vpop.permute.xlu1 %1111 }
 0x3ad   : > { %v1056_v51 = vadd.f32 %v1054_v40, %v1048_v22  ;;  %v1168_v16 = vpop.permute.xlu0 %1167  ;;  %v1187_v40 = vmul.f32 %v1186_v36, %v2220_v37 }
 0x3af   : > { %v1064_v54 = vadd.f32 %v1062_v19, %v1056_v51 }
 0x3b0   : > { %v1128_v60 = vpop.permute.xlu1 %1127 }
 0x3b1   : > { %v1072_v63 = vadd.f32 %v1070_v44, %v1064_v54  ;;  %v1194_v25 = vpop.permute.xlu0 %1193 }
 0x3b3   : > { %v1077_v53 = vadd.f32 %v1076_v61, %v1072_v63 }
 0x3b4   : > { %v1144_v10 = vpop.permute.xlu1 %1143 }
 0x3b5   : > { %v1082_v11 = vadd.f32 %v1081_v8, %v1077_v53  ;;  %v1210_v6 = vpop.permute.xlu0 %1209  ;;  %v1292_v53 = vstv %s1693_s30 }
 0x3b7   : > { %v1090_v12 = vadd.f32 %v1088_v39, %v1082_v11  ;;  %v1182_v39 = vmul.f32 %v1181_v5, %v2198_v62 }
 0x3b8   : > { %v1160_v46 = vpop.permute.xlu1 %1159 }
 0x3b9   : > { %v1098_v13 = vadd.f32 %v1096_v47, %v1090_v12  ;;  %v1226_v34 = vpop.permute.xlu0 %1225  ;;  %v1293_v12 = vmul.f32 %v1292_v53, %v2290_v45 }
 0x3bb   : > { %v1106_v2 = vadd.f32 %v1104_v41, %v1098_v13 }
 0x3bc   : > { %v1176_v3 = vpop.permute.xlu1 %1175 }
 0x3bd   : > { %v1114_v23 = vadd.f32 %v1112_v48, %v1106_v2  ;;  %v1242_v41 = vpop.permute.xlu0 %1241 }
 0x3bf   : > { %v1122_v24 = vadd.f32 %v1120_v1, %v1114_v23 }
 0x3c0   : > { %v1202_v28 = vpop.permute.xlu1 %1201 }
 0x3c1   : > { %v1130_v17 = vadd.f32 %v1128_v60, %v1122_v24  ;;  %v1258_v1 = vpop.permute.xlu0 %1257  ;;  %v1287_v60 = vstv %s1692_s29 }
 0x3c2   : > { %v1288_v8 = vmul.f32 %v1287_v60, %v2244_v56 }
 0x3c3   : > { %v1138_v15 = vadd.f32 %v1136_v55, %v1130_v17 }
 0x3c4   : > { %v1218_v19 = vpop.permute.xlu1 %1217 }
 0x3c5   : > { %v1146_v29 = vadd.f32 %v1144_v10, %v1138_v15  ;;  %v1274_v51 = vpop.permute.xlu0 %1273 }
 0x3c7   : > { %v1154_v50 = vadd.f32 %v1152_v0, %v1146_v29 }
 0x3c8   : > { %v1234_v35 = vpop.permute.xlu1 %1233 }
 0x3c9   : > { %v1162_v4 = vadd.f32 %v1160_v46, %v1154_v50  ;;  %v1300_v59 = vpop.permute.xlu0 %1299 }
 0x3cb   : > { %v1170_v14 = vadd.f32 %v1168_v16, %v1162_v4 }
 0x3cc   : > { %v1250_v44 = vpop.permute.xlu1 %1249 }
 0x3cd   : > { %v1178_v38 = vadd.f32 %v1176_v3, %v1170_v14  ;;  %v1316_v10 = vpop.permute.xlu0 %1315 }
 0x3cf   : > { %v1183_v49 = vadd.f32 %v1182_v39, %v1178_v38 }
 0x3d0   : > { %v1266_v20 = vpop.permute.xlu1 %1265 }
 0x3d1   : > { %v1188_v58 = vadd.f32 %v1187_v40, %v1183_v49  ;;  %v1332_v2 = vpop.permute.xlu0 %1331  ;;  %v1405_v40 = vsub.s32 1, %v1997_v18 }
 0x3d3   : > { %v1196_v42 = vadd.f32 %v1194_v25, %v1188_v58 }
 0x3d4   : > { %v1282_v62 = vpop.permute.xlu1 %1281 }
 0x3d5   : > { %v1204_v43 = vadd.f32 %v1202_v28, %v1196_v42  ;;  %v1348_v17 = vpop.permute.xlu0 %1347 }
 0x3d7   : > { %v1212_v57 = vadd.f32 %v1210_v6, %v1204_v43  ;;  %v1412_v43 = vsub.s32 2, %v1997_v18 }
 0x3d8   : > { %v1308_v61 = vpop.permute.xlu1 %1307 }
 0x3d9   : > { %v1220_v47 = vadd.f32 %v1218_v19, %v1212_v57  ;;  %v1364_v50 = vpop.permute.xlu0 %1363 }
 0x3db   : > { %v1228_v22 = vadd.f32 %v1226_v34, %v1220_v47  ;;  %v1433_v47 = vsub.s32 5, %v1997_v18 }
 0x3dc   : > { %v1324_v46 = vpop.permute.xlu1 %1323 }
 0x3dd   : > { %v1236_v48 = vadd.f32 %v1234_v35, %v1228_v22  ;;  %v1380_v14 = vpop.permute.xlu0 %1379 }
 0x3df   : > { %v1244_v52 = vadd.f32 %v1242_v41, %v1236_v48 }
 0x3e0   : > { %v1340_v23 = vpop.permute.xlu1 %1339 }
 0x3e1   : > { %v1252_v55 = vadd.f32 %v1250_v44, %v1244_v52  ;;  %v1419_v44 = vsub.s32 3, %v1997_v18 }
 0x3e3   : > { %v1260_v54 = vadd.f32 %v1258_v1, %v1252_v55  ;;  %v1712_v55 = vld [vmem:[%s253_s10] sm:$0xff]  }
 0x3e4   : > { %v1356_v15 = vpop.permute.xlu1 %1355 }
 0x3e5   : > { %v1268_v37 = vadd.f32 %v1266_v20, %v1260_v54  ;;  %v1426_v20 = vsub.s32 4, %v1997_v18  ;;  %v1714_v54 = vunpack.c.h.bf16 %v1712_v55 }
 0x3e7   : > { %v1276_v63 = vadd.f32 %v1274_v51, %v1268_v37  ;;  %v1447_v51 = vsub.s32 7, %v1997_v18 }
 0x3e8   : > { %v1372_v19 = vpop.permute.xlu1 %1371 }
 0x3e9   : > { %v1284_v0 = vadd.f32 %v1282_v62, %v1276_v63 }
 0x3eb   : > { %v1289_v11 = vadd.f32 %v1288_v8, %v1284_v0 }
 0x3ec   : > { %v1388_v34 = vpop.permute.xlu1 %1387 }
 0x3ed   : > { %v1294_v13 = vadd.f32 %v1293_v12, %v1289_v11  ;;  %v1748_v11 = vld [vmem:[%s253_s10 + $0x10] sm:$0xff]  }
 0x3ef   : > { %v1302_v16 = vadd.f32 %v1300_v59, %v1294_v13  ;;  %v1713_v59 = vunpack.c.l.bf16 %v1712_v55 }
 0x3f1   : > { %v1310_v3 = vadd.f32 %v1308_v61, %v1302_v16  ;;  %v1747_v61 = vld [vmem:[%s253_s10 + $0x8] sm:$0xff]  }
 0x3f2   : > { %v1718_v0 = vunpack.c.h.bf16 %v1747_v61 }
 0x3f3   : > { %v1318_v24 = vadd.f32 %v1316_v10, %v1310_v3  ;;  %v1717_v10 = vunpack.c.l.bf16 %v1747_v61 }
 0x3f5   : > { %v1326_v25 = vadd.f32 %v1324_v46, %v1318_v24 }
 0x3f7   : > { %v1334_v28 = vadd.f32 %v1332_v2, %v1326_v25  ;;  %v1721_v25 = vunpack.c.l.bf16 %v1748_v11 }
 0x3f9   : > { %v1342_v29 = vadd.f32 %v1340_v23, %v1334_v28 }
 0x3fb   : > { %v1350_v6 = vadd.f32 %v1348_v17, %v1342_v29  ;;  %v1749_v17 = vld [vmem:[%s253_s10 + $0x18] sm:$0xff]  }
 0x3fd   : > { %v1358_v56 = vadd.f32 %v1356_v15, %v1350_v6 }
 0x3ff   : > { %v1366_v4 = vadd.f32 %v1364_v50, %v1358_v56  ;;  %v1726_v50 = vunpack.c.h.bf16 %v1749_v17 }
 0x401   : > { %v1374_v5 = vadd.f32 %v1372_v19, %v1366_v4 }
 0x403   : > { %v1382_v45 = vadd.f32 %v1380_v14, %v1374_v5  ;;  %v1725_v5 = vunpack.c.l.bf16 %v1749_v17 }
 0x405   : > { %v1390_v36 = vadd.f32 %v1388_v34, %v1382_v45 }
 0x407   : > { %v1391_v39 = vsub.f32 0.0, %v1390_v36 }
 0x409   : > { %v1392_v38 = vmul.f32 1.442695, %v1391_v39 }
 0x40b   : > { %1829 = vpow2.f32 %v1392_v38 }
 0x415   : > { %v1830_v35 = vpop.eup %1829 }
 0x416   : > { %v1394_v49 = vadd.f32 1.0, %v1830_v35 }
 0x418   : > { %1831 = vrcp.f32 %v1394_v49 }
 0x422   : > { %v1832_v58 = vpop.eup %1831 }
 0x423   : > { %v1406_v41 = vrot.slane %v1832_v58, %v1405_v40  ;;  %v1399_v42 = vrot.slane %v1832_v58, %v476_v21  ;;  %v1420_v57 = vrot.slane %v1832_v58, %v1419_v44  ;;  %v1413_v1 = vrot.slane %v1832_v58, %v1412_v43 }
 0x424   : > { %v1434_v22 = vrot.slane %v1832_v58, %v1433_v47  ;;  %v1427_v48 = vrot.slane %v1832_v58, %v1426_v20  ;;  %v1440_v21 = vsub.s32 6, %v1997_v18  ;;  %v1448_v52 = vrot.slane %v1832_v58, %v1447_v51 }
 0x425   : > { %1408 = vbcast.lane.b32.xlu1 %v1406_v41, 256  ;;  %1401 = vbcast.lane.b32.xlu0 %v1399_v42, 256 }
 0x426   : > { %v1441_v62 = vrot.slane %v1832_v58, %v1440_v21 }
 0x429   : > { %1422 = vbcast.lane.b32.xlu1 %v1420_v57, 256  ;;  %1415 = vbcast.lane.b32.xlu0 %v1413_v1, 256 }
 0x42d   : > { %1436 = vbcast.lane.b32.xlu1 %v1434_v22, 256  ;;  %1429 = vbcast.lane.b32.xlu0 %v1427_v48, 256 }
 0x431   : > { %1450 = vbcast.lane.b32.xlu1 %v1448_v52, 256  ;;  %1443 = vbcast.lane.b32.xlu0 %v1441_v62, 256 }
 0x497   : > { %v1409_v37 = vpop.permute.xlu1 %1408  ;;  %v1402_v60 = vpop.permute.xlu0 %1401 }
 0x498   : > { %v1453_v63 = vmul.f32 %v1409_v37, %v2014_v31  ;;  %v1452_v18 = vmul.f32 %v1402_v60, %v2006_v27  ;;  %v1722_v27 = vunpack.c.h.bf16 %v1748_v11 }
 0x49a   : > { %v1477_v53 = vadd.f32 %v1714_v54, %v1453_v63  ;;  %v1476_v8 = vadd.f32 %v1713_v59, %v1452_v18 }
 0x49b   : > { %v1423_v12 = vpop.permute.xlu1 %1422  ;;  %v1416_v46 = vpop.permute.xlu0 %1415 }
 0x49c   : > { %v1485_v13 = vmax.f32 %v1477_v53, 0.0  ;;  %v1484_v16 = vmax.f32 %v1476_v8, 0.0  ;;  %v1455_v2 = vmul.f32 %v1423_v12, %v2012_v30  ;;  %v1454_v3 = vmul.f32 %v1416_v46, %v2004_v26 }
 0x49e   : > { %v1730_v31 = vpack.c.bf16 %v1485_v13, %v1484_v16  ;;  %v1479_v23 = vadd.f32 %v1718_v0, %v1455_v2  ;;  %v1478_v24 = vadd.f32 %v1717_v10, %v1454_v3 }
 0x49f   : > { %v1437_v28 = vpop.permute.xlu1 %1436  ;;  %v1430_v15 = vpop.permute.xlu0 %1429 }
 0x4a0   : > { %1731 = vst [vmem:[%s2345_s15] sm:$0xff] %v1730_v31   ;;  %v1487_v29 = vmax.f32 %v1479_v23, 0.0  ;;  %v1486_v30 = vmax.f32 %v1478_v24, 0.0  ;;  %v1457_v26 = vmul.f32 %v1437_v28, %v2020_v32  ;;  %v1456_v6 = vmul.f32 %v1430_v15, %v2022_v7 }
 0x4a2   : > { %v1735_v56 = vpack.c.bf16 %v1487_v29, %v1486_v30  ;;  %v1481_v19 = vadd.f32 %v1722_v27, %v1457_v26  ;;  %v1480_v4 = vadd.f32 %v1721_v25, %v1456_v6 }
 0x4a3   : > { %v1451_v14 = vpop.permute.xlu1 %1450  ;;  %v1444_v45 = vpop.permute.xlu0 %1443 }
 0x4a4   : > { %1750 = vst [vmem:[%s2345_s15 + $0x8] sm:$0xff] %v1735_v56   ;;  %v1489_v34 = vmax.f32 %v1481_v19, 0.0  ;;  %v1488_v36 = vmax.f32 %v1480_v4, 0.0  ;;  %v1459_v39 = vmul.f32 %v1451_v14, %v2034_v33  ;;  %v1458_v38 = vmul.f32 %v1444_v45, %v2029_v9 }
 0x4a6   : > { %v1740_v35 = vpack.c.bf16 %v1489_v34, %v1488_v36  ;;  %v1483_v32 = vadd.f32 %v1726_v50, %v1459_v39  ;;  %v1482_v49 = vadd.f32 %v1725_v5, %v1458_v38 }
 0x4a8   : > { %1751 = vst [vmem:[%s2345_s15 + $0x10] sm:$0xff] %v1740_v35   ;;  %v1491_v7 = vmax.f32 %v1483_v32, 0.0  ;;  %v1490_v40 = vmax.f32 %v1482_v49, 0.0 }
 0x4aa   : > { %v1745_v58 = vpack.c.bf16 %v1491_v7, %v1490_v40 }
 0x4ac   : > { %1752 = vst [vmem:[%s2345_s15 + $0x18] sm:$0xff] %v1745_v58  }
 0x4ad PF: > { %s16_s18 = sadd.s32 1, %s1858_s18  }
 0x4ae   : > { %p13_p1 = scmp.ge.s32.totalorder %s16_s18, 4  }
 0x4b0   :  { %15 = sbr.rel (!%p13_p1) target bundleno = 1 (0x1), region = 78 }
 0x4b7   :  { %1529 = vsyncpa [#allocation5], 1 }
 0x4b8   :  { %1531 = vsyncpa [#allocation5 + $0x1], 1 }

// kernel: _lambda_.6
= control target key start
LH: loop header
LB: loop body
LE: loop exit
PB: predicated region body
PF: predicated region fallthrough
CT: control target
= control target key end

     0   :  { %s2762_s15 = smov 0   ;;  %s3256_s0 = inlined_call_operand.vmem [shape: bf16[2,8,8,128], index: 0, kind: input, shape index: {}]   ;;  %s3257_s1 = inlined_call_operand.vmem [shape: bf16[1152,128], index: 1, kind: input, shape index: {}]   ;;  %s3258_s2 = inlined_call_operand.vmem [shape: f32[1,128], index: 2, kind: input, shape index: {}]   ;;  %s3259_s3 = inlined_call_operand.vmem [shape: f32[1,128], index: 3, kind: input, shape index: {}]   ;;  %s3260_s4 = inlined_call_operand.vmem [shape: bf16[2,8,8,128], index: 4, kind: output, shape index: {}]  }
   0x1 LB: > { %s2253_s16 = sadd.s32 4294967295, %s2734_s15   ;;  %p2257_p0 = scmp.ge.s32.totalorder %s2734_s15, 1  ;;  %s2734_s15 = sphi %s2762_s15, %s14_s15  }
   0x2   : > { %p162_p1 = scmp.lt.s32.totalorder %s2734_s15, 3 }
   0x4   : > { %p163_p2 = pnand %p2257_p0, %p162_p1 }
   0x5   : > { %v2644_v0 = vld [vmem:[%s3257_s1 + $0x40] sm:$0xff] (!%p163_p2)   ;;  %v2736_v3 = vmov (!%p163_p2), 0   ;;  %v2648_v5 = vld [vmem:[%s3257_s1 + $0x48] sm:$0xff] (!%p163_p2)   ;;  %v2652_v9 = vld [vmem:[%s3257_s1 + $0x50] sm:$0xff] (!%p163_p2)   ;;  %p188_p3 = scmp.lt.s32.totalorder (!%p163_p2), %s2253_s16, 1  ;;  %vm205_vm0 = vcmask (!%p163_p2), 1040384  }
   0x6   : > { %166 = sbr.rel (%p163_p2) target bundleno = 375 (0x177), region = 36  ;;  %v2645_v1 = vld [vmem:[%s3257_s1 + $0xc0] sm:$0xff] (!%p163_p2)   ;;  %2423 = vmatprep.subr.bf16.mxu0 (!%p163_p2), %v2644_v0  ;;  %199 = vst [vmem:[#allocation2] sm:$0xf] (!%p163_p2), %v2736_v3  ;;  %200 = vst [vmem:[#allocation2 + $0x4] sm:$0x1] (!%p163_p2), %v2736_v3 }
   0x7   : > { %v2646_v2 = vld [vmem:[%s3257_s1] sm:$0xff] (!%p163_p2)   ;;  %202 = vst [vmem:[#allocation2 + $0x48] sm:$0xf] (!%p163_p2), %v2736_v3  ;;  %203 = vst [vmem:[#allocation2 + $0x4c] sm:$0x1] (!%p163_p2), %v2736_v3  ;;  %2463 = vmatprep.subr.bf16.mxu1 (!%p163_p2), %v2645_v1  ;;  %v2649_v6 = vld [vmem:[%s3257_s1 + $0xc8] sm:$0xff] (!%p163_p2)  }
   0x8   : > { %v2647_v4 = vld [vmem:[%s3257_s1 + $0x80] sm:$0xff] (!%p163_p2)   ;;  %2424 = vmatpush3.bf16.msra.mxu0 (!%p163_p2), %v2646_v2  ;;  %v2650_v7 = vld [vmem:[%s3257_s1 + $0x8] sm:$0xff] (!%p163_p2)   ;;  %v2653_v10 = vld [vmem:[%s3257_s1 + $0xd0] sm:$0xff] (!%p163_p2)   ;;  %vm206_vm1 = vsmask.f32 (!%p163_p2), 256  ;;  %vm346_vm5 = vcmask (!%p163_p2), 1043456  }
   0x9   : > { %2464 = vmatpush3.bf16.msra.mxu1 (!%p163_p2), %v2647_v4  ;;  %2425 = vmatprep.subr.bf16.mxu0 (!%p163_p2), %v2648_v5  ;;  %v2651_v8 = vld [vmem:[%s3257_s1 + $0x88] sm:$0xff] (!%p163_p2)   ;;  %v2654_v11 = vld [vmem:[%s3257_s1 + $0x10] sm:$0xff] (!%p163_p2)   ;;  %v2656_v13 = vld [vmem:[%s3257_s1 + $0x58] sm:$0xff] (!%p163_p2)   ;;  %vm232_vm2 = vsmask.f32 (!%p163_p2), 7938  ;;  %vm615_vm9 = vcmask (!%p163_p2), 1042432  }
   0xa   : > { %2465 = vmatprep.subr.bf16.mxu1 (!%p163_p2), %v2649_v6  ;;  %v2655_v12 = vld [vmem:[%s3257_s1 + $0x90] sm:$0xff] (!%p163_p2)   ;;  %v2657_v14 = vld [vmem:[%s3257_s1 + $0xd8] sm:$0xff] (!%p163_p2)   ;;  %v2660_v17 = vld [vmem:[%s3257_s1 + $0x60] sm:$0xff] (!%p163_p2)   ;;  %vm448_vm7 = vsmask.f32 (!%p163_p2), 3328  ;;  %vm616_vm10 = vcmask (!%p163_p2), 1046532  }
   0xb   : > { %v2658_v15 = vld [vmem:[%s3257_s1 + $0x18] sm:$0xff] (!%p163_p2)   ;;  %v2661_v18 = vld [vmem:[%s3257_s1 + $0xe0] sm:$0xff] (!%p163_p2)   ;;  %v2664_v21 = vld [vmem:[%s3257_s1 + $0x68] sm:$0xff] (!%p163_p2)   ;;  %vm449_vm8 = vsmask.f32 (!%p163_p2), 7440 }
   0xc   : > { %2426 = vmatpush3.bf16.msra.mxu0 (!%p163_p2), %v2650_v7  ;;  %v2659_v16 = vld [vmem:[%s3257_s1 + $0x98] sm:$0xff] (!%p163_p2)   ;;  %v2662_v19 = vld [vmem:[%s3257_s1 + $0x20] sm:$0xff] (!%p163_p2)   ;;  %v2665_v22 = vld [vmem:[%s3257_s1 + $0xe8] sm:$0xff] (!%p163_p2)  }
   0xd   : > { %2466 = vmatpush3.bf16.msra.mxu1 %v2651_v8  ;;  %2427 = vmatprep.subr.bf16.mxu0 %v2652_v9  ;;  %v2663_v20 = vld [vmem:[%s3257_s1 + $0xa0] sm:$0xff]   ;;  %v2666_v23 = vld [vmem:[%s3257_s1 + $0x28] sm:$0xff]   ;;  %s3272_s16 = smov (!%p188_p3, %s2253_s16), 1  ;;  %v2668_v25 = vld [vmem:[%s3257_s1 + $0x70] sm:$0xff]  }
   0xe   : > { %2467 = vmatprep.subr.bf16.mxu1 %v2653_v10  ;;  %v2667_v24 = vld [vmem:[%s3257_s1 + $0xa8] sm:$0xff]   ;;  %v2669_v26 = vld [vmem:[%s3257_s1 + $0xf0] sm:$0xff]   ;;  %s2398_s25 = sshll.u32 %s3272_s16, 5  ;;  %v2672_v29 = vld [vmem:[%s3257_s1 + $0x78] sm:$0xff]  }
   0xf   : > { %v2670_v27 = vld [vmem:[%s3257_s1 + $0x30] sm:$0xff]   ;;  %v2673_v30 = vld [vmem:[%s3257_s1 + $0xf8] sm:$0xff]   ;;  %s2875_s8 = scalar_lea.vmem %s3256_s0, %s2398_s25  ;;  %v208_v33 = vld [vmem:[#allocation2 + $0x8] sm:$0x1]  ;;  %s197_s6 = scalar_lea.vmem %s3260_s4, %s2398_s25 }
  0x10   : > { %2428 = vmatpush3.bf16.msra.mxu0 %v2654_v11  ;;  %v2671_v28 = vld [vmem:[%s3257_s1 + $0xb0] sm:$0xff]   ;;  %v2674_v31 = vld [vmem:[%s3257_s1 + $0x38] sm:$0xff]   ;;  %vm2880_vm3 = vmand %vm205_vm0, %vm206_vm1 }
  0x11   : > { %2468 = vmatpush3.bf16.msra.mxu1 %v2655_v12  ;;  %2429 = vmatprep.subr.bf16.mxu0 %v2656_v13  ;;  %v2675_v32 = vld [vmem:[%s3257_s1 + $0xb8] sm:$0xff]   ;;  %v234_v35 = vld [vmem:[#allocation2 + $0xc] sm:$0x1]  ;;  %v258_v36 = vld [vmem:[%s2875_s8] sm:$0xf]  ;;  %v209_v37 = vsel %vm2880_vm3, 0, %v208_v33 }
  0x12   : > { %2469 = vmatprep.subr.bf16.mxu1 %v2657_v14  ;;  %vm2888_vm4 = vmand %vm205_vm0, %vm232_vm2  ;;  %v267_v39 = vshrl.u32 %v258_v36, 16  ;;  %v270_v40 = vshll.u32 %v258_v36, 16  ;;  %v432_v41 = vld [vmem:[#allocation2] sm:$0xf]  ;;  %210 = vst [vmem:[#allocation2 + $0x8] sm:$0x1] %v209_v37 }
  0x13   : > { %v2678_v42 = vld [vmem:[%s3257_s1 + $0x140] sm:$0xff]   ;;  %v235_v43 = vsel %vm2888_vm4, 0, %v234_v35  ;;  %v452_v45 = vshrl.u32 %v432_v41, 16  ;;  %v455_v47 = vshll.u32 %v432_v41, 16  ;;  %v211_v48 = vld [vmem:[#allocation2 + $0x10] sm:$0x1]  ;;  %vm2904_vm6 = vmand %vm346_vm5, %vm232_vm2 }
  0x14   : > { %2430 = vmatpush3.bf16.msra.mxu0 %v2658_v15  ;;  %v433_v44 = vld [vmem:[#allocation2 + $0x4] sm:$0x1]  ;;  %236 = vst [vmem:[#allocation2 + $0xc] sm:$0x1] %v235_v43  ;;  %v269_v46 = vrot.slane %v267_v39, 7  ;;  %v212_v50 = vsel %vm2880_vm3, 0, %v211_v48  ;;  %vm2925_vm11 = vmor %vm615_vm9, %vm616_vm10 }
  0x15   : > { %2470 = vmatpush3.bf16.msra.mxu1 %v2659_v16  ;;  %2431 = vmatprep.subr.bf16.mxu0 %v2660_v17  ;;  %v2679_v49 = vld [vmem:[%s3257_s1 + $0x1c0] sm:$0xff]   ;;  %v454_v53 = vrot.slane %v452_v45, 4  ;;  %v461_v54 = vshll.u32 %v433_v44, 16  ;;  %213 = vst [vmem:[#allocation2 + $0x10] sm:$0x1] %v212_v50  ;;  %v457_v57 = vrot.slane %v455_v47, 5  ;;  %vm2936_vm12 = vmor %vm448_vm7, %vm449_vm8 }
  0x16   : > { %2471 = vmatprep.subr.bf16.mxu1 %v2661_v18  ;;  %v259_v51 = vld [vmem:[%s2875_s8 + $0x4] sm:$0xf]  ;;  %v272_v52 = vor.u32 %v270_v40, %v269_v46  ;;  %v273_v55 = vrot.slane %v269_v46, 4  ;;  %v583_v60 = vld [vmem:[#allocation2] sm:$0xe] }
  0x17   : > { %v275_v58 = vshrl.u32 %v259_v51, 16  ;;  %v278_v59 = vshll.u32 %v259_v51, 16  ;;  %v584_v61 = vld [vmem:[#allocation2 + $0x4] sm:$0x1]  ;;  %v2910_v0 = vrot.slane %v461_v54, 5  ;;  %v2270_v4 = vrot.slane %v583_v60, 9 }
  0x18   : > { %2432 = vmatpush3.bf16.msra.mxu0 %v2662_v19  ;;  %v620_v5 = vrot.slane %v584_v61, 5  ;;  %v458_v7 = vor.u32 %v457_v57, %v454_v53  ;;  %v214_v10 = vld [vmem:[#allocation2 + $0x18] sm:$0x1]  ;;  %v237_v13 = vld [vmem:[#allocation2 + $0x14] sm:$0x1]  ;;  %v2681_v47 = vld [vmem:[%s3257_s1 + $0x180] sm:$0xff]  }
  0x19   : > { %2472 = vmatpush3.bf16.msra.mxu1 %v2663_v20  ;;  %2433 = vmatprep.subr.bf16.mxu0 %v2664_v21  ;;  %v2908_v62 = vrot.slane %v275_v58, 7  ;;  %v348_v63 = vld [vmem:[#allocation2 + $0x8] sm:$0xf]  ;;  %v215_v12 = vsel %vm2880_vm3, 0, %v214_v10  ;;  %v240_v14 = vld [vmem:[#allocation2 + $0x1c] sm:$0x1] }
  0x1a   : > { %2473 = vmatprep.subr.bf16.mxu1 %v2665_v22  ;;  %v349_v1 = vsel %vm2904_vm6, %v272_v52, %v348_v63  ;;  %v2919_v11 = vrot.slane %v458_v7, 4  ;;  %216 = vst [vmem:[#allocation2 + $0x18] sm:$0x1] %v215_v12  ;;  %v238_v16 = vsel %vm2888_vm4, 0, %v237_v13  ;;  %v241_v17 = vsel %vm2888_vm4, 0, %v240_v14  ;;  %v2683_v61 = vld [vmem:[%s3257_s1 + $0x1c8] sm:$0xff]  }
  0x1b   : > { %v351_v2 = vld [vmem:[#allocation2 + $0xc] sm:$0x1]  ;;  %v280_v3 = vor.u32 %v278_v59, %v2908_v62  ;;  %350 = vst [vmem:[#allocation2 + $0x8] sm:$0xf] %v349_v1  ;;  %v260_v18 = vld [vmem:[%s2875_s8 + $0x8] sm:$0xf]  ;;  %v621_v40 = vsel %vm2925_vm11, %v2270_v4, %v620_v5 }
  0x1c   : > { %2434 = vmatpush3.bf16.msra.mxu0 %v2666_v23  ;;  %v352_v6 = vsel %vm2880_vm3, %v273_v55, %v351_v2  ;;  %v354_v8 = vld [vmem:[#allocation2 + $0x10] sm:$0xf]  ;;  %v217_v19 = vld [vmem:[#allocation2 + $0x20] sm:$0x1]  ;;  %v281_v21 = vrot.slane %v2908_v62, 4  ;;  %v283_v22 = vshrl.u32 %v260_v18, 16  ;;  %v464_v35 = vsel %vm2936_vm12, %v2919_v11, %v2910_v0 }
  0x1d   : > { %2474 = vmatpush3.bf16.msra.mxu1 %v2667_v24  ;;  %2435 = vmatprep.subr.bf16.mxu0 %v2668_v25  ;;  %353 = vst [vmem:[#allocation2 + $0xc] sm:$0x1] %v352_v6  ;;  %v355_v9 = vsel %vm2904_vm6, %v280_v3, %v354_v8  ;;  %239 = vst [vmem:[#allocation2 + $0x14] sm:$0x1] %v238_v16  ;;  %v286_v23 = vshll.u32 %v260_v18, 16  ;;  %v218_v24 = vsel %vm2880_vm3, 0, %v217_v19 }
  0x1e   : > { %2475 = vmatprep.subr.bf16.mxu1 %v2669_v26  ;;  %356 = vst [vmem:[#allocation2 + $0x10] sm:$0xf] %v355_v9  ;;  %242 = vst [vmem:[#allocation2 + $0x1c] sm:$0x1] %v241_v17  ;;  %v285_v33 = vrot.slane %v283_v22, 7  ;;  %v2680_v1 = vld [vmem:[%s3257_s1 + $0x100] sm:$0xff]  }
  0x1f   : > { %219 = vst [vmem:[#allocation2 + $0x20] sm:$0x1] %v218_v24  ;;  %v2685_v2 = vld [vmem:[%s3257_s1 + $0x188] sm:$0xff]   ;;  %v2689_v11 = vld [vmem:[%s3257_s1 + $0x1d0] sm:$0xff]   ;;  %v2693_v19 = vld [vmem:[%s3257_s1 + $0x1d8] sm:$0xff]  }
  0x20   : > { %2436 = vmatpush3.bf16.msra.mxu0 %v2670_v27  ;;  %v288_v44 = vor.u32 %v286_v23, %v285_v33  ;;  %v289_v48 = vrot.slane %v285_v33, 4  ;;  %v2682_v7 = vld [vmem:[%s3257_s1 + $0x148] sm:$0xff]   ;;  %v2691_v17 = vld [vmem:[%s3257_s1 + $0x190] sm:$0xff]  }
  0x21   : > { %2476 = vmatpush3.bf16.msra.mxu1 %v2671_v28  ;;  %2437 = vmatprep.subr.bf16.mxu0 %v2672_v29  ;;  %v261_v29 = vld [vmem:[%s2875_s8 + $0xc] sm:$0xf]  ;;  %v2688_v18 = vld [vmem:[%s3257_s1 + $0x150] sm:$0xff]  }
  0x22   : > { %2477 = vmatprep.subr.bf16.mxu1 %v2673_v30  ;;  %v434_v25 = vld [vmem:[#allocation2 + $0x8] sm:$0xf]  ;;  %v291_v57 = vshrl.u32 %v261_v29, 16  ;;  %v294_v58 = vshll.u32 %v261_v29, 16 }
  0x23   : > { %v466_v27 = vshrl.u32 %v434_v25, 16  ;;  %v469_v28 = vshll.u32 %v434_v25, 16  ;;  %v2677_v0 = vld [vmem:[#allocation2] ss:$8 sps:$4 sm:$0xff]  }
  0x24   : > { %2438 = vmatpush3.bf16.msra.mxu0 %v2674_v31  ;;  %v435_v26 = vld [vmem:[#allocation2 + $0xc] sm:$0x1]  ;;  %v585_v31 = vld [vmem:[#allocation2 + $0x8] sm:$0xe]  ;;  %v357_v53 = vld [vmem:[#allocation2 + $0x14] sm:$0x1] }
  0x25   : > { %2478 = vmatpush3.bf16.msra.mxu1 %v2675_v32  ;;  %2503 = vmatprep.subr.bf16.mxu0 %v2678_v42  ;;  %v475_v30 = vshll.u32 %v435_v26, 16  ;;  %v586_v32 = vld [vmem:[#allocation2 + $0xc] sm:$0x1]  ;;  %v468_v36 = vrot.slane %v466_v27, 4  ;;  %v471_v37 = vrot.slane %v469_v28, 5  ;;  %v2271_v42 = vrot.slane %v585_v31, 9 }
  0x26   : > { %2543 = vmatprep.subr.bf16.mxu1 %v2679_v49  ;;  %v2676_v39 = vld [vmem:[#allocation2 + $0x8] ss:$8 sps:$4 sm:$0xff]   ;;  %v624_v43 = vrot.slane %v586_v32, 5  ;;  %v360_v49 = vld [vmem:[#allocation2 + $0x18] sm:$0xf]  ;;  %v358_v62 = vsel %vm2880_vm3, %v281_v21, %v357_v53  ;;  %v2970_v5 = vrot.slane %v291_v57, 7 }
  0x27   : > { %v477_v41 = vrot.slane %v475_v30, 5  ;;  %v436_v45 = vld [vmem:[#allocation2 + $0x10] sm:$0xf]  ;;  %v472_v46 = vor.u32 %v471_v37, %v468_v36  ;;  %1916 = vmatprep.mubr.bf16.mxu1 %v2676_v39  ;;  %v361_v54 = vsel %vm2904_vm6, %v288_v44, %v360_v49  ;;  %v363_v55 = vld [vmem:[#allocation2 + $0x1c] sm:$0x1]  ;;  %v2684_v12 = vld [vmem:[%s3257_s1 + $0x108] sm:$0xff]  }
  0x28   : > { %v480_v50 = vshrl.u32 %v436_v45, 16  ;;  %v483_v51 = vshll.u32 %v436_v45, 16  ;;  %v625_v52 = vsel %vm2925_vm11, %v2271_v42, %v624_v43  ;;  %362 = vst [vmem:[#allocation2 + $0x18] sm:$0xf] %v361_v54  ;;  %v364_v63 = vsel %vm2880_vm3, %v289_v48, %v363_v55  ;;  %359 = vst [vmem:[#allocation2 + $0x14] sm:$0x1] %v358_v62 }
  0x29   : > { %v473_v59 = vrot.slane %v472_v46, 4  ;;  %v2278_v60 = vcombine.low %v621_v40, %v625_v52  ;;  %365 = vst [vmem:[#allocation2 + $0x1c] sm:$0x1] %v364_v63  ;;  %v366_v8 = vld [vmem:[#allocation2 + $0x20] sm:$0xf]  ;;  %v296_v10 = vor.u32 %v294_v58, %v2970_v5  ;;  %v2690_v31 = vld [vmem:[%s3257_s1 + $0x110] sm:$0xff]  }
  0x2a   : > { %v482_v3 = vrot.slane %v480_v50, 4  ;;  %v485_v4 = vrot.slane %v483_v51, 5  ;;  %v587_v16 = vld [vmem:[#allocation2 + $0x10] sm:$0xe]  ;;  %v2692_v37 = vld [vmem:[%s3257_s1 + $0x158] sm:$0xff]   ;;  %v2699_v46 = vld [vmem:[%s3257_s1 + $0x1e0] sm:$0xff]  }
  0x2b   : > { %v478_v6 = vsel %vm2936_vm12, %v473_v59, %v477_v41  ;;  %1917 = vmatmul.mubr.bf16.vlgmr.msra.gmra.mrb[0].mxu1 %v2278_v60  ;;  %v367_v14 = vsel %vm2904_vm6, %v296_v10, %v366_v8  ;;  %v2272_v30 = vrot.slane %v587_v16, 9  ;;  %v2695_v39 = vld [vmem:[%s3257_s1 + $0x198] sm:$0xff]   ;;  %v220_v54 = vld [vmem:[#allocation2 + $0x28] sm:$0x1]  ;;  %v243_v55 = vld [vmem:[#allocation2 + $0x24] sm:$0x1] }
  0x2c   : > { %v2266_v9 = vcombine.low %v464_v35, %v478_v6  ;;  %2544 = vmatpush3.bf16.msra.mxu1 %v2681_v47  ;;  %v486_v13 = vor.u32 %v485_v4, %v482_v3  ;;  %368 = vst [vmem:[#allocation2 + $0x20] sm:$0xf] %v367_v14  ;;  %v2694_v53 = vld [vmem:[%s3257_s1 + $0x118] sm:$0xff]   ;;  %v221_v58 = vsel %vm2880_vm3, 0, %v220_v54  ;;  %v244_v59 = vsel %vm2888_vm4, 0, %v243_v55  ;;  %v2698_v3 = vld [vmem:[%s3257_s1 + $0x160] sm:$0xff]  }
  0x2d   : > { %2545 = vmatprep.subr.bf16.mxu1 %v2683_v61  ;;  %v246_v60 = vld [vmem:[#allocation2 + $0x2c] sm:$0x1]  ;;  %v262_v61 = vld [vmem:[%s2875_s8 + $0x10] sm:$0xf]  ;;  %222 = vst [vmem:[#allocation2 + $0x28] sm:$0x1] %v221_v58 }
  0x2e   : > { %1851 = vmatprep.mubr.bf16.mxu0 %v2266_v9  ;;  %v487_v26 = vrot.slane %v486_v13, 4  ;;  %245 = vst [vmem:[#allocation2 + $0x24] sm:$0x1] %v244_v59  ;;  %v247_v63 = vsel %vm2888_vm4, 0, %v246_v60  ;;  %v223_v6 = vld [vmem:[#allocation2 + $0x30] sm:$0x1] }
  0x2f   : > { %1852 = vmatmul.mubr.bf16.vlgmr.msra.gmra.mrb[0].mxu0 %v2677_v0  ;;  %v438_v21 = vld [vmem:[#allocation2 + $0x18] sm:$0xf]  ;;  %v437_v22 = vld [vmem:[#allocation2 + $0x14] sm:$0x1]  ;;  %v299_v0 = vshrl.u32 %v262_v61, 16  ;;  %v2701_v8 = vld [vmem:[%s3257_s1 + $0x1a0] sm:$0xff]  }
  0x30   : > { %2504 = vmatpush3.bf16.msra.mxu0 %v2680_v1  ;;  %2546 = vmatpush3.bf16.msra.mxu1 %v2685_v2  ;;  %v439_v23 = vld [vmem:[#allocation2 + $0x1c] sm:$0x1]  ;;  %v494_v24 = vshrl.u32 %v438_v21, 16  ;;  %v497_v25 = vshll.u32 %v438_v21, 16  ;;  %v489_v27 = vshll.u32 %v437_v22, 16  ;;  %v302_v1 = vshll.u32 %v262_v61, 16 }
  0x31   : > { %2505 = vmatprep.subr.bf16.mxu0 %v2682_v7  ;;  %2547 = vmatprep.subr.bf16.mxu1 %v2689_v11  ;;  %v503_v28 = vshll.u32 %v439_v23, 16  ;;  %v588_v29 = vld [vmem:[#allocation2 + $0x14] sm:$0x1]  ;;  %v589_v35 = vld [vmem:[#allocation2 + $0x18] sm:$0xe]  ;;  %v301_v9 = vrot.slane %v299_v0, 7 }
  0x32   : > { %v496_v32 = vrot.slane %v494_v24, 4  ;;  %v499_v33 = vrot.slane %v497_v25, 5  ;;  %v590_v36 = vld [vmem:[#allocation2 + $0x1c] sm:$0x1]  ;;  %v491_v40 = vrot.slane %v489_v27, 5  ;;  %v628_v42 = vrot.slane %v588_v29, 5 }
  0x33   : > { %v505_v41 = vrot.slane %v503_v28, 5  ;;  %v2273_v43 = vrot.slane %v589_v35, 9  ;;  %v632_v45 = vrot.slane %v590_v36, 5  ;;  %v2686_v47 = vld [vmem:[#allocation2 + $0x18] ss:$8 sps:$4 sm:$0xff]   ;;  %v224_v11 = vsel %vm2880_vm3, 0, %v223_v6 }
  0x34   : > { %2506 = vmatpush3.bf16.msra.mxu0 %v2684_v12  ;;  %2548 = vmatpush3.bf16.msra.mxu1 %v2691_v17  ;;  %v500_v44 = vor.u32 %v499_v33, %v496_v32  ;;  %v629_v48 = vsel %vm2925_vm11, %v2272_v30, %v628_v42  ;;  %v492_v49 = vsel %vm2936_vm12, %v487_v26, %v491_v40  ;;  %v2687_v51 = vld [vmem:[#allocation2 + $0x10] ss:$8 sps:$4 sm:$0xff]   ;;  %v440_v2 = vld [vmem:[#allocation2 + $0x20] sm:$0xf]  ;;  %v263_v7 = vld [vmem:[%s2875_s8 + $0x14] sm:$0xf] }
  0x35   : > { %2507 = vmatprep.subr.bf16.mxu0 %v2688_v18  ;;  %2549 = vmatprep.subr.bf16.mxu1 %v2693_v19  ;;  %v633_v52 = vsel %vm2925_vm11, %v2273_v43, %v632_v45  ;;  %248 = vst [vmem:[#allocation2 + $0x2c] sm:$0x1] %v247_v63  ;;  %v508_v10 = vshrl.u32 %v440_v2, 16  ;;  %v307_v12 = vshrl.u32 %v263_v7, 16  ;;  %v511_v13 = vshll.u32 %v440_v2, 16  ;;  %v2700_v16 = vld [vmem:[%s3257_s1 + $0x120] sm:$0xff]  }
  0x36   : > { %v501_v50 = vrot.slane %v500_v44, 4  ;;  %1924 = vmatprep.mubr.bf16.mxu1 %v2686_v47  ;;  %v2279_v57 = vcombine.low %v629_v48, %v633_v52  ;;  %225 = vst [vmem:[#allocation2 + $0x30] sm:$0x1] %v224_v11  ;;  %v310_v14 = vshll.u32 %v263_v7, 16  ;;  %v297_v17 = vrot.slane %v2970_v5, 4  ;;  %v2702_v22 = vld [vmem:[%s3257_s1 + $0x168] sm:$0xff]  }
  0x37   : > { %v304_v18 = vor.u32 %v302_v1, %v301_v9  ;;  %v305_v19 = vrot.slane %v301_v9, 4  ;;  %v3038_v21 = vrot.slane %v307_v12, 7  ;;  %v510_v23 = vrot.slane %v508_v10, 4  ;;  %v3043_v24 = vld [vmem:[#allocation2 + $0x20] sm:$0xe]  ;;  %v2703_v25 = vld [vmem:[%s3257_s1 + $0x1e8] sm:$0xff]  }
  0x38   : > { %2508 = vmatpush3.bf16.msra.mxu0 %v2690_v31  ;;  %v506_v62 = vsel %vm2936_vm12, %v501_v50, %v505_v41  ;;  %2550 = vmatpush3.bf16.msra.mxu1 %v2695_v39  ;;  %v369_v26 = vld [vmem:[#allocation2 + $0x24] sm:$0x1]  ;;  %v372_v5 = vld [vmem:[#allocation2 + $0x28] sm:$0xf]  ;;  %v513_v27 = vrot.slane %v511_v13, 5  ;;  %v2708_v47 = vld [vmem:[%s3257_s1 + $0x170] sm:$0xff]  }
  0x39   : > { %2509 = vmatprep.subr.bf16.mxu0 %v2692_v37  ;;  %v2267_v4 = vcombine.low %v492_v49, %v506_v62  ;;  %1925 = vmatmul.mubr.bf16.gmra.mrb[4].mxu1 %v2279_v57  ;;  %v312_v28 = vor.u32 %v310_v14, %v3038_v21  ;;  %v2704_v29 = vld [vmem:[%s3257_s1 + $0x128] sm:$0xff]   ;;  %v370_v30 = vsel %vm2880_vm3, %v297_v17, %v369_v26  ;;  %v2274_v37 = vrot.slane %v3043_v24, 9  ;;  %v226_v40 = vld [vmem:[#allocation2 + $0x38] sm:$0x1]  ;;  %v249_v41 = vld [vmem:[#allocation2 + $0x34] sm:$0x1] }
  0x3a   : > { %2551 = vmatprep.subr.bf16.mxu1 %v2699_v46  ;;  %v373_v31 = vsel %vm2904_vm6, %v304_v18, %v372_v5  ;;  %371 = vst [vmem:[#allocation2 + $0x24] sm:$0x1] %v370_v30  ;;  %v2705_v39 = vld [vmem:[%s3257_s1 + $0x1a8] sm:$0xff]   ;;  %v252_v42 = vld [vmem:[#allocation2 + $0x3c] sm:$0x1]  ;;  %v227_v43 = vsel %vm2880_vm3, 0, %v226_v40  ;;  %v514_v48 = vor.u32 %v513_v27, %v510_v23 }
  0x3b   : > { %1859 = vmatprep.mubr.bf16.mxu0 %v2267_v4  ;;  %374 = vst [vmem:[#allocation2 + $0x28] sm:$0xf] %v373_v31  ;;  %v250_v44 = vsel %vm2888_vm4, 0, %v249_v41  ;;  %v253_v45 = vsel %vm2888_vm4, 0, %v252_v42  ;;  %v264_v46 = vld [vmem:[%s2875_s8 + $0x18] sm:$0xf] }
  0x3c   : > { %2510 = vmatpush3.bf16.msra.mxu0 %v2694_v53  ;;  %2552 = vmatpush3.bf16.msra.mxu1 %v2701_v8  ;;  %v375_v32 = vld [vmem:[#allocation2 + $0x2c] sm:$0x1]  ;;  %228 = vst [vmem:[#allocation2 + $0x38] sm:$0x1] %v227_v43  ;;  %251 = vst [vmem:[#allocation2 + $0x34] sm:$0x1] %v250_v44 }
  0x3d   : > { %1860 = vmatmul.mubr.bf16.gmra.mrb[4].mxu0 %v2687_v51  ;;  %2511 = vmatprep.subr.bf16.mxu0 %v2698_v3  ;;  %v376_v33 = vsel %vm2880_vm3, %v305_v19, %v375_v32  ;;  %v378_v35 = vld [vmem:[#allocation2 + $0x30] sm:$0xf]  ;;  %254 = vst [vmem:[#allocation2 + $0x3c] sm:$0x1] %v253_v45  ;;  %v315_v49 = vshrl.u32 %v264_v46, 16  ;;  %v318_v50 = vshll.u32 %v264_v46, 16 }
  0x3e   : > { %2553 = vmatprep.subr.bf16.mxu1 %v2703_v25  ;;  %377 = vst [vmem:[#allocation2 + $0x2c] sm:$0x1] %v376_v33  ;;  %v379_v36 = vsel %vm2904_vm6, %v312_v28, %v378_v35  ;;  %v229_v51 = vld [vmem:[#allocation2 + $0x40] sm:$0x1]  ;;  %v265_v52 = vld [vmem:[%s2875_s8 + $0x1c] sm:$0xf] }
  0x3f   : > { %380 = vst [vmem:[#allocation2 + $0x30] sm:$0xf] %v379_v36  ;;  %v230_v53 = vsel %vm2880_vm3, 0, %v229_v51  ;;  %v323_v54 = vshrl.u32 %v265_v52, 16  ;;  %v326_v55 = vshll.u32 %v265_v52, 16  ;;  %v2709_v57 = vld [vmem:[%s3257_s1 + $0x1f0] sm:$0xff]  }
  0x40   : > { %2512 = vmatpush3.bf16.msra.mxu0 %v2700_v16  ;;  %2554 = vmatpush3.bf16.msra.mxu1 %v2705_v39  ;;  %231 = vst [vmem:[#allocation2 + $0x40] sm:$0x1] %v230_v53  ;;  %v317_v0 = vrot.slane %v315_v49, 7  ;;  %v515_v1 = vrot.slane %v514_v48, 4  ;;  %v313_v3 = vrot.slane %v3038_v21, 4  ;;  %v2710_v10 = vld [vmem:[%s3257_s1 + $0x130] sm:$0xff]  }
  0x41   : > { %2513 = vmatprep.subr.bf16.mxu0 %v2702_v22  ;;  %v441_v58 = vld [vmem:[#allocation2 + $0x24] sm:$0x1]  ;;  %2555 = vmatprep.subr.bf16.mxu1 %v2709_v57  ;;  %v3081_v4 = vrot.slane %v323_v54, 7  ;;  %v2711_v35 = vld [vmem:[%s3257_s1 + $0x1b0] sm:$0xff]   ;;  %v2712_v48 = vld [vmem:[%s3257_s1 + $0x178] sm:$0xff]  }
  0x42   : > { %v442_v59 = vld [vmem:[#allocation2 + $0x28] sm:$0xf]  ;;  %v517_v61 = vshll.u32 %v441_v58, 16  ;;  %v320_v9 = vor.u32 %v318_v50, %v317_v0  ;;  %v592_v12 = vld [vmem:[#allocation2 + $0x24] sm:$0x1]  ;;  %v321_v13 = vrot.slane %v317_v0, 4 }
  0x43   : > { %v522_v62 = vshrl.u32 %v442_v59, 16  ;;  %v525_v63 = vshll.u32 %v442_v59, 16  ;;  %v593_v17 = vld [vmem:[#allocation2 + $0x28] sm:$0xe]  ;;  %v636_v19 = vrot.slane %v592_v12, 5  ;;  %v328_v21 = vor.u32 %v326_v55, %v3081_v4  ;;  %v2713_v49 = vld [vmem:[%s3257_s1 + $0x1f8] sm:$0xff]  }
  0x44   : > { %2514 = vmatpush3.bf16.msra.mxu0 %v2704_v29  ;;  %v519_v6 = vrot.slane %v517_v61, 5  ;;  %v2275_v23 = vrot.slane %v593_v17, 9  ;;  %v381_v26 = vld [vmem:[#allocation2 + $0x34] sm:$0x1]  ;;  %v384_v5 = vld [vmem:[#allocation2 + $0x38] sm:$0xf]  ;;  %2556 = vmatpush3.bf16.msra.mxu1 %v2711_v35 }
  0x45   : > { %2515 = vmatprep.subr.bf16.mxu0 %v2708_v47  ;;  %v443_v60 = vld [vmem:[#allocation2 + $0x2c] sm:$0x1]  ;;  %v524_v7 = vrot.slane %v522_v62, 4  ;;  %v527_v8 = vrot.slane %v525_v63, 5  ;;  %v2697_v28 = vld [vmem:[#allocation2 + $0x20] ss:$8 sps:$4 sm:$0xff]   ;;  %v637_v29 = vsel %vm2925_vm11, %v2274_v37, %v636_v19  ;;  %v382_v30 = vsel %vm2880_vm3, %v313_v3, %v381_v26  ;;  %2557 = vmatprep.subr.bf16.mxu1 %v2713_v49 }
  0x46   : > { %v531_v2 = vshll.u32 %v443_v60, 16  ;;  %v2696_v11 = vld [vmem:[#allocation2 + $0x28] ss:$8 sps:$4 sm:$0xff]   ;;  %v594_v18 = vld [vmem:[#allocation2 + $0x2c] sm:$0x1]  ;;  %v520_v22 = vsel %vm2936_vm12, %v515_v1, %v519_v6  ;;  %v385_v31 = vsel %vm2904_vm6, %v320_v9, %v384_v5  ;;  %v2714_v51 = vld [vmem:[%s3257_s1 + $0x138] sm:$0xff]  }
  0x47   : > { %v528_v14 = vor.u32 %v527_v8, %v524_v7  ;;  %1932 = vmatprep.mubr.bf16.mxu1 %v2696_v11  ;;  %v640_v25 = vrot.slane %v594_v18, 5  ;;  %v387_v32 = vld [vmem:[#allocation2 + $0x3c] sm:$0x1]  ;;  %v444_v33 = vld [vmem:[#allocation2 + $0x30] sm:$0xf]  ;;  %v3123_v62 = vld [vmem:[%s3257_s1 + $0x200] sm:$0xff]  }
  0x48   : > { %v533_v16 = vrot.slane %v531_v2, 5  ;;  %2516 = vmatpush3.bf16.msra.mxu0 %v2710_v10  ;;  %383 = vst [vmem:[#allocation2 + $0x34] sm:$0x1] %v382_v30  ;;  %386 = vst [vmem:[#allocation2 + $0x38] sm:$0xf] %v385_v31  ;;  %v388_v24 = vsel %vm2880_vm3, %v321_v13, %v387_v32  ;;  %v536_v37 = vshrl.u32 %v444_v33, 16 }
  0x49   : > { %v529_v27 = vrot.slane %v528_v14, 4  ;;  %v641_v36 = vsel %vm2925_vm11, %v2275_v23, %v640_v25  ;;  %v539_v39 = vshll.u32 %v444_v33, 16  ;;  %v390_v40 = vld [vmem:[#allocation2 + $0x40] sm:$0xf]  ;;  %389 = vst [vmem:[#allocation2 + $0x3c] sm:$0x1] %v388_v24  ;;  %2517 = vmatprep.subr.bf16.mxu0 %v2712_v48 }
  0x4a   : > { %v2280_v42 = vcombine.low %v637_v29, %v641_v36  ;;  %v391_v43 = vsel %vm2904_vm6, %v328_v21, %v390_v40  ;;  %v595_v44 = vld [vmem:[#allocation2 + $0x30] sm:$0xe]  ;;  %v538_v46 = vrot.slane %v536_v37, 4  ;;  %v2715_v59 = vld [vmem:[%s3257_s1 + $0x1b8] sm:$0xff]   ;;  %v854_v18 = vld [vmem:[#allocation2 + $0x8] sm:$0xe] }
  0x4b   : > { %v534_v41 = vsel %vm2936_vm12, %v529_v27, %v533_v16  ;;  %v541_v47 = vrot.slane %v539_v39, 5  ;;  %392 = vst [vmem:[#allocation2 + $0x40] sm:$0xf] %v391_v43  ;;  %v2276_v50 = vrot.slane %v595_v44, 9  ;;  %2558 = vmatpush3.bf16.msra.mxu1 %v2715_v59  ;;  %v855_v19 = vld [vmem:[#allocation2 + $0xc] sm:$0x1] }
  0x4c   : > { %v2268_v45 = vcombine.low %v520_v22, %v534_v41  ;;  %1933 = vmatmul.mubr.bf16.gmra.mrb[8].mxu1 %v2280_v42  ;;  %2518 = vmatpush3.bf16.msra.mxu0 %v2714_v51  ;;  %v856_v22 = vld [vmem:[#allocation2 + $0x10] sm:$0xe]  ;;  %v857_v23 = vld [vmem:[#allocation2 + $0x14] sm:$0x1]  ;;  %v2290_v25 = vrot.slane %v854_v18, 9  ;;  %v888_v26 = vrot.slane %v855_v19, 5 }
  0x4d   : > { %v542_v56 = vor.u32 %v541_v47, %v538_v46  ;;  %2595 = vmatprep.subr.bf16.mxu0 %v3123_v62  ;;  %2619 = vmatprep.subr.bf16.mxu1 %v3123_v62  ;;  %v892_v29 = vrot.slane %v857_v23, 5  ;;  %v975_v30 = vld [vmem:[#allocation2 + $0x10] sm:$0xf]  ;;  %v976_v31 = vld [vmem:[#allocation2 + $0x14] sm:$0x1] }
  0x4e   : > { %1867 = vmatprep.mubr.bf16.mxu0 %v2268_v45  ;;  %v889_v33 = vsel %vm2925_vm11, %v2290_v25, %v888_v26  ;;  %v977_v35 = vld [vmem:[#allocation2 + $0x18] sm:$0xf]  ;;  %v978_v36 = vld [vmem:[#allocation2 + $0x1c] sm:$0x1]  ;;  %v992_v24 = vshrl.u32 %v975_v30, 16  ;;  %v995_v37 = vshll.u32 %v975_v30, 16 }
  0x4f   : > { %1868 = vmatmul.mubr.bf16.gmra.mrb[8].mxu0 %v2697_v28  ;;  %v445_v52 = vld [vmem:[#allocation2 + $0x34] sm:$0x1]  ;;  %v446_v53 = vld [vmem:[#allocation2 + $0x38] sm:$0xf]  ;;  %v543_v63 = vrot.slane %v542_v56, 4  ;;  %v2291_v28 = vrot.slane %v856_v22, 9 }
  0x50   : > { %v447_v54 = vld [vmem:[#allocation2 + $0x3c] sm:$0x1]  ;;  %v545_v55 = vshll.u32 %v445_v52, 16  ;;  %v550_v57 = vshrl.u32 %v446_v53, 16  ;;  %v553_v58 = vshll.u32 %v446_v53, 16  ;;  %v1001_v40 = vshll.u32 %v976_v31, 16 }
  0x51   : > { %v559_v60 = vshll.u32 %v447_v54, 16  ;;  %v596_v3 = vld [vmem:[#allocation2 + $0x34] sm:$0x1]  ;;  %v597_v8 = vld [vmem:[#allocation2 + $0x38] sm:$0xe]  ;;  %v893_v39 = vsel %vm2925_vm11, %v2291_v28, %v892_v29  ;;  %v1006_v41 = vshrl.u32 %v977_v35, 16 }
  0x52   : > { %v2706_v61 = vld [vmem:[#allocation2 + $0x38] ss:$8 sps:$4 sm:$0xff]   ;;  %v547_v0 = vrot.slane %v545_v55, 5  ;;  %v552_v1 = vrot.slane %v550_v57, 4  ;;  %v555_v2 = vrot.slane %v553_v58, 5  ;;  %v644_v10 = vrot.slane %v596_v3, 5 }
  0x53   : > { %1940 = vmatprep.mubr.bf16.mxu1 %v2706_v61  ;;  %v561_v7 = vrot.slane %v559_v60, 5  ;;  %v598_v9 = vld [vmem:[#allocation2 + $0x3c] sm:$0x1]  ;;  %v2277_v11 = vrot.slane %v597_v8, 9  ;;  %v2707_v16 = vld [vmem:[#allocation2 + $0x30] ss:$8 sps:$4 sm:$0xff]   ;;  %v2298_v44 = vcombine.low %v889_v33, %v893_v39 }
  0x54   : > { %v556_v6 = vor.u32 %v555_v2, %v552_v1  ;;  %v648_v12 = vrot.slane %v598_v9, 5  ;;  %v548_v13 = vsel %vm2936_vm12, %v543_v63, %v547_v0  ;;  %v645_v17 = vsel %vm2925_vm11, %v2276_v50, %v644_v10  ;;  %v706_v43 = vld [vmem:[#allocation2 + $0x8] sm:$0xf]  ;;  %v707_v48 = vld [vmem:[#allocation2 + $0xc] sm:$0x1] }
  0x55   : > { %v1009_v42 = vshll.u32 %v977_v35, 16  ;;  %v994_v45 = vrot.slane %v992_v24, 4  ;;  %v997_v46 = vrot.slane %v995_v37, 5  ;;  %v1015_v47 = vshll.u32 %v978_v36, 16  ;;  %v708_v51 = vld [vmem:[#allocation2 + $0x10] sm:$0xf] }
  0x56   : > { %v557_v14 = vrot.slane %v556_v6, 4  ;;  %v649_v21 = vsel %vm2925_vm11, %v2277_v11, %v648_v12  ;;  %v1003_v49 = vrot.slane %v1001_v40, 5  ;;  %v1008_v56 = vrot.slane %v1006_v41, 4  ;;  %v709_v55 = vld [vmem:[#allocation2 + $0x14] sm:$0x1]  ;;  %v2718_v25 = vld [vmem:[%s3257_s1 + $0x208] sm:$0xff]  }
  0x57   : > { %v2281_v27 = vcombine.low %v645_v17, %v649_v21  ;;  %v1011_v50 = vrot.slane %v1009_v42, 5  ;;  %v723_v52 = vshrl.u32 %v706_v43, 16  ;;  %v998_v53 = vor.u32 %v997_v46, %v994_v45  ;;  %v2716_v8 = vld [vmem:[#allocation2 + $0x10] ss:$8 sps:$4 sm:$0xff]   ;;  %v859_v19 = vld [vmem:[#allocation2 + $0x1c] sm:$0x1] }
  0x58   : > { %v562_v5 = vsel %vm2936_vm12, %v557_v14, %v561_v7  ;;  %v1017_v54 = vrot.slane %v1015_v47, 5  ;;  %v726_v57 = vshll.u32 %v706_v43, 16  ;;  %v732_v58 = vshll.u32 %v707_v48, 16  ;;  %v860_v21 = vld [vmem:[#allocation2 + $0x20] sm:$0xe] }
  0x59   : > { %v2269_v32 = vcombine.low %v548_v13, %v562_v5  ;;  %1941 = vmatmul.mubr.bf16.gmra.mrb[12].mxu1 %v2281_v27  ;;  %v1012_v59 = vor.u32 %v1011_v50, %v1008_v56  ;;  %v725_v60 = vrot.slane %v723_v52, 4  ;;  %v737_v61 = vshrl.u32 %v708_v51, 16  ;;  %v861_v26 = vld [vmem:[#allocation2 + $0x24] sm:$0x1]  ;;  %v979_v30 = vld [vmem:[#allocation2 + $0x20] sm:$0xf] }
  0x5a   : > { %v740_v63 = vshll.u32 %v708_v51, 16  ;;  %v999_v0 = vrot.slane %v998_v53, 4  ;;  %v728_v1 = vrot.slane %v726_v57, 5  ;;  %v746_v2 = vshll.u32 %v709_v55, 16  ;;  %v980_v31 = vld [vmem:[#allocation2 + $0x24] sm:$0x1] }
  0x5b   : > { %1875 = vmatprep.mubr.bf16.mxu0 %v2269_v32  ;;  %v1013_v3 = vrot.slane %v1012_v59, 4  ;;  %v739_v6 = vrot.slane %v737_v61, 4  ;;  %v734_v11 = vrot.slane %v732_v58, 5  ;;  %v896_v5 = vrot.slane %v859_v19, 5  ;;  %v981_v35 = vld [vmem:[#allocation2 + $0x28] sm:$0xf] }
  0x5c   : > { %1876 = vmatmul.mubr.bf16.gmra.mrb[12].mxu0 %v2707_v16  ;;  %v742_v7 = vrot.slane %v740_v63, 5  ;;  %v1004_v9 = vsel %vm2936_vm12, %v999_v0, %v1003_v49  ;;  %v729_v10 = vor.u32 %v728_v1, %v725_v60  ;;  %v748_v12 = vrot.slane %v746_v2, 5  ;;  %v858_v16 = vld [vmem:[#allocation2 + $0x18] sm:$0xe]  ;;  %v982_v36 = vld [vmem:[#allocation2 + $0x2c] sm:$0x1] }
  0x5d   : > { %1981 = vmatprep.mubr.bf16.mxu0 %v2298_v44  ;;  %v1018_v13 = vsel %vm2936_vm12, %v1013_v3, %v1017_v54  ;;  %v2292_v22 = vrot.slane %v858_v16, 9  ;;  %v2293_v27 = vrot.slane %v860_v21, 9  ;;  %v900_v29 = vrot.slane %v861_v26, 5  ;;  %v710_v43 = vld [vmem:[#allocation2 + $0x18] sm:$0xf]  ;;  %v2720_v56 = vld [vmem:[%s3257_s1 + $0x210] sm:$0xff]  }
  0x5e   : > { %v743_v14 = vor.u32 %v742_v7, %v739_v6  ;;  %v2306_v17 = vcombine.low %v1004_v9, %v1018_v13  ;;  %v730_v18 = vrot.slane %v729_v10, 4  ;;  %v1020_v24 = vshrl.u32 %v979_v30, 16  ;;  %v711_v44 = vld [vmem:[#allocation2 + $0x1c] sm:$0x1]  ;;  %v712_v49 = vld [vmem:[#allocation2 + $0x20] sm:$0xf] }
  0x5f   : > { %v897_v33 = vsel %vm2925_vm11, %v2292_v22, %v896_v5  ;;  %v1023_v37 = vshll.u32 %v979_v30, 16  ;;  %v901_v40 = vsel %vm2925_vm11, %v2293_v27, %v900_v29  ;;  %v1029_v41 = vshll.u32 %v980_v31, 16  ;;  %v713_v53 = vld [vmem:[#allocation2 + $0x24] sm:$0x1]  ;;  %v2721_v6 = vld [vmem:[%s3257_s1 + $0x218] sm:$0xff]  }
  0x60   : > { %v744_v23 = vrot.slane %v743_v14, 4  ;;  %2046 = vmatprep.mubr.bf16.mxu1 %v2306_v17  ;;  %v735_v28 = vsel %vm2936_vm12, %v730_v18, %v734_v11  ;;  %v1034_v42 = vshrl.u32 %v981_v35, 16  ;;  %v2299_v45 = vcombine.low %v897_v33, %v901_v40  ;;  %v2719_v13 = vld [vmem:[#allocation2 + $0x20] ss:$8 sps:$4 sm:$0xff]   ;;  %v863_v21 = vld [vmem:[#allocation2 + $0x2c] sm:$0x1] }
  0x61   : > { %2047 = vmatmul.mubr.bf16.vlgmr.msra.gmra.mrb[16].mxu1 %v2716_v8  ;;  %v1022_v46 = vrot.slane %v1020_v24, 4  ;;  %v1025_v47 = vrot.slane %v1023_v37, 5  ;;  %v1037_v48 = vshll.u32 %v981_v35, 16  ;;  %v1031_v50 = vrot.slane %v1029_v41, 5  ;;  %v862_v17 = vld [vmem:[#allocation2 + $0x28] sm:$0xe] }
  0x62   : > { %v749_v32 = vsel %vm2936_vm12, %v744_v23, %v748_v12  ;;  %2627 = vmatpush3.bf16.msra.mxu1 %v3123_v62  ;;  %v1036_v51 = vrot.slane %v1034_v42, 4  ;;  %v1043_v52 = vshll.u32 %v982_v36, 16  ;;  %v751_v54 = vshrl.u32 %v710_v43, 16  ;;  %v864_v22 = vld [vmem:[#allocation2 + $0x30] sm:$0xe]  ;;  %v2723_v33 = vld [vmem:[%s3257_s1 + $0x220] sm:$0xff]  }
  0x63   : > { %v2286_v39 = vcombine.low %v735_v28, %v749_v32  ;;  %2620 = vmatprep.subr.bf16.mxu1 %v2718_v25  ;;  %v1026_v55 = vor.u32 %v1025_v47, %v1022_v46  ;;  %v1039_v57 = vrot.slane %v1037_v48, 5  ;;  %v754_v58 = vshll.u32 %v710_v43, 16  ;;  %v865_v5 = vld [vmem:[#allocation2 + $0x34] sm:$0x1]  ;;  %v983_v31 = vld [vmem:[#allocation2 + $0x30] sm:$0xf] }
  0x64   : > { %v760_v59 = vshll.u32 %v711_v44, 16  ;;  %v753_v60 = vrot.slane %v751_v54, 4  ;;  %v765_v61 = vshrl.u32 %v712_v49, 16  ;;  %v768_v63 = vshll.u32 %v712_v49, 16  ;;  %v984_v32 = vld [vmem:[#allocation2 + $0x34] sm:$0x1] }
  0x65   : > { %1982 = vmatmul.mubr.bf16.vlgmr.msra.gmra.mrb[16].mxu0 %v2286_v39  ;;  %v1027_v0 = vrot.slane %v1026_v55, 4  ;;  %v1040_v1 = vor.u32 %v1039_v57, %v1036_v51  ;;  %v1045_v2 = vrot.slane %v1043_v52, 5  ;;  %v756_v3 = vrot.slane %v754_v58, 5  ;;  %v985_v24 = vld [vmem:[#allocation2 + $0x38] sm:$0xf]  ;;  %v2724_v51 = vld [vmem:[%s3257_s1 + $0x228] sm:$0xff]  }
  0x66   : > { %2596 = vmatpush3.bf16.msra.mxu0 %v3123_v62  ;;  %1989 = vmatprep.mubr.bf16.mxu0 %v2299_v45  ;;  %v767_v62 = vrot.slane %v765_v61, 4  ;;  %v770_v7 = vrot.slane %v768_v63, 5  ;;  %v774_v8 = vshll.u32 %v713_v53, 16  ;;  %v762_v12 = vrot.slane %v760_v59, 5  ;;  %v986_v37 = vld [vmem:[#allocation2 + $0x3c] sm:$0x1] }
  0x67   : > { %2597 = vmatprep.subr.bf16.mxu0 %v2718_v25  ;;  %2628 = vmatpush3.bf16.msra.mxu1 %v2718_v25  ;;  %v1032_v9 = vsel %vm2936_vm12, %v1027_v0, %v1031_v50  ;;  %v1041_v10 = vrot.slane %v1040_v1, 4  ;;  %v757_v11 = vor.u32 %v756_v3, %v753_v60  ;;  %v2294_v23 = vrot.slane %v862_v17, 9  ;;  %v714_v45 = vld [vmem:[#allocation2 + $0x28] sm:$0xf]  ;;  %v715_v46 = vld [vmem:[#allocation2 + $0x2c] sm:$0x1] }
  0x68   : > { %2621 = vmatprep.subr.bf16.mxu1 %v2720_v56  ;;  %v771_v14 = vor.u32 %v770_v7, %v767_v62  ;;  %v776_v16 = vrot.slane %v774_v8, 5  ;;  %v904_v27 = vrot.slane %v863_v21, 5  ;;  %v2295_v28 = vrot.slane %v864_v22, 9  ;;  %v716_v50 = vld [vmem:[#allocation2 + $0x30] sm:$0xf] }
  0x69   : > { %v1046_v18 = vsel %vm2936_vm12, %v1041_v10, %v1045_v2  ;;  %v758_v19 = vrot.slane %v757_v11, 4  ;;  %v908_v30 = vrot.slane %v865_v5, 5  ;;  %v1048_v39 = vshrl.u32 %v983_v31, 16  ;;  %v717_v55 = vld [vmem:[#allocation2 + $0x34] sm:$0x1] }
  0x6a   : > { %2598 = vmatpush3.bf16.msra.mxu0 %v2718_v25  ;;  %v2307_v25 = vcombine.low %v1032_v9, %v1046_v18  ;;  %v772_v26 = vrot.slane %v771_v14, 4  ;;  %v905_v36 = vsel %vm2925_vm11, %v2294_v23, %v904_v27  ;;  %v1051_v40 = vshll.u32 %v983_v31, 16  ;;  %v255_v18 = vld [vmem:[#allocation2 + $0x44] sm:$0x1]  ;;  %v2722_v22 = vld [vmem:[#allocation2 + $0x30] ss:$8 sps:$4 sm:$0xff]  }
  0x6b   : > { %2599 = vmatprep.subr.bf16.mxu0 %v2720_v56  ;;  %2629 = vmatpush3.bf16.msra.mxu1 %v2720_v56  ;;  %v763_v29 = vsel %vm2936_vm12, %v758_v19, %v762_v12  ;;  %v909_v42 = vsel %vm2925_vm11, %v2295_v28, %v908_v30  ;;  %v1057_v43 = vshll.u32 %v984_v32, 16  ;;  %v1062_v44 = vshrl.u32 %v985_v24, 16  ;;  %v987_v28 = vld [vmem:[#allocation2 + $0x40] sm:$0xf]  ;;  %v2727_v30 = vld [vmem:[%s3257_s1 + $0x238] sm:$0xff]  }
  0x6c   : > { %2622 = vmatprep.subr.bf16.mxu1 %v2721_v6  ;;  %2054 = vmatprep.mubr.bf16.mxu1 %v2307_v25  ;;  %v777_v35 = vsel %vm2936_vm12, %v772_v26, %v776_v16  ;;  %v2300_v47 = vcombine.low %v905_v36, %v909_v42  ;;  %v1050_v48 = vrot.slane %v1048_v39, 4  ;;  %v1053_v49 = vrot.slane %v1051_v40, 5  ;;  %v3197_v31 = vld [vmem:[#allocation2 + $0x38] sm:$0xe]  ;;  %v3199_v32 = vld [vmem:[#allocation2 + $0x3c] sm:$0x1] }
  0x6d   : > { %v2287_v41 = vcombine.low %v763_v29, %v777_v35  ;;  %2055 = vmatmul.mubr.bf16.gmra.mrb[20].mxu1 %v2719_v13  ;;  %v1059_v52 = vrot.slane %v1057_v43, 5  ;;  %v1064_v53 = vrot.slane %v1062_v44, 4  ;;  %v1071_v54 = vshll.u32 %v986_v37, 16  ;;  %v989_v29 = vld [vmem:[#allocation2 + $0x48] sm:$0xf] }
  0x6e   : > { %2600 = vmatpush3.bf16.msra.mxu0 %v2720_v56  ;;  %v1065_v56 = vshll.u32 %v985_v24, 16  ;;  %v779_v57 = vshrl.u32 %v714_v45, 16  ;;  %v1054_v58 = vor.u32 %v1053_v49, %v1050_v48  ;;  %v782_v60 = vshll.u32 %v714_v45, 16  ;;  %v718_v36 = vld [vmem:[#allocation2 + $0x38] sm:$0xf] }
  0x6f   : > { %2601 = vmatprep.subr.bf16.mxu0 %v2721_v6  ;;  %2630 = vmatpush3.bf16.msra.mxu1 %v2721_v6  ;;  %v788_v61 = vshll.u32 %v715_v46, 16  ;;  %v793_v0 = vshrl.u32 %v716_v50, 16  ;;  %v796_v1 = vshll.u32 %v716_v50, 16  ;;  %v1073_v62 = vrot.slane %v1071_v54, 5  ;;  %v3201_v37 = vld [vmem:[#allocation2 + $0x40] sm:$0xe] }
  0x70   : > { %1990 = vmatmul.mubr.bf16.gmra.mrb[20].mxu0 %v2287_v41  ;;  %2623 = vmatprep.subr.bf16.mxu1 %v2723_v33  ;;  %v1067_v59 = vrot.slane %v1065_v56, 5  ;;  %v781_v63 = vrot.slane %v779_v57, 4  ;;  %v1055_v2 = vrot.slane %v1054_v58, 4  ;;  %v784_v7 = vrot.slane %v782_v60, 5  ;;  %v719_v42 = vld [vmem:[#allocation2 + $0x3c] sm:$0x1] }
  0x71   : > { %1997 = vmatprep.mubr.bf16.mxu0 %v2300_v47  ;;  %v795_v8 = vrot.slane %v793_v0, 4  ;;  %v798_v9 = vrot.slane %v796_v1, 5  ;;  %v802_v10 = vshll.u32 %v717_v55, 16  ;;  %v790_v14 = vrot.slane %v788_v61, 5  ;;  %v720_v45 = vld [vmem:[#allocation2 + $0x40] sm:$0xf] }
  0x72   : > { %2602 = vmatpush3.bf16.msra.mxu0 %v2721_v6  ;;  %v1068_v3 = vor.u32 %v1067_v59, %v1064_v53  ;;  %v2726_v6 = vld [vmem:[%s3257_s1 + $0x230] sm:$0xff]   ;;  %v1060_v11 = vsel %vm2936_vm12, %v1055_v2, %v1059_v52  ;;  %v785_v13 = vor.u32 %v784_v7, %v781_v63  ;;  %v256_v23 = vsel %vm2888_vm4, 0, %v255_v18  ;;  %v1133_v18 = vld [vmem:[#allocation2 + $0x38] sm:$0xe] }
  0x73   : > { %2603 = vmatprep.subr.bf16.mxu0 %v2723_v33  ;;  %2631 = vmatpush3.bf16.msra.mxu1 %v2723_v33  ;;  %v799_v16 = vor.u32 %v798_v9, %v795_v8  ;;  %v804_v17 = vrot.slane %v802_v10, 5  ;;  %257 = vst [vmem:[#allocation2 + $0x44] sm:$0x1] %v256_v23  ;;  %v329_v5 = vrot.slane %v3081_v4, 4  ;;  %v1076_v4 = vshrl.u32 %v987_v28, 16 }
  0x74   : > { %2624 = vmatprep.subr.bf16.mxu1 %v2724_v51  ;;  %v1069_v12 = vrot.slane %v1068_v3, 4  ;;  %v786_v21 = vrot.slane %v785_v13, 4  ;;  %v1079_v35 = vshll.u32 %v987_v28, 16  ;;  %v1090_v39 = vshrl.u32 %v989_v29, 16  ;;  %v1123_v7 = vld [vmem:[#allocation2 + $0x10] sm:$0xe] }
  0x75   : > { %v800_v26 = vrot.slane %v799_v16, 4  ;;  %v1093_v40 = vshll.u32 %v989_v29, 16  ;;  %v1078_v43 = vrot.slane %v1076_v4, 4  ;;  %v807_v46 = vshrl.u32 %v718_v36, 16  ;;  %v1124_v8 = vld [vmem:[#allocation2 + $0x14] sm:$0x1] }
  0x76   : > { %2604 = vmatpush3.bf16.msra.mxu0 %v2723_v33  ;;  %v1074_v19 = vsel %vm2936_vm12, %v1069_v12, %v1073_v62  ;;  %v791_v27 = vsel %vm2936_vm12, %v786_v21, %v790_v14  ;;  %v990_v33 = vld [vmem:[#allocation2 + $0x4c] sm:$0x1]  ;;  %v1081_v44 = vrot.slane %v1079_v35, 5  ;;  %v810_v47 = vshll.u32 %v718_v36, 16  ;;  %v1125_v9 = vld [vmem:[#allocation2 + $0x18] sm:$0xe] }
  0x77   : > { %2605 = vmatprep.subr.bf16.mxu0 %v2724_v51  ;;  %2632 = vmatpush3.bf16.msra.mxu1 %v2724_v51  ;;  %v2308_v25 = vcombine.low %v1060_v11, %v1074_v19  ;;  %v805_v38 = vsel %vm2936_vm12, %v800_v26, %v804_v17  ;;  %v1099_v41 = vshll.u32 %v990_v33, 16  ;;  %v1092_v48 = vrot.slane %v1090_v39, 4  ;;  %v1126_v10 = vld [vmem:[#allocation2 + $0x1c] sm:$0x1]  ;;  %v1131_v13 = vld [vmem:[#allocation2 + $0x30] sm:$0xe] }
  0x78   : > { %2625 = vmatprep.subr.bf16.mxu1 %v2726_v6  ;;  %v2288_v24 = vcombine.low %v791_v27, %v805_v38  ;;  %v1095_v49 = vrot.slane %v1093_v40, 5  ;;  %v816_v56 = vshll.u32 %v719_v42, 16  ;;  %v1082_v50 = vor.u32 %v1081_v44, %v1078_v43  ;;  %v1132_v14 = vld [vmem:[#allocation2 + $0x34] sm:$0x1]  ;;  %v1134_v19 = vld [vmem:[#allocation2 + $0x3c] sm:$0x1] }
  0x79   : > { %2062 = vmatprep.mubr.bf16.mxu1 %v2308_v25  ;;  %v812_v52 = vrot.slane %v810_v47, 5  ;;  %v821_v53 = vshrl.u32 %v720_v45, 16  ;;  %v2296_v55 = vrot.slane %v3197_v31, 9  ;;  %v912_v57 = vrot.slane %v3199_v32, 5  ;;  %v1127_v28 = vld [vmem:[#allocation2 + $0x20] sm:$0xe] }
  0x7a   : > { %2606 = vmatpush3.bf16.msra.mxu0 %v2724_v51  ;;  %2063 = vmatmul.mubr.bf16.gmra.mrb[24].mxu1 %v2722_v22  ;;  %v809_v51 = vrot.slane %v807_v46, 4  ;;  %v393_v54 = vld [vmem:[#allocation2 + $0x44] sm:$0x1]  ;;  %v824_v58 = vshll.u32 %v720_v45, 16  ;;  %v2297_v60 = vrot.slane %v3201_v37, 9  ;;  %v3208_v61 = vrot.slane %v1099_v41, 5 }
  0x7b   : > { %2607 = vmatprep.subr.bf16.mxu0 %v2726_v6  ;;  %2633 = vmatpush3.bf16.msra.mxu1 %v2726_v6  ;;  %v394_v59 = vsel %vm2880_vm3, %v329_v5, %v393_v54  ;;  %v1096_v63 = vor.u32 %v1095_v49, %v1092_v48  ;;  %v823_v0 = vrot.slane %v821_v53, 4  ;;  %v1083_v2 = vrot.slane %v1082_v50, 4  ;;  %v1128_v29 = vld [vmem:[#allocation2 + $0x24] sm:$0x1]  ;;  %v1130_v40 = vld [vmem:[#allocation2 + $0x2c] sm:$0x1] }
  0x7c   : > { %1998 = vmatmul.mubr.bf16.gmra.mrb[24].mxu0 %v2288_v24  ;;  %2626 = vmatprep.subr.bf16.mxu1 %v2727_v30  ;;  %395 = vst [vmem:[#allocation2 + $0x44] sm:$0x1] %v394_v59  ;;  %v826_v1 = vrot.slane %v824_v58, 5  ;;  %v813_v3 = vor.u32 %v812_v52, %v809_v51  ;;  %v818_v62 = vrot.slane %v816_v56, 5  ;;  %v1157_v34 = vrot.slane %v1124_v8, 5 }
  0x7d   : > { %v2311_v11 = vrot.slane %v1125_v9, 9  ;;  %v1161_v12 = vrot.slane %v1126_v10, 5  ;;  %v1097_v16 = vrot.slane %v1096_v63, 4  ;;  %v2314_v21 = vrot.slane %v1131_v13, 9  ;;  %v1135_v45 = vld [vmem:[#allocation2 + $0x40] sm:$0xe] }
  0x7e   : > { %2608 = vmatpush3.bf16.msra.mxu0 %v2726_v6  ;;  %v2310_v6 = vrot.slane %v1123_v7, 9  ;;  %v827_v17 = vor.u32 %v826_v1, %v823_v0  ;;  %v814_v22 = vrot.slane %v813_v3, 4  ;;  %v1173_v23 = vrot.slane %v1132_v14, 5  ;;  %v1137_v50 = vld [vmem:[#allocation2 + $0x48] sm:$0xe] }
  0x7f   : > { %2609 = vmatprep.subr.bf16.mxu0 %v2727_v30  ;;  %2634 = vmatpush3.bf16.msra.mxu1 %v2727_v30  ;;  %v2315_v25 = vrot.slane %v1133_v18, 9  ;;  %v1177_v26 = vrot.slane %v1134_v19, 5  ;;  %v1162_v27 = vsel %vm2925_vm11, %v2311_v11, %v1161_v12  ;;  %v913_v31 = vsel %vm2925_vm11, %v2296_v55, %v912_v57  ;;  %v1138_v51 = vld [vmem:[#allocation2 + $0x4c] sm:$0x1]  ;;  %v2725_v59 = vld [vmem:[#allocation2 + $0x40] ss:$8 sps:$4 sm:$0xff]  }
  0x80   : > { %v1158_v5 = vsel %vm2925_vm11, %v2310_v6, %v1157_v34  ;;  %v1174_v4 = vsel %vm2925_vm11, %v2314_v21, %v1173_v23  ;;  %v828_v37 = vrot.slane %v827_v17, 4  ;;  %v1102_v41 = vsel %vm2936_vm12, %v1097_v16, %v3208_v61 }
  0x81   : > { %v1178_v35 = vsel %vm2925_vm11, %v2315_v25, %v1177_v26  ;;  %v819_v42 = vsel %vm2936_vm12, %v814_v22, %v818_v62  ;;  %v2318_v43 = vcombine.low %v1158_v5, %v1162_v27  ;;  %v2312_v44 = vrot.slane %v1127_v28, 9 }
  0x82   : > { %2610 = vmatpush3.bf16.msra.mxu0 %v2727_v30  ;;  %v1129_v30 = vld [vmem:[#allocation2 + $0x28] sm:$0xe]  ;;  %v2320_v56 = vcombine.low %v1174_v4, %v1178_v35  ;;  %v1165_v53 = vrot.slane %v1128_v29, 5  ;;  %v1169_v55 = vrot.slane %v1130_v40, 5  ;;  %v2316_v61 = vrot.slane %v1135_v45, 9 }
  0x83   : > { %v869_v38 = vld [vmem:[#allocation2 + $0x44] sm:$0x1]  ;;  %v2313_v54 = vrot.slane %v1129_v30, 9  ;;  %v2317_v1 = vrot.slane %v1137_v50, 9  ;;  %v1185_v3 = vrot.slane %v1138_v51, 5 }
  0x84   : > { %v988_v32 = vld [vmem:[#allocation2 + $0x44] sm:$0x1]  ;;  %v916_v36 = vrot.slane %v869_v38, 5  ;;  %v1166_v62 = vsel %vm2925_vm11, %v2312_v44, %v1165_v53 }
  0x85   : > { %v721_v33 = vld [vmem:[#allocation2 + $0x44] sm:$0x1]  ;;  %v1085_v24 = vshll.u32 %v988_v32, 16  ;;  %v1186_v7 = vsel %vm2925_vm11, %v2317_v1, %v1185_v3 }
  0x86   : > { %v830_v39 = vshll.u32 %v721_v33, 16  ;;  %v1136_v46 = vld [vmem:[#allocation2 + $0x44] sm:$0x1]  ;;  %v917_v47 = vsel %vm2925_vm11, %v2297_v60, %v916_v36 }
  0x87   : > { %v1087_v48 = vrot.slane %v1085_v24, 5  ;;  %v2301_v52 = vcombine.low %v913_v31, %v917_v47  ;;  %v1181_v63 = vrot.slane %v1136_v46, 5 }
  0x88   : > { %v832_v49 = vrot.slane %v830_v39, 5 }
  0x89   : > { %v1088_v57 = vsel %vm2936_vm12, %v1083_v2, %v1087_v48  ;;  %2005 = vmatprep.mubr.bf16.mxu0 %v2301_v52  ;;  %v1170_v2 = vsel %vm2925_vm11, %v2313_v54, %v1169_v55  ;;  %v1182_v20 = vsel %vm2925_vm11, %v2316_v61, %v1181_v63 }
  0x8a   : > { %v833_v58 = vsel %vm2936_vm12, %v828_v37, %v832_v49  ;;  %v2309_v60 = vcombine.low %v1088_v57, %v1102_v41  ;;  %v2319_v8 = vcombine.low %v1166_v62, %v1170_v2  ;;  %v2321_v9 = vcombine.low %v1182_v20, %v1186_v7 }
  0x8b   : > { %v2289_v0 = vcombine.low %v819_v42, %v833_v58 }
  0x8c   : > { %2070 = vmatprep.mubr.bf16.mxu1 %v2309_v60 }
  0x8d   : > { %2006 = vmatmul.mubr.bf16.gmra.mrb[28].mxu0 %v2289_v0  ;;  %2071 = vmatmul.mubr.bf16.gmra.mrb[28].mxu1 %v2725_v59 }
  0x8e   : > { %2611 = vmatprep.mubr.bf16.mxu0 %v2318_v43  ;;  %2615 = vmatprep.mubr.bf16.mxu1 %v2320_v56 }
  0x95   : > { %2612 = vmatmul.mubr.bf16.vlgmr.msra.gmra.mrb[32].mxu0 %v2319_v8  ;;  %2616 = vmatmul.mubr.bf16.vlgmr.msra.gmra.mrb[32].mxu1 %v2321_v9 }
  0xfe   : > { %v2479_v10 = vpop.f32.mrb[0].mxu1 }
  0xff   : > { %v2480_v6 = vpop.f32.mrb[1].mxu1 }
 0x100   : > { %v2481_v34 = vadd.f32 %v2480_v6, %v2479_v10  ;;  %v2482_v11 = vpop.f32.mrb[2].mxu1 }
 0x101   : > { %v2483_v12 = vpop.f32.mrb[3].mxu1 }
 0x102   : > { %v2439_v13 = vpop.f32.mrb[0].mxu0  ;;  %v2484_v14 = vadd.f32 %v2483_v12, %v2482_v11 }
 0x103   : > { %v2440_v16 = vpop.f32.mrb[1].mxu0 }
 0x104   : > { %v2441_v17 = vadd.f32 %v2440_v16, %v2439_v13  ;;  %v2442_v18 = vpop.f32.mrb[2].mxu0 }
 0x105   : > { %v2443_v19 = vpop.f32.mrb[3].mxu0 }
 0x106   : > { %v1919_v21 = vadd.f32 %v2481_v34, %v2441_v17  ;;  %v2444_v22 = vadd.f32 %v2443_v19, %v2442_v18 }
 0x108   : > { %v1922_v23 = vadd.f32 %v2484_v14, %v2444_v22 }
 0x10c   : > { %v2485_v15 = vpop.f32.mrb[4].mxu1 }
 0x10d   : > { %v2486_v25 = vpop.f32.mrb[5].mxu1 }
 0x10e   : > { %v2487_v26 = vadd.f32 %v2486_v25, %v2485_v15  ;;  %v2488_v5 = vpop.f32.mrb[6].mxu1 }
 0x10f   : > { %v2489_v28 = vpop.f32.mrb[7].mxu1 }
 0x110   : > { %v2445_v27 = vpop.f32.mrb[4].mxu0  ;;  %v2490_v30 = vadd.f32 %v2489_v28, %v2488_v5 }
 0x111   : > { %v2446_v29 = vpop.f32.mrb[5].mxu0 }
 0x112   : > { %v2447_v38 = vadd.f32 %v2446_v29, %v2445_v27  ;;  %v2448_v31 = vpop.f32.mrb[6].mxu0 }
 0x113   : > { %v2449_v32 = vpop.f32.mrb[7].mxu0 }
 0x114   : > { %v1927_v33 = vadd.f32 %v2487_v26, %v2447_v38  ;;  %v2450_v4 = vadd.f32 %v2449_v32, %v2448_v31 }
 0x116   : > { %v1930_v35 = vadd.f32 %v2490_v30, %v2450_v4 }
 0x11f   : > { %v2491_v36 = vpop.f32.mrb[8].mxu1 }
 0x120   : > { %v2492_v24 = vpop.f32.mrb[9].mxu1 }
 0x121   : > { %v2493_v39 = vadd.f32 %v2492_v24, %v2491_v36  ;;  %v2494_v40 = vpop.f32.mrb[10].mxu1 }
 0x122   : > { %v2451_v37 = vpop.f32.mrb[8].mxu0  ;;  %v2495_v42 = vpop.f32.mrb[11].mxu1 }
 0x123   : > { %v2452_v41 = vpop.f32.mrb[9].mxu0  ;;  %v2496_v45 = vadd.f32 %v2495_v42, %v2494_v40 }
 0x124   : > { %v2453_v43 = vadd.f32 %v2452_v41, %v2451_v37  ;;  %v2454_v44 = vpop.f32.mrb[10].mxu0 }
 0x125   : > { %v2455_v46 = vpop.f32.mrb[11].mxu0 }
 0x126   : > { %v1935_v47 = vadd.f32 %v2493_v39, %v2453_v43  ;;  %v2456_v48 = vadd.f32 %v2455_v46, %v2454_v44 }
 0x128   : > { %v1938_v49 = vadd.f32 %v2496_v45, %v2456_v48 }
 0x12c   : > { %v2497_v56 = vpop.f32.mrb[12].mxu1 }
 0x12d   : > { %v2498_v50 = vpop.f32.mrb[13].mxu1 }
 0x12e   : > { %v2499_v52 = vadd.f32 %v2498_v50, %v2497_v56  ;;  %v2500_v53 = vpop.f32.mrb[14].mxu1 }
 0x12f   : > { %v2457_v51 = vpop.f32.mrb[12].mxu0  ;;  %v2501_v55 = vpop.f32.mrb[15].mxu1 }
 0x130   : > { %v2458_v54 = vpop.f32.mrb[13].mxu0  ;;  %v2502_v59 = vadd.f32 %v2501_v55, %v2500_v53 }
 0x131   : > { %v2459_v57 = vadd.f32 %v2458_v54, %v2457_v51  ;;  %v2460_v58 = vpop.f32.mrb[14].mxu0 }
 0x132   : > { %v2461_v61 = vpop.f32.mrb[15].mxu0 }
 0x133   : > { %v1943_v63 = vadd.f32 %v2499_v52, %v2459_v57  ;;  %v2462_v60 = vadd.f32 %v2461_v61, %v2460_v58 }
 0x134   : > { %v2559_v1 = vpop.f32.mrb[16].mxu1 }
 0x135   : > { %v1946_v0 = vadd.f32 %v2502_v59, %v2462_v60  ;;  %v2560_v3 = vpop.f32.mrb[17].mxu1 }
 0x136   : > { %v2561_v62 = vadd.f32 %v2560_v3, %v2559_v1  ;;  %v2562_v2 = vpop.f32.mrb[18].mxu1 }
 0x137   : > { %v2563_v7 = vpop.f32.mrb[19].mxu1 }
 0x138   : > { %v2519_v20 = vpop.f32.mrb[16].mxu0  ;;  %v2564_v9 = vadd.f32 %v2563_v7, %v2562_v2 }
 0x139   : > { %v2520_v8 = vpop.f32.mrb[17].mxu0 }
 0x13a   : > { %v2521_v10 = vadd.f32 %v2520_v8, %v2519_v20  ;;  %v2522_v6 = vpop.f32.mrb[18].mxu0 }
 0x13b   : > { %v2523_v34 = vpop.f32.mrb[19].mxu0 }
 0x13c   : > { %v1984_v11 = vadd.f32 %v2521_v10, %v1919_v21  ;;  %v2524_v12 = vadd.f32 %v2523_v34, %v2522_v6 }
 0x13e   : > { %v1987_v13 = vadd.f32 %v2524_v12, %v1922_v23  ;;  %v2049_v14 = vadd.f32 %v2561_v62, %v1984_v11 }
 0x140   : > { %v3239_v16 = vadd.f32 %v2564_v9, %v1987_v13  ;;  %v2565_v17 = vpop.f32.mrb[20].mxu1  ;;  %v2395_v9 = vld [vmem:[%s3259_s3] ss:$0 sm:$0xff] }
 0x141   : > { %v2566_v18 = vpop.f32.mrb[21].mxu1 }
 0x142   : > { %v2567_v22 = vadd.f32 %v2566_v18, %v2565_v17  ;;  %v2568_v15 = vpop.f32.mrb[22].mxu1 }
 0x143   : > { %v2525_v19 = vpop.f32.mrb[20].mxu0  ;;  %v2569_v26 = vpop.f32.mrb[23].mxu1 }
 0x144   : > { %v2526_v25 = vpop.f32.mrb[21].mxu0  ;;  %v2570_v28 = vadd.f32 %v2569_v26, %v2568_v15 }
 0x145   : > { %v2527_v5 = vadd.f32 %v2526_v25, %v2525_v19  ;;  %v2528_v27 = vpop.f32.mrb[22].mxu0 }
 0x146   : > { %v2529_v29 = vpop.f32.mrb[23].mxu0 }
 0x147   : > { %v1992_v30 = vadd.f32 %v2527_v5, %v1927_v33  ;;  %v2530_v38 = vadd.f32 %v2529_v29, %v2528_v27 }
 0x149   : > { %v1995_v31 = vadd.f32 %v2530_v38, %v1930_v35  ;;  %v2057_v21 = vadd.f32 %v2567_v22, %v1992_v30 }
 0x14b   : > { %v2060_v32 = vadd.f32 %v2570_v28, %v1995_v31 }
 0x14d   : > { %v2571_v23 = vpop.f32.mrb[24].mxu1 }
 0x14e   : > { %v2572_v4 = vpop.f32.mrb[25].mxu1 }
 0x14f   : > { %v2531_v36 = vpop.f32.mrb[24].mxu0  ;;  %v2573_v24 = vadd.f32 %v2572_v4, %v2571_v23  ;;  %v2574_v37 = vpop.f32.mrb[26].mxu1 }
 0x150   : > { %v2532_v39 = vpop.f32.mrb[25].mxu0  ;;  %v2575_v40 = vpop.f32.mrb[27].mxu1 }
 0x151   : > { %v2533_v41 = vadd.f32 %v2532_v39, %v2531_v36  ;;  %v2534_v42 = vpop.f32.mrb[26].mxu0  ;;  %v2576_v43 = vadd.f32 %v2575_v40, %v2574_v37 }
 0x152   : > { %v2535_v44 = vpop.f32.mrb[27].mxu0 }
 0x153   : > { %v2000_v45 = vadd.f32 %v2533_v41, %v1935_v47  ;;  %v2536_v46 = vadd.f32 %v2535_v44, %v2534_v42 }
 0x155   : > { %v2003_v48 = vadd.f32 %v2536_v46, %v1938_v49  ;;  %v2065_v56 = vadd.f32 %v2573_v24, %v2000_v45  ;;  %v2394_v49 = vld [vmem:[%s3258_s2] ss:$0 sm:$0xff] }
 0x157   : > { %v2068_v33 = vadd.f32 %v2576_v43, %v2003_v48 }
 0x160   : > { %v2537_v50 = vpop.f32.mrb[28].mxu0  ;;  %v2577_v35 = vpop.f32.mrb[28].mxu1 }
 0x161   : > { %v2538_v51 = vpop.f32.mrb[29].mxu0  ;;  %v2578_v53 = vpop.f32.mrb[29].mxu1 }
 0x162   : > { %v2539_v52 = vadd.f32 %v2538_v51, %v2537_v50  ;;  %v2540_v54 = vpop.f32.mrb[30].mxu0  ;;  %v2579_v55 = vadd.f32 %v2578_v53, %v2577_v35  ;;  %v2580_v57 = vpop.f32.mrb[30].mxu1 }
 0x163   : > { %v2541_v58 = vpop.f32.mrb[31].mxu0  ;;  %v2581_v60 = vpop.f32.mrb[31].mxu1 }
 0x164   : > { %v2008_v59 = vadd.f32 %v2539_v52, %v1943_v63  ;;  %v2542_v61 = vadd.f32 %v2541_v58, %v2540_v54  ;;  %v2582_v1 = vadd.f32 %v2581_v60, %v2580_v57 }
 0x166   : > { %v2011_v3 = vadd.f32 %v2542_v61, %v1946_v0  ;;  %v2073_v62 = vadd.f32 %v2579_v55, %v2008_v59 }
 0x168   : > { %v2613_v47 = vpop.f32.mrb[32].mxu0  ;;  %v2076_v2 = vadd.f32 %v2582_v1, %v2011_v3  ;;  %v2617_v7 = vpop.f32.mrb[32].mxu1 }
 0x169   : > { %v2122_v20 = vadd.f32 %v2613_v47, %v2057_v21  ;;  %v2113_v8 = vpop.f32.mrb[33].mxu0  ;;  %v2138_v10 = vadd.f32 %v2617_v7, %v2073_v62  ;;  %v2129_v6 = vpop.f32.mrb[33].mxu1 }
 0x16a   : > { %v2114_v63 = vadd.f32 %v2113_v8, %v2049_v14  ;;  %v2614_v34 = vpop.f32.mrb[34].mxu0  ;;  %v2130_v0 = vadd.f32 %v2129_v6, %v2065_v56  ;;  %v2618_v13 = vpop.f32.mrb[34].mxu1 }
 0x16b   : > { %v2153_v11 = vmul.f32 %v2394_v49, %v2122_v20  ;;  %v2125_v12 = vadd.f32 %v2614_v34, %v2060_v32  ;;  %v2116_v17 = vpop.f32.mrb[35].mxu0  ;;  %v2157_v18 = vmul.f32 %v2394_v49, %v2138_v10  ;;  %v2141_v22 = vadd.f32 %v2618_v13, %v2076_v2  ;;  %v2132_v25 = vpop.f32.mrb[35].mxu1 }
 0x16c   : > { %v2151_v19 = vmul.f32 %v2394_v49, %v2114_v63  ;;  %v2117_v15 = vadd.f32 %v2116_v17, %v3239_v16  ;;  %v2155_v5 = vmul.f32 %v2394_v49, %v2130_v0  ;;  %v2133_v28 = vadd.f32 %v2132_v25, %v2068_v33 }
 0x16d   : > { %v2168_v26 = vadd.f32 %v2395_v9, %v2153_v11  ;;  %v2154_v27 = vmul.f32 %v2394_v49, %v2125_v12  ;;  %v2172_v29 = vadd.f32 %v2395_v9, %v2157_v18  ;;  %v2158_v30 = vmul.f32 %v2394_v49, %v2141_v22 }
 0x16e   : > { %v2166_v14 = vadd.f32 %v2395_v9, %v2151_v19  ;;  %v2152_v38 = vmul.f32 %v2394_v49, %v2117_v15  ;;  %v2170_v31 = vadd.f32 %v2395_v9, %v2155_v5  ;;  %v2156_v32 = vmul.f32 %v2394_v49, %v2133_v28 }
 0x16f   : > { %v2169_v21 = vadd.f32 %v2395_v9, %v2154_v27  ;;  %v2173_v23 = vadd.f32 %v2395_v9, %v2158_v30  ;;  %v2176_v36 = vmax.f32 %v2168_v26, 0.0  ;;  %v2180_v39 = vmax.f32 %v2172_v29, 0.0 }
 0x170   : > { %v2167_v4 = vadd.f32 %v2395_v9, %v2152_v38  ;;  %v2171_v37 = vadd.f32 %v2395_v9, %v2156_v32  ;;  %v2174_v16 = vmax.f32 %v2166_v14, 0.0  ;;  %v2178_v42 = vmax.f32 %v2170_v31, 0.0 }
 0x171   : > { %v2177_v24 = vmax.f32 %v2169_v21, 0.0  ;;  %v2181_v40 = vmax.f32 %v2173_v23, 0.0 }
 0x172   : > { %v2175_v41 = vmax.f32 %v2167_v4, 0.0  ;;  %v2179_v44 = vmax.f32 %v2171_v37, 0.0 }
 0x173   : > { %v2408_v43 = vpack.c.bf16 %v2177_v24, %v2176_v36  ;;  %v2418_v45 = vpack.c.bf16 %v2181_v40, %v2180_v39 }
 0x174   : > { %v2403_v46 = vpack.c.bf16 %v2175_v41, %v2174_v16  ;;  %v2413_v48 = vpack.c.bf16 %v2179_v44, %v2178_v42 }
 0x175   : > { %2420 = vst [vmem:[%s197_s6 + $0x8] sm:$0xff] %v2408_v43   ;;  %2422 = vst [vmem:[%s197_s6 + $0x18] sm:$0xff] %v2418_v45  }
 0x176   : > { %2404 = vst [vmem:[%s197_s6] sm:$0xff] %v2403_v46   ;;  %2421 = vst [vmem:[%s197_s6 + $0x10] sm:$0xff] %v2413_v48  }
 0x177 PF: > { %s14_s15 = sadd.s32 1, %s2734_s15  }
 0x178   : > { %p11_p4 = scmp.ge.s32.totalorder %s14_s15, 4  }
 0x17a   :  { %13 = sbr.rel (!%p11_p4) target bundleno = 1 (0x1), region = 69 }

</bundles_post_ra>
